<compile_context>
chip_gen: v5e
topology: v5e:2x2
jax: 0.10.0
libtpu: 0.0.40
codegen_flags: <defaults>
</compile_context>

<pallas_src>
import jax
import jax.numpy as jnp
from jax import lax
from jax.experimental import pallas as pl
from jax.experimental.pallas import tpu as pltpu

VERY_SMALL_NUMBER = 1e-10

# bf16 MXU operands (native rate on v5e/v6e/v7x); accumulation is always f32.
# Set to jnp.float32 to match PyTorch numerics bit-for-bit (slower MXU path).
_MM_DTYPE = jnp.bfloat16

# Gate order inside the fused slab: i, f, o (sigmoid, contiguous) then g (tanh).
# Per-direction weights are stored in PyTorch order i, f, g, o and permuted
# host-side in _prep_bilstm_inputs.
_GATE_ORDER = (0, 1, 3, 2)


def _mm(a, b):
    return jnp.dot(a.astype(_MM_DTYPE), b.astype(_MM_DTYPE),
                   preferred_element_type=jnp.float32)


# ----------------------------------------------------------------------------
# Shared direction-fused BiLSTM core (runs inside each branch kernel)
# ----------------------------------------------------------------------------
def _bilstm_core(x_ref, len_ref, w_in_ref, b_in_ref, w_hh_ref, xproj_ref):
    """Masked bidirectional LSTM over one batch block, both directions fused.

    x_ref:     (L, R, 2E)   time-major; features at step k are [x[k] | x[L-1-k]]
    len_ref:   (R, 1)       int32 lengths (pack_padded_sequence semantics)
    w_in_ref:  (2E, 8*Hd)   direction-block-diag, gate-grouped input weights
    b_in_ref:  (1, 8*Hd)    fused biases (== b_ih + b_hh of nn.LSTM per dir)
    w_hh_ref:  (2*Hd, 8*Hd) block-diagonal recurrent weights
    xproj_ref: (L, R, 8*Hd) VMEM scratch (bf16) for the hoisted input projection
    Gate column layout: [i_f i_b | f_f f_b | o_f o_b | g_f g_b], each Hd wide.
    Returns h_cat (R, 2*Hd) f32 with layout [h_fwd | h_bwd].
    """
    L, R, _ = x_ref.shape
    Hd2 = w_hh_ref.shape[0]            # 2 * Hd
    Hd = Hd2 // 2
    H8 = 8 * Hd

    # Hoisted input projection: one lane-dense (L*R, 2E) @ (2E, 128) matmul.
    # Because the features carry the time-reversed copy and W_in is
    # direction-block-diagonal, xproj[k] already holds
    # [fwd pre-activation at t=k | bwd pre-activation at t=L-1-k].
    x_flat = x_ref[...].reshape(L * R, x_ref.shape[2])
    xproj = _mm(x_flat, w_in_ref[...]) + b_in_ref[...]
    xproj_ref[...] = xproj.reshape(L, R, H8).astype(xproj_ref.dtype)

    w_hh = w_hh_ref[...].astype(_MM_DTYPE)          # hoisted cast
    lengths = len_ref[...]                          # (R, 1) int32
    lane = lax.broadcasted_iota(jnp.int32, (R, Hd2), 1)
    is_fwd = lane < Hd                              # fwd half of the fused state

    def step(k, carry):
        h, c = carry                                # (R, 2Hd) f32 each
        t_b = L - 1 - k
        # ONE recurrent matmul per step; gates slab is a full 128-lane vreg row.
        gates = xproj_ref[k].astype(jnp.float32) + _mm(h, w_hh)   # (R, 8Hd) f32
        sig = jax.nn.sigmoid(gates[:, 0:6 * Hd])    # [i | f | o], one EUP slab
        g = jnp.tanh(gates[:, 6 * Hd:8 * Hd])       # [g_f | g_b]
        i = sig[:, 0:Hd2]
        f = sig[:, Hd2:2 * Hd2]
        o = sig[:, 2 * Hd2:3 * Hd2]
        c_new = f * c + i * g
        h_new = o * jnp.tanh(c_new)
        # pack_padded_sequence masking: fwd half gated on t=k, bwd on t=L-1-k.
        t_cur = jnp.where(is_fwd, k, t_b)           # (R, 2Hd) int32
        m = lengths > t_cur                         # (R, 2Hd) bool
        return (jnp.where(m, h_new, h), jnp.where(m, c_new, c))

    z = jnp.zeros((R, Hd2), jnp.float32)
    unroll = True if L <= 16 else 2
    h_cat, _ = lax.fori_loop(0, L, step, (z, z), unroll=unroll)
    return h_cat


# ----------------------------------------------------------------------------
# Branch kernels (BiLSTM + fused epilogue)
# ----------------------------------------------------------------------------
def _type_kernel(x_ref, len_ref, w_in_ref, b_in_ref, w_hh_ref,
                 w_out_ref, out_ref, xproj_ref):
    h_cat = _bilstm_core(x_ref, len_ref, w_in_ref, b_in_ref, w_hh_ref, xproj_ref)
    # Single fused output linear: (R, 2Hd) @ (2Hd, H).
    out_ref[...] = _mm(h_cat, w_out_ref[...])


def _paths_kernel(x_ref, len_ref, rel_ref, w_in_ref, b_in_ref, w_hh_ref,
                  w_bow_ref, w_rel_ref, out_ref, xproj_ref):
    h_cat = _bilstm_core(x_ref, len_ref, w_in_ref, b_in_ref, w_hh_ref, xproj_ref)
    # w_rel_ref is pre-scaled by 1/Lp, rel_ref holds sums: mean @ W == sum @ (W/Lp)
    out_ref[...] = _mm(h_cat, w_bow_ref[...]) + _mm(rel_ref[...], w_rel_ref[...])


def _ctx_kernel(x_ref, len_ref, num_ref, w_in_ref, b_in_ref, w_hh_ref,
                w_out_ref, out_ref, xproj_ref):
    h_cat = _bilstm_core(x_ref, len_ref, w_in_ref, b_in_ref, w_hh_ref, xproj_ref)
    R = x_ref.shape[1]                                  # = blk_bn * C rows
    Bn = num_ref.shape[0]
    C = R // Bn

    # Masked sum over the C context entities via a 0/1 selection-matrix matmul
    # (exact in bf16); no integer div/mod, no (BN, C, 1) mask DMA.
    num = num_ref[...]                                  # (Bn, 1) int32
    row = lax.broadcasted_iota(jnp.int32, (Bn, R), 0)
    col = lax.broadcasted_iota(jnp.int32, (Bn, R), 1)
    base = row * C
    sel = (col >= base) & (col < base + num)            # (Bn, R) bool
    ssum = _mm(sel.astype(jnp.float32), h_cat)          # (Bn, 2Hd) masked sum
    inv = 1.0 / jnp.maximum(num.astype(jnp.float32), VERY_SMALL_NUMBER)
    s_cat = ssum * inv                                  # masked mean (f32 scale)
    out_ref[...] = _mm(s_cat, w_out_ref[...])


# ----------------------------------------------------------------------------
# Host-side weight fusion + pallas_call wrappers
# ----------------------------------------------------------------------------
def _cdiv(a, b):
    return -(-a // b)


def _round_up(x, m):
    return ((x + m - 1) // m) * m


def _pick_block(n_rows, max_rows, align=16):
    # >=2 grid steps whenever possible so the "parallel" axis spans both v7x
    # TensorCores; rows aligned to 16 (bf16 sublane packing).
    half = _round_up(_cdiv(n_rows, 2), align)
    return max(align, min(max_rows, half))


def _pad_axis(a, size, axis):
    pad = size - a.shape[axis]
    if pad == 0:
        return a
    widths = [(0, 0)] * a.ndim
    widths[axis] = (0, pad)
    return jnp.pad(a, widths)


def _replicated_spec(shape):
    zeros = (0,) * len(shape)
    return pl.BlockSpec(shape, lambda i, z=zeros: z)


_COMPILER_PARAMS = pltpu.CompilerParams(
    dimension_semantics=("parallel",),
    vmem_limit_bytes=32 * 1024 * 1024,
)


def _fuse_gate_cols(w_f, w_b, Hd):
    """Interleave per-gate column blocks of the two directions.

    w_f, w_b: (..., 4*Hd) in PyTorch gate order i, f, g, o.
    Returns (..., 8*Hd) with layout [i_f i_b | f_f f_b | o_f o_b | g_f g_b].
    """
    cols = []
    for gi in _GATE_ORDER:
        cols.append(w_f[..., gi * Hd:(gi + 1) * Hd])
        cols.append(w_b[..., gi * Hd:(gi + 1) * Hd])
    return jnp.concatenate(cols, axis=-1)


def _prep_bilstm_inputs(x_emb, lengths, lstm_p, row_pad):
    """Build direction-fused inputs/weights for the fused BiLSTM kernel."""
    Hd = lstm_p['w_hh_f'].shape[0]
    x_tm = jnp.transpose(x_emb, (1, 0, 2))                   # (L, B, E)
    # Step-k features = [x[k] | x[L-1-k]]; with block-diag W_in this yields
    # [fwd pre(t=k) | bwd pre(t=L-1-k)] from a single projection matmul.
    x_cat = jnp.concatenate([x_tm, x_tm[::-1]], axis=-1)     # (L, B, 2E)
    x_cat = _pad_axis(x_cat, row_pad, axis=1).astype(_MM_DTYPE)
    len2 = _pad_axis(lengths.astype(jnp.int32).reshape(-1, 1), row_pad, axis=0)

    zf_ih = jnp.zeros_like(lstm_p['w_ih_f'])
    zb_ih = jnp.zeros_like(lstm_p['w_ih_b'])
    w_in = jnp.concatenate(
        [_fuse_gate_cols(lstm_p['w_ih_f'], zb_ih, Hd),        # rows for x[k]
         _fuse_gate_cols(zf_ih, lstm_p['w_ih_b'], Hd)],       # rows for x[L-1-k]
        axis=0)                                               # (2E, 8Hd)
    b_in = _fuse_gate_cols(lstm_p['b_f'], lstm_p['b_b'], Hd)  # (1, 8Hd)

    zf_hh = jnp.zeros_like(lstm_p['w_hh_f'])
    zb_hh = jnp.zeros_like(lstm_p['w_hh_b'])
    w_hh = jnp.concatenate(
        [_fuse_gate_cols(lstm_p['w_hh_f'], zb_hh, Hd),        # rows for h_f
         _fuse_gate_cols(zf_hh, lstm_p['w_hh_b'], Hd)],       # rows for h_b
        axis=0)                                               # (2Hd, 8Hd)
    return x_cat, len2, w_in, b_in, w_hh


def encode_type_bow(x_emb, lengths, lstm_p, w_out_T, *, max_block_rows=256):
    Bf, L, _ = x_emb.shape
    Hd = lstm_p['w_hh_f'].shape[0]
    H = w_out_T.shape[1]
    blk = _pick_block(Bf, max_block_rows)
    Bp = _round_up(Bf, blk)

    x_cat, len2, w_in, b_in, w_hh = _prep_bilstm_inputs(x_emb, lengths, lstm_p, Bp)
    E2 = x_cat.shape[-1]

    out = pl.pallas_call(
        _type_kernel,
        out_shape=jax.ShapeDtypeStruct((Bp, H), jnp.float32),
        grid_spec=pltpu.PrefetchScalarGridSpec(
            num_scalar_prefetch=0,
            grid=(Bp // blk,),
            in_specs=[
                pl.BlockSpec((L, blk, E2), lambda i: (0, i, 0)),
                pl.BlockSpec((blk, 1), lambda i: (i, 0)),
                _replicated_spec(w_in.shape),
                _replicated_spec(b_in.shape),
                _replicated_spec(w_hh.shape),
                _replicated_spec(w_out_T.shape),
            ],
            out_specs=pl.BlockSpec((blk, H), lambda i: (i, 0)),
            scratch_shapes=[pltpu.VMEM((L, blk, 8 * Hd), _MM_DTYPE)],
        ),
        compiler_params=_COMPILER_PARAMS,
    )(x_cat, len2, w_in, b_in, w_hh, w_out_T)
    return out[:Bf]


def encode_paths(x_emb, lengths, rel_sum, lstm_p, w_bow_T, w_rel_scaled_T,
                 *, max_block_rows=256):
    Bf, L, _ = x_emb.shape
    Hd = lstm_p['w_hh_f'].shape[0]
    H = w_bow_T.shape[1]
    O = rel_sum.shape[1]
    blk = _pick_block(Bf, max_block_rows)
    Bp = _round_up(Bf, blk)

    x_cat, len2, w_in, b_in, w_hh = _prep_bilstm_inputs(x_emb, lengths, lstm_p, Bp)
    E2 = x_cat.shape[-1]
    rel_p = _pad_axis(rel_sum, Bp, axis=0)

    out = pl.pallas_call(
        _paths_kernel,
        out_shape=jax.ShapeDtypeStruct((Bp, H), jnp.float32),
        grid_spec=pltpu.PrefetchScalarGridSpec(
            num_scalar_prefetch=0,
            grid=(Bp // blk,),
            in_specs=[
                pl.BlockSpec((L, blk, E2), lambda i: (0, i, 0)),
                pl.BlockSpec((blk, 1), lambda i: (i, 0)),
                pl.BlockSpec((blk, O), lambda i: (i, 0)),
                _replicated_spec(w_in.shape),
                _replicated_spec(b_in.shape),
                _replicated_spec(w_hh.shape),
                _replicated_spec(w_bow_T.shape),
                _replicated_spec(w_rel_scaled_T.shape),
            ],
            out_specs=pl.BlockSpec((blk, H), lambda i: (i, 0)),
            scratch_shapes=[pltpu.VMEM((L, blk, 8 * Hd), _MM_DTYPE)],
        ),
        compiler_params=_COMPILER_PARAMS,
    )(x_cat, len2, rel_p, w_in, b_in, w_hh, w_bow_T, w_rel_scaled_T)
    return out[:Bf]


def encode_ctx(x_emb, lengths, ctx_num, C, lstm_p, w_out_T, *, max_block_groups=128):
    BnC, L, _ = x_emb.shape
    Bn = BnC // C
    Hd = lstm_p['w_hh_f'].shape[0]
    H = w_out_T.shape[1]
    blk_bn = _pick_block(Bn, max_block_groups)
    Bn_p = _round_up(Bn, blk_bn)
    blk_rows = blk_bn * C
    rows_p = Bn_p * C

    x_cat, len2, w_in, b_in, w_hh = _prep_bilstm_inputs(x_emb, lengths, lstm_p, rows_p)
    E2 = x_cat.shape[-1]
    num2 = _pad_axis(ctx_num.astype(jnp.int32).reshape(-1, 1), Bn_p, axis=0)

    out = pl.pallas_call(
        _ctx_kernel,
        out_shape=jax.ShapeDtypeStruct((Bn_p, H), jnp.float32),
        grid_spec=pltpu.PrefetchScalarGridSpec(
            num_scalar_prefetch=0,
            grid=(Bn_p // blk_bn,),
            in_specs=[
                pl.BlockSpec((L, blk_rows, E2), lambda i: (0, i, 0)),
                pl.BlockSpec((blk_rows, 1), lambda i: (i, 0)),
                pl.BlockSpec((blk_bn, 1), lambda i: (i, 0)),
                _replicated_spec(w_in.shape),
                _replicated_spec(b_in.shape),
                _replicated_spec(w_hh.shape),
                _replicated_spec(w_out_T.shape),
            ],
            out_specs=pl.BlockSpec((blk_bn, H), lambda i: (i, 0)),
            scratch_shapes=[pltpu.VMEM((L, blk_rows, 8 * Hd), _MM_DTYPE)],
        ),
        compiler_params=_COMPILER_PARAMS,
    )(x_cat, len2, num2, w_in, b_in, w_hh, w_out_T)
    return out[:Bn]


# ----------------------------------------------------------------------------
# Forward (embedding gathers / reshapes are JAX glue)
# ----------------------------------------------------------------------------
def ans_seq_encoder_forward(params, x_type_bow, x_types, x_type_bow_len,
                            x_path_bow, x_paths, x_path_bow_len,
                            x_ctx_ents, x_ctx_ent_marks, x_ctx_ent_len,
                            x_ctx_ent_num):
    # NOTE: eval mode -> word_emb_dropout / ans_enc_dropout are identity.
    # x_types / ent_type_embed are unused in the reference forward.
    del x_types
    emb = params['embed']
    B, N, Lt = x_type_bow.shape
    H = params['W_type_bow_T'].shape[1]

    # --- answer type bow: BiLSTM + fused linear_type_bow ---
    tb_emb = emb[x_type_bow.reshape(-1, Lt)]
    out_type = encode_type_bow(tb_emb, x_type_bow_len.reshape(-1),
                               params['lstm_type'], params['W_type_bow_T'])

    # --- answer path bow + relation mean: BiLSTM + fused linear_paths ---
    Lpb = x_path_bow.shape[-1]
    pb_emb = emb[x_path_bow.reshape(-1, Lpb)]
    Lp = x_paths.shape[-1]
    # Unmasked mean over the full Lp axis (matches torch.mean in the reference).
    rel_sum = jnp.sum(params['relation_embed'][x_paths.reshape(-1, Lp)], axis=1)
    w_rel_scaled = params['W_paths_rel_T'] * (1.0 / Lp)    # fold mean's 1/Lp into W
    out_paths = encode_paths(pb_emb, x_path_bow_len.reshape(-1), rel_sum,
                             params['lstm_path'], params['W_paths_bow_T'],
                             w_rel_scaled)

    # --- answer context: BiLSTM + fused masked mean + linear_ctx ---
    _, _, C, Lc = x_ctx_ents.shape
    ce_emb = emb[x_ctx_ents.reshape(-1, Lc)]
    mark_vec = params['mark_emb'][x_ctx_ent_marks.reshape(-1, Lc)]
    ctx_in = jnp.concatenate([ce_emb, mark_vec], axis=-1)
    out_ctx = encode_ctx(ctx_in, x_ctx_ent_len.reshape(-1),
                         x_ctx_ent_num.reshape(-1), C,
                         params['lstm_ctx'], params['W_ctx_T'])

    return [out_type.reshape(B, N, H),
            out_paths.reshape(B, N, H),
            out_ctx.reshape(B, N, H)]


# ----------------------------------------------------------------------------
# Deterministic parameter init (shapes per AnsSeqEncoder.__init__)
# ----------------------------------------------------------------------------
def init_params(key, vocab_size=50, vocab_embed_size=24, o_embed_size=16,
                hidden_size=32, num_relations=20, num_marks=4, mark_emb_size=8):
    assert hidden_size % 2 == 0
    Hd = hidden_size // 2
    ks = jax.random.split(key, 12)
    s = 0.1

    def embedding(k, n, d, pad0=True):
        w = jax.random.normal(k, (n, d), jnp.float32) * s
        if pad0:
            w = w.at[0].set(0.0)          # padding_idx=0
        return w

    def lstm_params(k, insize):
        # Single bias per direction == nn.LSTM's (b_ih + b_hh); enforce the sum
        # when loading real checkpoints. Gate order is PyTorch's i, f, g, o;
        # the kernel-facing permutation/fusion happens in _prep_bilstm_inputs.
        kk = jax.random.split(k, 6)
        return {
            'w_ih_f': jax.random.normal(kk[0], (insize, 4 * Hd), jnp.float32) * s,
            'w_hh_f': jax.random.normal(kk[1], (Hd, 4 * Hd), jnp.float32) * s,
            'b_f':    jax.random.normal(kk[2], (1, 4 * Hd), jnp.float32) * s,
            'w_ih_b': jax.random.normal(kk[3], (insize, 4 * Hd), jnp.float32) * s,
            'w_hh_b': jax.random.normal(kk[4], (Hd, 4 * Hd), jnp.float32) * s,
            'b_b':    jax.random.normal(kk[5], (1, 4 * Hd), jnp.float32) * s,
        }

    params = {
        'embed': embedding(ks[0], vocab_size, vocab_embed_size),
        'relation_embed': embedding(ks[1], num_relations, o_embed_size),
        'mark_emb': embedding(ks[2], num_marks, mark_emb_size, pad0=False),
        'lstm_type': lstm_params(ks[3], vocab_embed_size),
        'lstm_path': lstm_params(ks[4], vocab_embed_size),
        'lstm_ctx': lstm_params(ks[5], vocab_embed_size + mark_emb_size),
        'W_type_bow_T': jax.random.normal(ks[6], (hidden_size, hidden_size), jnp.float32) * s,
        'W_ctx_T':      jax.random.normal(ks[7], (hidden_size, hidden_size), jnp.float32) * s,
    }
    # linear_paths: Linear(hidden + o_embed -> hidden, bias=False); split weight
    W_paths_T = jax.random.normal(ks[8], (hidden_size + o_embed_size, hidden_size),
                                  jnp.float32) * s
    params['W_paths_bow_T'] = W_paths_T[:hidden_size]
    params['W_paths_rel_T'] = W_paths_T[hidden_size:]
    # ent_type_embed (o_embed_size // 8) exists in __init__ but is unused in forward.
    return params


# ----------------------------------------------------------------------------
if __name__ == "__main__":
    key = jax.random.PRNGKey(0)
    k_params, k_in = jax.random.split(key)
    params = init_params(k_params)

    B, N, C = 2, 3, 2
    Lt, Lpb, Lp, Lc = 5, 6, 4, 5
    H = 32
    ki = jax.random.split(k_in, 10)

    x_type_bow = jax.random.randint(ki[0], (B, N, Lt), 1, 50)
    x_types = jax.random.randint(ki[1], (B, N), 1, 10)
    x_type_bow_len = jax.random.randint(ki[2], (B, N), 1, Lt + 1)
    x_path_bow = jax.random.randint(ki[3], (B, N, Lpb), 1, 50)
    x_paths = jax.random.randint(ki[4], (B, N, Lp), 1, 20)
    x_path_bow_len = jax.random.randint(ki[5], (B, N), 1, Lpb + 1)
    x_ctx_ents = jax.random.randint(ki[6], (B, N, C, Lc), 1, 50)
    x_ctx_ent_marks = jax.random.randint(ki[7], (B, N, C, Lc), 1, 4)
    x_ctx_ent_len = jax.random.randint(ki[8], (B, N, C), 1, Lc + 1)
    x_ctx_ent_num = jax.random.randint(ki[9], (B, N), 1, C + 1)

    fwd = jax.jit(ans_seq_encoder_forward)
    outs = fwd(params, x_type_bow, x_types, x_type_bow_len,
               x_path_bow, x_paths, x_path_bow_len,
               x_ctx_ents, x_ctx_ent_marks, x_ctx_ent_len, x_ctx_ent_num)
    outs = jax.block_until_ready(outs)

    assert outs[0].shape == (B, N, H)
    assert outs[1].shape == (B, N, H)
    assert outs[2].shape == (B, N, H)
    assert all(bool(jnp.all(jnp.isfinite(o))) for o in outs)
    print("KERNEL_OK")
</pallas_src>

<mosaic_0001>
module attributes {stable_mosaic.version = 11 : i64} {
  func.func @_paths_kernel(%arg0: i32, %arg1: memref<6x16x48xbf16, #tpu.memory_space<vmem>>, %arg2: memref<16x1xi32, #tpu.memory_space<vmem>>, %arg3: memref<16x16xf32, #tpu.memory_space<vmem>>, %arg4: memref<48x128xf32, #tpu.memory_space<vmem>>, %arg5: memref<1x128xf32, #tpu.memory_space<vmem>>, %arg6: memref<32x128xf32, #tpu.memory_space<vmem>>, %arg7: memref<32x32xf32, #tpu.memory_space<vmem>>, %arg8: memref<16x32xf32, #tpu.memory_space<vmem>>, %arg9: memref<16x32xf32, #tpu.memory_space<vmem>>, %arg10: memref<6x16x128xbf16, #tpu.memory_space<vmem>>) attributes {dimension_semantics = [#tpu.dimension_semantics<parallel>], iteration_bounds = array<i64: 1>, scalar_prefetch = 0 : i64, scratch_operands = 1 : i64, tpu.core_type = #tpu.core_type<tc>, window_params = [{transform_indices = @transform_0, window_bounds = array<i64: 6, 16, 48>}, {transform_indices = @transform_1, window_bounds = array<i64: 16, 1>}, {transform_indices = @transform_2, window_bounds = array<i64: 16, 16>}, {pipeline_mode = #tpu.pipeline_mode<synchronous>, transform_indices = @transform_3, window_bounds = array<i64: 48, 128>}, {pipeline_mode = #tpu.pipeline_mode<synchronous>, transform_indices = @transform_4, window_bounds = array<i64: 1, 128>}, {pipeline_mode = #tpu.pipeline_mode<synchronous>, transform_indices = @transform_5, window_bounds = array<i64: 32, 128>}, {pipeline_mode = #tpu.pipeline_mode<synchronous>, transform_indices = @transform_6, window_bounds = array<i64: 32, 32>}, {pipeline_mode = #tpu.pipeline_mode<synchronous>, transform_indices = @transform_7, window_bounds = array<i64: 16, 32>}, {transform_indices = @transform_8, window_bounds = array<i64: 16, 32>}]} {
    %c0 = arith.constant 0 : index
    %c0_0 = arith.constant 0 : index
    %c0_1 = arith.constant 0 : index
    %0 = vector.load %arg1[%c0, %c0_0, %c0_1] : memref<6x16x48xbf16, #tpu.memory_space<vmem>>, vector<6x16x48xbf16>
    %1 = vector.shape_cast %0 : vector<6x16x48xbf16> to vector<96x48xbf16>
    %c0_2 = arith.constant 0 : index
    %c0_3 = arith.constant 0 : index
    %2 = vector.load %arg4[%c0_2, %c0_3] : memref<48x128xf32, #tpu.memory_space<vmem>>, vector<48x128xf32>
    %3 = arith.truncf %2 : vector<48x128xf32> to vector<48x128xbf16>
    %cst = arith.constant dense<0.000000e+00> : vector<96x128xf32>
    %4 = tpu.matmul %1, %3, %cst {dimension_numbers = #tpu.dot_dimension_numbers<[1], [0], [0], [1], [0, 0, 1, 1], [], []>} : vector<96x48xbf16>, vector<48x128xbf16>, vector<96x128xf32> -> vector<96x128xf32>
    %c0_4 = arith.constant 0 : index
    %c0_5 = arith.constant 0 : index
    %5 = vector.load %arg5[%c0_4, %c0_5] : memref<1x128xf32, #tpu.memory_space<vmem>>, vector<1x128xf32>
    %6 = vector.broadcast %5 : vector<1x128xf32> to vector<96x128xf32>
    %7 = arith.addf %4, %6 : vector<96x128xf32>
    %8 = vector.shape_cast %7 : vector<96x128xf32> to vector<6x16x128xf32>
    %9 = arith.truncf %8 : vector<6x16x128xf32> to vector<6x16x128xbf16>
    %c0_6 = arith.constant 0 : index
    %c0_7 = arith.constant 0 : index
    %c0_8 = arith.constant 0 : index
    %10 = vector.load %arg10[%c0_6, %c0_7, %c0_8] : memref<6x16x128xbf16, #tpu.memory_space<vmem>>, vector<6x16x128xbf16>
    tpu.vector_store %arg10[%c0_6, %c0_7, %c0_8], %9 {strides = array<i32>} : memref<6x16x128xbf16, #tpu.memory_space<vmem>>, vector<6x16x128xbf16>,
    %c0_9 = arith.constant 0 : index
    %c0_10 = arith.constant 0 : index
    %11 = vector.load %arg6[%c0_9, %c0_10] : memref<32x128xf32, #tpu.memory_space<vmem>>, vector<32x128xf32>
    %12 = arith.truncf %11 : vector<32x128xf32> to vector<32x128xbf16>
    %c0_11 = arith.constant 0 : index
    %c0_12 = arith.constant 0 : index
    %13 = vector.load %arg2[%c0_11, %c0_12] : memref<16x1xi32, #tpu.memory_space<vmem>>, vector<16x1xi32>
    %14 = tpu.iota {dimensions = array<i32: 1>} : vector<16x32xi32>
    %c16_i32 = arith.constant 16 : i32
    %15 = vector.broadcast %c16_i32 : i32 to vector<16x32xi32>
    %16 = arith.cmpi slt, %14, %15 : vector<16x32xi32>
    %cst_13 = arith.constant 0.000000e+00 : f32
    %17 = vector.broadcast %cst_13 : f32 to vector<16x32xf32>
    %c0_i32 = arith.constant 0 : i32
    %c5_i32 = arith.constant 5 : i32
    %18 = arith.subi %c5_i32, %c0_i32 : i32
    %19 = arith.index_cast %c0_i32 : i32 to index
    %c0_14 = arith.constant 0 : index
    %c0_15 = arith.constant 0 : index
    %20 = vector.load %arg10[%19, %c0_14, %c0_15] : memref<6x16x128xbf16, #tpu.memory_space<vmem>>, vector<1x16x128xbf16>
    %21 = vector.shape_cast %20 : vector<1x16x128xbf16> to vector<16x128xbf16>
    %22 = arith.extf %21 : vector<16x128xbf16> to vector<16x128xf32>
    %23 = arith.truncf %17 : vector<16x32xf32> to vector<16x32xbf16>
    %cst_16 = arith.constant dense<0.000000e+00> : vector<16x128xf32>
    %24 = tpu.matmul %23, %12, %cst_16 {dimension_numbers = #tpu.dot_dimension_numbers<[1], [0], [0], [1], [0, 0, 1, 1], [], []>} : vector<16x32xbf16>, vector<32x128xbf16>, vector<16x128xf32> -> vector<16x128xf32>
    %25 = arith.addf %22, %24 : vector<16x128xf32>
    %26 = vector.extract_strided_slice %25 {offsets = [0, 0], sizes = [16, 96], strides = [1, 1]} : vector<16x128xf32> to vector<16x96xf32>
    %27 = arith.negf %26 : vector<16x96xf32>
    %28 = math.exp %27 : vector<16x96xf32>
    %cst_17 = arith.constant 1.000000e+00 : f32
    %29 = vector.broadcast %cst_17 : f32 to vector<16x96xf32>
    %30 = arith.addf %29, %28 : vector<16x96xf32>
    %31 = arith.divf %29, %30 : vector<16x96xf32>
    %32 = vector.extract_strided_slice %25 {offsets = [0, 96], sizes = [16, 32], strides = [1, 1]} : vector<16x128xf32> to vector<16x32xf32>
    %33 = math.tanh %32 : vector<16x32xf32>
    %34 = vector.extract_strided_slice %31 {offsets = [0, 0], sizes = [16, 32], strides = [1, 1]} : vector<16x96xf32> to vector<16x32xf32>
    %35 = vector.extract_strided_slice %31 {offsets = [0, 32], sizes = [16, 32], strides = [1, 1]} : vector<16x96xf32> to vector<16x32xf32>
    %36 = vector.extract_strided_slice %31 {offsets = [0, 64], sizes = [16, 32], strides = [1, 1]} : vector<16x96xf32> to vector<16x32xf32>
    %37 = arith.mulf %35, %17 : vector<16x32xf32>
    %38 = arith.mulf %34, %33 : vector<16x32xf32>
    %39 = arith.addf %37, %38 : vector<16x32xf32>
    %40 = math.tanh %39 : vector<16x32xf32>
    %41 = arith.mulf %36, %40 : vector<16x32xf32>
    %42 = vector.broadcast %c0_i32 : i32 to vector<16x32xi32>
    %43 = vector.broadcast %18 : i32 to vector<16x32xi32>
    %44 = arith.select %16, %42, %43 : vector<16x32xi1>, vector<16x32xi32>
    %45 = vector.broadcast %13 : vector<16x1xi32> to vector<16x32xi32>
    %46 = arith.cmpi sgt, %45, %44 : vector<16x32xi32>
    %47 = arith.select %46, %41, %17 : vector<16x32xi1>, vector<16x32xf32>
    %48 = arith.select %46, %39, %17 : vector<16x32xi1>, vector<16x32xf32>
    %c1_i32 = arith.constant 1 : i32
    %c5_i32_18 = arith.constant 5 : i32
    %49 = arith.subi %c5_i32_18, %c1_i32 : i32
    %50 = arith.index_cast %c1_i32 : i32 to index
    %c0_19 = arith.constant 0 : index
    %c0_20 = arith.constant 0 : index
    %51 = vector.load %arg10[%50, %c0_19, %c0_20] : memref<6x16x128xbf16, #tpu.memory_space<vmem>>, vector<1x16x128xbf16>
    %52 = vector.shape_cast %51 : vector<1x16x128xbf16> to vector<16x128xbf16>
    %53 = arith.extf %52 : vector<16x128xbf16> to vector<16x128xf32>
    %54 = arith.truncf %47 : vector<16x32xf32> to vector<16x32xbf16>
    %cst_21 = arith.constant dense<0.000000e+00> : vector<16x128xf32>
    %55 = tpu.matmul %54, %12, %cst_21 {dimension_numbers = #tpu.dot_dimension_numbers<[1], [0], [0], [1], [0, 0, 1, 1], [], []>} : vector<16x32xbf16>, vector<32x128xbf16>, vector<16x128xf32> -> vector<16x128xf32>
    %56 = arith.addf %53, %55 : vector<16x128xf32>
    %57 = vector.extract_strided_slice %56 {offsets = [0, 0], sizes = [16, 96], strides = [1, 1]} : vector<16x128xf32> to vector<16x96xf32>
    %58 = arith.negf %57 : vector<16x96xf32>
    %59 = math.exp %58 : vector<16x96xf32>
    %cst_22 = arith.constant 1.000000e+00 : f32
    %60 = vector.broadcast %cst_22 : f32 to vector<16x96xf32>
    %61 = arith.addf %60, %59 : vector<16x96xf32>
    %62 = arith.divf %60, %61 : vector<16x96xf32>
    %63 = vector.extract_strided_slice %56 {offsets = [0, 96], sizes = [16, 32], strides = [1, 1]} : vector<16x128xf32> to vector<16x32xf32>
    %64 = math.tanh %63 : vector<16x32xf32>
    %65 = vector.extract_strided_slice %62 {offsets = [0, 0], sizes = [16, 32], strides = [1, 1]} : vector<16x96xf32> to vector<16x32xf32>
    %66 = vector.extract_strided_slice %62 {offsets = [0, 32], sizes = [16, 32], strides = [1, 1]} : vector<16x96xf32> to vector<16x32xf32>
    %67 = vector.extract_strided_slice %62 {offsets = [0, 64], sizes = [16, 32], strides = [1, 1]} : vector<16x96xf32> to vector<16x32xf32>
    %68 = arith.mulf %66, %48 : vector<16x32xf32>
    %69 = arith.mulf %65, %64 : vector<16x32xf32>
    %70 = arith.addf %68, %69 : vector<16x32xf32>
    %71 = math.tanh %70 : vector<16x32xf32>
    %72 = arith.mulf %67, %71 : vector<16x32xf32>
    %73 = vector.broadcast %c1_i32 : i32 to vector<16x32xi32>
    %74 = vector.broadcast %49 : i32 to vector<16x32xi32>
    %75 = arith.select %16, %73, %74 : vector<16x32xi1>, vector<16x32xi32>
    %76 = vector.broadcast %13 : vector<16x1xi32> to vector<16x32xi32>
    %77 = arith.cmpi sgt, %76, %75 : vector<16x32xi32>
    %78 = arith.select %77, %72, %47 : vector<16x32xi1>, vector<16x32xf32>
    %79 = arith.select %77, %70, %48 : vector<16x32xi1>, vector<16x32xf32>
    %c2_i32 = arith.constant 2 : i32
    %c5_i32_23 = arith.constant 5 : i32
    %80 = arith.subi %c5_i32_23, %c2_i32 : i32
    %81 = arith.index_cast %c2_i32 : i32 to index
    %c0_24 = arith.constant 0 : index
    %c0_25 = arith.constant 0 : index
    %82 = vector.load %arg10[%81, %c0_24, %c0_25] : memref<6x16x128xbf16, #tpu.memory_space<vmem>>, vector<1x16x128xbf16>
    %83 = vector.shape_cast %82 : vector<1x16x128xbf16> to vector<16x128xbf16>
    %84 = arith.extf %83 : vector<16x128xbf16> to vector<16x128xf32>
    %85 = arith.truncf %78 : vector<16x32xf32> to vector<16x32xbf16>
    %cst_26 = arith.constant dense<0.000000e+00> : vector<16x128xf32>
    %86 = tpu.matmul %85, %12, %cst_26 {dimension_numbers = #tpu.dot_dimension_numbers<[1], [0], [0], [1], [0, 0, 1, 1], [], []>} : vector<16x32xbf16>, vector<32x128xbf16>, vector<16x128xf32> -> vector<16x128xf32>
    %87 = arith.addf %84, %86 : vector<16x128xf32>
    %88 = vector.extract_strided_slice %87 {offsets = [0, 0], sizes = [16, 96], strides = [1, 1]} : vector<16x128xf32> to vector<16x96xf32>
    %89 = arith.negf %88 : vector<16x96xf32>
    %90 = math.exp %89 : vector<16x96xf32>
    %cst_27 = arith.constant 1.000000e+00 : f32
    %91 = vector.broadcast %cst_27 : f32 to vector<16x96xf32>
    %92 = arith.addf %91, %90 : vector<16x96xf32>
    %93 = arith.divf %91, %92 : vector<16x96xf32>
    %94 = vector.extract_strided_slice %87 {offsets = [0, 96], sizes = [16, 32], strides = [1, 1]} : vector<16x128xf32> to vector<16x32xf32>
    %95 = math.tanh %94 : vector<16x32xf32>
    %96 = vector.extract_strided_slice %93 {offsets = [0, 0], sizes = [16, 32], strides = [1, 1]} : vector<16x96xf32> to vector<16x32xf32>
    %97 = vector.extract_strided_slice %93 {offsets = [0, 32], sizes = [16, 32], strides = [1, 1]} : vector<16x96xf32> to vector<16x32xf32>
    %98 = vector.extract_strided_slice %93 {offsets = [0, 64], sizes = [16, 32], strides = [1, 1]} : vector<16x96xf32> to vector<16x32xf32>
    %99 = arith.mulf %97, %79 : vector<16x32xf32>
    %100 = arith.mulf %96, %95 : vector<16x32xf32>
    %101 = arith.addf %99, %100 : vector<16x32xf32>
    %102 = math.tanh %101 : vector<16x32xf32>
    %103 = arith.mulf %98, %102 : vector<16x32xf32>
    %104 = vector.broadcast %c2_i32 : i32 to vector<16x32xi32>
    %105 = vector.broadcast %80 : i32 to vector<16x32xi32>
    %106 = arith.select %16, %104, %105 : vector<16x32xi1>, vector<16x32xi32>
    %107 = vector.broadcast %13 : vector<16x1xi32> to vector<16x32xi32>
    %108 = arith.cmpi sgt, %107, %106 : vector<16x32xi32>
    %109 = arith.select %108, %103, %78 : vector<16x32xi1>, vector<16x32xf32>
    %110 = arith.select %108, %101, %79 : vector<16x32xi1>, vector<16x32xf32>
    %c3_i32 = arith.constant 3 : i32
    %c5_i32_28 = arith.constant 5 : i32
    %111 = arith.subi %c5_i32_28, %c3_i32 : i32
    %112 = arith.index_cast %c3_i32 : i32 to index
    %c0_29 = arith.constant 0 : index
    %c0_30 = arith.constant 0 : index
    %113 = vector.load %arg10[%112, %c0_29, %c0_30] : memref<6x16x128xbf16, #tpu.memory_space<vmem>>, vector<1x16x128xbf16>
    %114 = vector.shape_cast %113 : vector<1x16x128xbf16> to vector<16x128xbf16>
    %115 = arith.extf %114 : vector<16x128xbf16> to vector<16x128xf32>
    %116 = arith.truncf %109 : vector<16x32xf32> to vector<16x32xbf16>
    %cst_31 = arith.constant dense<0.000000e+00> : vector<16x128xf32>
    %117 = tpu.matmul %116, %12, %cst_31 {dimension_numbers = #tpu.dot_dimension_numbers<[1], [0], [0], [1], [0, 0, 1, 1], [], []>} : vector<16x32xbf16>, vector<32x128xbf16>, vector<16x128xf32> -> vector<16x128xf32>
    %118 = arith.addf %115, %117 : vector<16x128xf32>
    %119 = vector.extract_strided_slice %118 {offsets = [0, 0], sizes = [16, 96], strides = [1, 1]} : vector<16x128xf32> to vector<16x96xf32>
    %120 = arith.negf %119 : vector<16x96xf32>
    %121 = math.exp %120 : vector<16x96xf32>
    %cst_32 = arith.constant 1.000000e+00 : f32
    %122 = vector.broadcast %cst_32 : f32 to vector<16x96xf32>
    %123 = arith.addf %122, %121 : vector<16x96xf32>
    %124 = arith.divf %122, %123 : vector<16x96xf32>
    %125 = vector.extract_strided_slice %118 {offsets = [0, 96], sizes = [16, 32], strides = [1, 1]} : vector<16x128xf32> to vector<16x32xf32>
    %126 = math.tanh %125 : vector<16x32xf32>
    %127 = vector.extract_strided_slice %124 {offsets = [0, 0], sizes = [16, 32], strides = [1, 1]} : vector<16x96xf32> to vector<16x32xf32>
    %128 = vector.extract_strided_slice %124 {offsets = [0, 32], sizes = [16, 32], strides = [1, 1]} : vector<16x96xf32> to vector<16x32xf32>
    %129 = vector.extract_strided_slice %124 {offsets = [0, 64], sizes = [16, 32], strides = [1, 1]} : vector<16x96xf32> to vector<16x32xf32>
    %130 = arith.mulf %128, %110 : vector<16x32xf32>
    %131 = arith.mulf %127, %126 : vector<16x32xf32>
    %132 = arith.addf %130, %131 : vector<16x32xf32>
    %133 = math.tanh %132 : vector<16x32xf32>
    %134 = arith.mulf %129, %133 : vector<16x32xf32>
    %135 = vector.broadcast %c3_i32 : i32 to vector<16x32xi32>
    %136 = vector.broadcast %111 : i32 to vector<16x32xi32>
    %137 = arith.select %16, %135, %136 : vector<16x32xi1>, vector<16x32xi32>
    %138 = vector.broadcast %13 : vector<16x1xi32> to vector<16x32xi32>
    %139 = arith.cmpi sgt, %138, %137 : vector<16x32xi32>
    %140 = arith.select %139, %134, %109 : vector<16x32xi1>, vector<16x32xf32>
    %141 = arith.select %139, %132, %110 : vector<16x32xi1>, vector<16x32xf32>
    %c4_i32 = arith.constant 4 : i32
    %c5_i32_33 = arith.constant 5 : i32
    %142 = arith.subi %c5_i32_33, %c4_i32 : i32
    %143 = arith.index_cast %c4_i32 : i32 to index
    %c0_34 = arith.constant 0 : index
    %c0_35 = arith.constant 0 : index
    %144 = vector.load %arg10[%143, %c0_34, %c0_35] : memref<6x16x128xbf16, #tpu.memory_space<vmem>>, vector<1x16x128xbf16>
    %145 = vector.shape_cast %144 : vector<1x16x128xbf16> to vector<16x128xbf16>
    %146 = arith.extf %145 : vector<16x128xbf16> to vector<16x128xf32>
    %147 = arith.truncf %140 : vector<16x32xf32> to vector<16x32xbf16>
    %cst_36 = arith.constant dense<0.000000e+00> : vector<16x128xf32>
    %148 = tpu.matmul %147, %12, %cst_36 {dimension_numbers = #tpu.dot_dimension_numbers<[1], [0], [0], [1], [0, 0, 1, 1], [], []>} : vector<16x32xbf16>, vector<32x128xbf16>, vector<16x128xf32> -> vector<16x128xf32>
    %149 = arith.addf %146, %148 : vector<16x128xf32>
    %150 = vector.extract_strided_slice %149 {offsets = [0, 0], sizes = [16, 96], strides = [1, 1]} : vector<16x128xf32> to vector<16x96xf32>
    %151 = arith.negf %150 : vector<16x96xf32>
    %152 = math.exp %151 : vector<16x96xf32>
    %cst_37 = arith.constant 1.000000e+00 : f32
    %153 = vector.broadcast %cst_37 : f32 to vector<16x96xf32>
    %154 = arith.addf %153, %152 : vector<16x96xf32>
    %155 = arith.divf %153, %154 : vector<16x96xf32>
    %156 = vector.extract_strided_slice %149 {offsets = [0, 96], sizes = [16, 32], strides = [1, 1]} : vector<16x128xf32> to vector<16x32xf32>
    %157 = math.tanh %156 : vector<16x32xf32>
    %158 = vector.extract_strided_slice %155 {offsets = [0, 0], sizes = [16, 32], strides = [1, 1]} : vector<16x96xf32> to vector<16x32xf32>
    %159 = vector.extract_strided_slice %155 {offsets = [0, 32], sizes = [16, 32], strides = [1, 1]} : vector<16x96xf32> to vector<16x32xf32>
    %160 = vector.extract_strided_slice %155 {offsets = [0, 64], sizes = [16, 32], strides = [1, 1]} : vector<16x96xf32> to vector<16x32xf32>
    %161 = arith.mulf %159, %141 : vector<16x32xf32>
    %162 = arith.mulf %158, %157 : vector<16x32xf32>
    %163 = arith.addf %161, %162 : vector<16x32xf32>
    %164 = math.tanh %163 : vector<16x32xf32>
    %165 = arith.mulf %160, %164 : vector<16x32xf32>
    %166 = vector.broadcast %c4_i32 : i32 to vector<16x32xi32>
    %167 = vector.broadcast %142 : i32 to vector<16x32xi32>
    %168 = arith.select %16, %166, %167 : vector<16x32xi1>, vector<16x32xi32>
    %169 = vector.broadcast %13 : vector<16x1xi32> to vector<16x32xi32>
    %170 = arith.cmpi sgt, %169, %168 : vector<16x32xi32>
    %171 = arith.select %170, %165, %140 : vector<16x32xi1>, vector<16x32xf32>
    %172 = arith.select %170, %163, %141 : vector<16x32xi1>, vector<16x32xf32>
    %c5_i32_38 = arith.constant 5 : i32
    %c5_i32_39 = arith.constant 5 : i32
    %173 = arith.subi %c5_i32_39, %c5_i32_38 : i32
    %174 = arith.index_cast %c5_i32_38 : i32 to index
    %c0_40 = arith.constant 0 : index
    %c0_41 = arith.constant 0 : index
    %175 = vector.load %arg10[%174, %c0_40, %c0_41] : memref<6x16x128xbf16, #tpu.memory_space<vmem>>, vector<1x16x128xbf16>
    %176 = vector.shape_cast %175 : vector<1x16x128xbf16> to vector<16x128xbf16>
    %177 = arith.extf %176 : vector<16x128xbf16> to vector<16x128xf32>
    %178 = arith.truncf %171 : vector<16x32xf32> to vector<16x32xbf16>
    %cst_42 = arith.constant dense<0.000000e+00> : vector<16x128xf32>
    %179 = tpu.matmul %178, %12, %cst_42 {dimension_numbers = #tpu.dot_dimension_numbers<[1], [0], [0], [1], [0, 0, 1, 1], [], []>} : vector<16x32xbf16>, vector<32x128xbf16>, vector<16x128xf32> -> vector<16x128xf32>
    %180 = arith.addf %177, %179 : vector<16x128xf32>
    %181 = vector.extract_strided_slice %180 {offsets = [0, 0], sizes = [16, 96], strides = [1, 1]} : vector<16x128xf32> to vector<16x96xf32>
    %182 = arith.negf %181 : vector<16x96xf32>
    %183 = math.exp %182 : vector<16x96xf32>
    %cst_43 = arith.constant 1.000000e+00 : f32
    %184 = vector.broadcast %cst_43 : f32 to vector<16x96xf32>
    %185 = arith.addf %184, %183 : vector<16x96xf32>
    %186 = arith.divf %184, %185 : vector<16x96xf32>
    %187 = vector.extract_strided_slice %180 {offsets = [0, 96], sizes = [16, 32], strides = [1, 1]} : vector<16x128xf32> to vector<16x32xf32>
    %188 = math.tanh %187 : vector<16x32xf32>
    %189 = vector.extract_strided_slice %186 {offsets = [0, 0], sizes = [16, 32], strides = [1, 1]} : vector<16x96xf32> to vector<16x32xf32>
    %190 = vector.extract_strided_slice %186 {offsets = [0, 32], sizes = [16, 32], strides = [1, 1]} : vector<16x96xf32> to vector<16x32xf32>
    %191 = vector.extract_strided_slice %186 {offsets = [0, 64], sizes = [16, 32], strides = [1, 1]} : vector<16x96xf32> to vector<16x32xf32>
    %192 = arith.mulf %190, %172 : vector<16x32xf32>
    %193 = arith.mulf %189, %188 : vector<16x32xf32>
    %194 = arith.addf %192, %193 : vector<16x32xf32>
    %195 = math.tanh %194 : vector<16x32xf32>
    %196 = arith.mulf %191, %195 : vector<16x32xf32>
    %197 = vector.broadcast %c5_i32_38 : i32 to vector<16x32xi32>
    %198 = vector.broadcast %173 : i32 to vector<16x32xi32>
    %199 = arith.select %16, %197, %198 : vector<16x32xi1>, vector<16x32xi32>
    %200 = vector.broadcast %13 : vector<16x1xi32> to vector<16x32xi32>
    %201 = arith.cmpi sgt, %200, %199 : vector<16x32xi32>
    %202 = arith.select %201, %196, %171 : vector<16x32xi1>, vector<16x32xf32>
    %203 = arith.select %201, %194, %172 : vector<16x32xi1>, vector<16x32xf32>
    %c6_i32 = arith.constant 6 : i32
    %c0_44 = arith.constant 0 : index
    %c0_45 = arith.constant 0 : index
    %204 = vector.load %arg7[%c0_44, %c0_45] : memref<32x32xf32, #tpu.memory_space<vmem>>, vector<32x32xf32>
    %205 = arith.truncf %202 : vector<16x32xf32> to vector<16x32xbf16>
    %206 = arith.truncf %204 : vector<32x32xf32> to vector<32x32xbf16>
    %cst_46 = arith.constant dense<0.000000e+00> : vector<16x32xf32>
    %207 = tpu.matmul %205, %206, %cst_46 {dimension_numbers = #tpu.dot_dimension_numbers<[1], [0], [0], [1], [0, 0, 1, 1], [], []>} : vector<16x32xbf16>, vector<32x32xbf16>, vector<16x32xf32> -> vector<16x32xf32>
    %c0_47 = arith.constant 0 : index
    %c0_48 = arith.constant 0 : index
    %208 = vector.load %arg3[%c0_47, %c0_48] : memref<16x16xf32, #tpu.memory_space<vmem>>, vector<16x16xf32>
    %c0_49 = arith.constant 0 : index
    %c0_50 = arith.constant 0 : index
    %209 = vector.load %arg8[%c0_49, %c0_50] : memref<16x32xf32, #tpu.memory_space<vmem>>, vector<16x32xf32>
    %210 = arith.truncf %208 : vector<16x16xf32> to vector<16x16xbf16>
    %211 = arith.truncf %209 : vector<16x32xf32> to vector<16x32xbf16>
    %cst_51 = arith.constant dense<0.000000e+00> : vector<16x32xf32>
    %212 = tpu.matmul %210, %211, %cst_51 {dimension_numbers = #tpu.dot_dimension_numbers<[1], [0], [0], [1], [0, 0, 1, 1], [], []>} : vector<16x16xbf16>, vector<16x32xbf16>, vector<16x32xf32> -> vector<16x32xf32>
    %213 = arith.addf %207, %212 : vector<16x32xf32>
    %c0_52 = arith.constant 0 : index
    %c0_53 = arith.constant 0 : index
    %214 = vector.load %arg9[%c0_52, %c0_53] : memref<16x32xf32, #tpu.memory_space<vmem>>, vector<16x32xf32>
    tpu.vector_store %arg9[%c0_52, %c0_53], %213 {strides = array<i32>} : memref<16x32xf32, #tpu.memory_space<vmem>>, vector<16x32xf32>,
    return
  }
  func.func @transform_0(%arg0: i32) -> (i32, i32, i32) {
    %c0_i32 = arith.constant 0 : i32
    %c0_i32_0 = arith.constant 0 : i32
    %c0_i32_1 = arith.constant 0 : i32
    return %c0_i32, %arg0, %c0_i32_0 : i32, i32, i32
  }
  func.func @transform_1(%arg0: i32) -> (i32, i32) {
    %c0_i32 = arith.constant 0 : i32
    %c0_i32_0 = arith.constant 0 : i32
    return %arg0, %c0_i32 : i32, i32
  }
  func.func @transform_2(%arg0: i32) -> (i32, i32) {
    %c0_i32 = arith.constant 0 : i32
    %c0_i32_0 = arith.constant 0 : i32
    return %arg0, %c0_i32 : i32, i32
  }
  func.func @transform_3(%arg0: i32) -> (i32, i32) {
    %c0_i32 = arith.constant 0 : i32
    %c0_i32_0 = arith.constant 0 : i32
    %c0_i32_1 = arith.constant 0 : i32
    return %c0_i32, %c0_i32_0 : i32, i32
  }
  func.func @transform_4(%arg0: i32) -> (i32, i32) {
    %c0_i32 = arith.constant 0 : i32
    %c0_i32_0 = arith.constant 0 : i32
    %c0_i32_1 = arith.constant 0 : i32
    return %c0_i32, %c0_i32_0 : i32, i32
  }
  func.func @transform_5(%arg0: i32) -> (i32, i32) {
    %c0_i32 = arith.constant 0 : i32
    %c0_i32_0 = arith.constant 0 : i32
    %c0_i32_1 = arith.constant 0 : i32
    return %c0_i32, %c0_i32_0 : i32, i32
  }
  func.func @transform_6(%arg0: i32) -> (i32, i32) {
    %c0_i32 = arith.constant 0 : i32
    %c0_i32_0 = arith.constant 0 : i32
    %c0_i32_1 = arith.constant 0 : i32
    return %c0_i32, %c0_i32_0 : i32, i32
  }
  func.func @transform_7(%arg0: i32) -> (i32, i32) {
    %c0_i32 = arith.constant 0 : i32
    %c0_i32_0 = arith.constant 0 : i32
    %c0_i32_1 = arith.constant 0 : i32
    return %c0_i32, %c0_i32_0 : i32, i32
  }
  func.func @transform_8(%arg0: i32) -> (i32, i32) {
    %c0_i32 = arith.constant 0 : i32
    %c0_i32_0 = arith.constant 0 : i32
    return %arg0, %c0_i32 : i32, i32
  }
}

module attributes {stable_mosaic.version = 11 : i64} {
  func.func @_type_kernel(%arg0: i32, %arg1: memref<5x16x48xbf16, #tpu.memory_space<vmem>>, %arg2: memref<16x1xi32, #tpu.memory_space<vmem>>, %arg3: memref<48x128xf32, #tpu.memory_space<vmem>>, %arg4: memref<1x128xf32, #tpu.memory_space<vmem>>, %arg5: memref<32x128xf32, #tpu.memory_space<vmem>>, %arg6: memref<32x32xf32, #tpu.memory_space<vmem>>, %arg7: memref<16x32xf32, #tpu.memory_space<vmem>>, %arg8: memref<5x16x128xbf16, #tpu.memory_space<vmem>>) attributes {dimension_semantics = [#tpu.dimension_semantics<parallel>], iteration_bounds = array<i64: 1>, scalar_prefetch = 0 : i64, scratch_operands = 1 : i64, tpu.core_type = #tpu.core_type<tc>, window_params = [{transform_indices = @transform_0, window_bounds = array<i64: 5, 16, 48>}, {transform_indices = @transform_1, window_bounds = array<i64: 16, 1>}, {pipeline_mode = #tpu.pipeline_mode<synchronous>, transform_indices = @transform_2, window_bounds = array<i64: 48, 128>}, {pipeline_mode = #tpu.pipeline_mode<synchronous>, transform_indices = @transform_3, window_bounds = array<i64: 1, 128>}, {pipeline_mode = #tpu.pipeline_mode<synchronous>, transform_indices = @transform_4, window_bounds = array<i64: 32, 128>}, {pipeline_mode = #tpu.pipeline_mode<synchronous>, transform_indices = @transform_5, window_bounds = array<i64: 32, 32>}, {transform_indices = @transform_6, window_bounds = array<i64: 16, 32>}]} {
    %c0 = arith.constant 0 : index
    %c0_0 = arith.constant 0 : index
    %c0_1 = arith.constant 0 : index
    %0 = vector.load %arg1[%c0, %c0_0, %c0_1] : memref<5x16x48xbf16, #tpu.memory_space<vmem>>, vector<5x16x48xbf16>
    %1 = vector.shape_cast %0 : vector<5x16x48xbf16> to vector<80x48xbf16>
    %c0_2 = arith.constant 0 : index
    %c0_3 = arith.constant 0 : index
    %2 = vector.load %arg3[%c0_2, %c0_3] : memref<48x128xf32, #tpu.memory_space<vmem>>, vector<48x128xf32>
    %3 = arith.truncf %2 : vector<48x128xf32> to vector<48x128xbf16>
    %cst = arith.constant dense<0.000000e+00> : vector<80x128xf32>
    %4 = tpu.matmul %1, %3, %cst {dimension_numbers = #tpu.dot_dimension_numbers<[1], [0], [0], [1], [0, 0, 1, 1], [], []>} : vector<80x48xbf16>, vector<48x128xbf16>, vector<80x128xf32> -> vector<80x128xf32>
    %c0_4 = arith.constant 0 : index
    %c0_5 = arith.constant 0 : index
    %5 = vector.load %arg4[%c0_4, %c0_5] : memref<1x128xf32, #tpu.memory_space<vmem>>, vector<1x128xf32>
    %6 = vector.broadcast %5 : vector<1x128xf32> to vector<80x128xf32>
    %7 = arith.addf %4, %6 : vector<80x128xf32>
    %8 = vector.shape_cast %7 : vector<80x128xf32> to vector<5x16x128xf32>
    %9 = arith.truncf %8 : vector<5x16x128xf32> to vector<5x16x128xbf16>
    %c0_6 = arith.constant 0 : index
    %c0_7 = arith.constant 0 : index
    %c0_8 = arith.constant 0 : index
    %10 = vector.load %arg8[%c0_6, %c0_7, %c0_8] : memref<5x16x128xbf16, #tpu.memory_space<vmem>>, vector<5x16x128xbf16>
    tpu.vector_store %arg8[%c0_6, %c0_7, %c0_8], %9 {strides = array<i32>} : memref<5x16x128xbf16, #tpu.memory_space<vmem>>, vector<5x16x128xbf16>,
    %c0_9 = arith.constant 0 : index
    %c0_10 = arith.constant 0 : index
    %11 = vector.load %arg5[%c0_9, %c0_10] : memref<32x128xf32, #tpu.memory_space<vmem>>, vector<32x128xf32>
    %12 = arith.truncf %11 : vector<32x128xf32> to vector<32x128xbf16>
    %c0_11 = arith.constant 0 : index
    %c0_12 = arith.constant 0 : index
    %13 = vector.load %arg2[%c0_11, %c0_12] : memref<16x1xi32, #tpu.memory_space<vmem>>, vector<16x1xi32>
    %14 = tpu.iota {dimensions = array<i32: 1>} : vector<16x32xi32>
    %c16_i32 = arith.constant 16 : i32
    %15 = vector.broadcast %c16_i32 : i32 to vector<16x32xi32>
    %16 = arith.cmpi slt, %14, %15 : vector<16x32xi32>
    %cst_13 = arith.constant 0.000000e+00 : f32
    %17 = vector.broadcast %cst_13 : f32 to vector<16x32xf32>
    %c0_i32 = arith.constant 0 : i32
    %c4_i32 = arith.constant 4 : i32
    %18 = arith.subi %c4_i32, %c0_i32 : i32
    %19 = arith.index_cast %c0_i32 : i32 to index
    %c0_14 = arith.constant 0 : index
    %c0_15 = arith.constant 0 : index
    %20 = vector.load %arg8[%19, %c0_14, %c0_15] : memref<5x16x128xbf16, #tpu.memory_space<vmem>>, vector<1x16x128xbf16>
    %21 = vector.shape_cast %20 : vector<1x16x128xbf16> to vector<16x128xbf16>
    %22 = arith.extf %21 : vector<16x128xbf16> to vector<16x128xf32>
    %23 = arith.truncf %17 : vector<16x32xf32> to vector<16x32xbf16>
    %cst_16 = arith.constant dense<0.000000e+00> : vector<16x128xf32>
    %24 = tpu.matmul %23, %12, %cst_16 {dimension_numbers = #tpu.dot_dimension_numbers<[1], [0], [0], [1], [0, 0, 1, 1], [], []>} : vector<16x32xbf16>, vector<32x128xbf16>, vector<16x128xf32> -> vector<16x128xf32>
    %25 = arith.addf %22, %24 : vector<16x128xf32>
    %26 = vector.extract_strided_slice %25 {offsets = [0, 0], sizes = [16, 96], strides = [1, 1]} : vector<16x128xf32> to vector<16x96xf32>
    %27 = arith.negf %26 : vector<16x96xf32>
    %28 = math.exp %27 : vector<16x96xf32>
    %cst_17 = arith.constant 1.000000e+00 : f32
    %29 = vector.broadcast %cst_17 : f32 to vector<16x96xf32>
    %30 = arith.addf %29, %28 : vector<16x96xf32>
    %31 = arith.divf %29, %30 : vector<16x96xf32>
    %32 = vector.extract_strided_slice %25 {offsets = [0, 96], sizes = [16, 32], strides = [1, 1]} : vector<16x128xf32> to vector<16x32xf32>
    %33 = math.tanh %32 : vector<16x32xf32>
    %34 = vector.extract_strided_slice %31 {offsets = [0, 0], sizes = [16, 32], strides = [1, 1]} : vector<16x96xf32> to vector<16x32xf32>
    %35 = vector.extract_strided_slice %31 {offsets = [0, 32], sizes = [16, 32], strides = [1, 1]} : vector<16x96xf32> to vector<16x32xf32>
    %36 = vector.extract_strided_slice %31 {offsets = [0, 64], sizes = [16, 32], strides = [1, 1]} : vector<16x96xf32> to vector<16x32xf32>
    %37 = arith.mulf %35, %17 : vector<16x32xf32>
    %38 = arith.mulf %34, %33 : vector<16x32xf32>
    %39 = arith.addf %37, %38 : vector<16x32xf32>
    %40 = math.tanh %39 : vector<16x32xf32>
    %41 = arith.mulf %36, %40 : vector<16x32xf32>
    %42 = vector.broadcast %c0_i32 : i32 to vector<16x32xi32>
    %43 = vector.broadcast %18 : i32 to vector<16x32xi32>
    %44 = arith.select %16, %42, %43 : vector<16x32xi1>, vector<16x32xi32>
    %45 = vector.broadcast %13 : vector<16x1xi32> to vector<16x32xi32>
    %46 = arith.cmpi sgt, %45, %44 : vector<16x32xi32>
    %47 = arith.select %46, %41, %17 : vector<16x32xi1>, vector<16x32xf32>
    %48 = arith.select %46, %39, %17 : vector<16x32xi1>, vector<16x32xf32>
    %c1_i32 = arith.constant 1 : i32
    %c4_i32_18 = arith.constant 4 : i32
    %49 = arith.subi %c4_i32_18, %c1_i32 : i32
    %50 = arith.index_cast %c1_i32 : i32 to index
    %c0_19 = arith.constant 0 : index
    %c0_20 = arith.constant 0 : index
    %51 = vector.load %arg8[%50, %c0_19, %c0_20] : memref<5x16x128xbf16, #tpu.memory_space<vmem>>, vector<1x16x128xbf16>
    %52 = vector.shape_cast %51 : vector<1x16x128xbf16> to vector<16x128xbf16>
    %53 = arith.extf %52 : vector<16x128xbf16> to vector<16x128xf32>
    %54 = arith.truncf %47 : vector<16x32xf32> to vector<16x32xbf16>
    %cst_21 = arith.constant dense<0.000000e+00> : vector<16x128xf32>
    %55 = tpu.matmul %54, %12, %cst_21 {dimension_numbers = #tpu.dot_dimension_numbers<[1], [0], [0], [1], [0, 0, 1, 1], [], []>} : vector<16x32xbf16>, vector<32x128xbf16>, vector<16x128xf32> -> vector<16x128xf32>
    %56 = arith.addf %53, %55 : vector<16x128xf32>
    %57 = vector.extract_strided_slice %56 {offsets = [0, 0], sizes = [16, 96], strides = [1, 1]} : vector<16x128xf32> to vector<16x96xf32>
    %58 = arith.negf %57 : vector<16x96xf32>
    %59 = math.exp %58 : vector<16x96xf32>
    %cst_22 = arith.constant 1.000000e+00 : f32
    %60 = vector.broadcast %cst_22 : f32 to vector<16x96xf32>
    %61 = arith.addf %60, %59 : vector<16x96xf32>
    %62 = arith.divf %60, %61 : vector<16x96xf32>
    %63 = vector.extract_strided_slice %56 {offsets = [0, 96], sizes = [16, 32], strides = [1, 1]} : vector<16x128xf32> to vector<16x32xf32>
    %64 = math.tanh %63 : vector<16x32xf32>
    %65 = vector.extract_strided_slice %62 {offsets = [0, 0], sizes = [16, 32], strides = [1, 1]} : vector<16x96xf32> to vector<16x32xf32>
    %66 = vector.extract_strided_slice %62 {offsets = [0, 32], sizes = [16, 32], strides = [1, 1]} : vector<16x96xf32> to vector<16x32xf32>
    %67 = vector.extract_strided_slice %62 {offsets = [0, 64], sizes = [16, 32], strides = [1, 1]} : vector<16x96xf32> to vector<16x32xf32>
    %68 = arith.mulf %66, %48 : vector<16x32xf32>
    %69 = arith.mulf %65, %64 : vector<16x32xf32>
    %70 = arith.addf %68, %69 : vector<16x32xf32>
    %71 = math.tanh %70 : vector<16x32xf32>
    %72 = arith.mulf %67, %71 : vector<16x32xf32>
    %73 = vector.broadcast %c1_i32 : i32 to vector<16x32xi32>
    %74 = vector.broadcast %49 : i32 to vector<16x32xi32>
    %75 = arith.select %16, %73, %74 : vector<16x32xi1>, vector<16x32xi32>
    %76 = vector.broadcast %13 : vector<16x1xi32> to vector<16x32xi32>
    %77 = arith.cmpi sgt, %76, %75 : vector<16x32xi32>
    %78 = arith.select %77, %72, %47 : vector<16x32xi1>, vector<16x32xf32>
    %79 = arith.select %77, %70, %48 : vector<16x32xi1>, vector<16x32xf32>
    %c2_i32 = arith.constant 2 : i32
    %c4_i32_23 = arith.constant 4 : i32
    %80 = arith.subi %c4_i32_23, %c2_i32 : i32
    %81 = arith.index_cast %c2_i32 : i32 to index
    %c0_24 = arith.constant 0 : index
    %c0_25 = arith.constant 0 : index
    %82 = vector.load %arg8[%81, %c0_24, %c0_25] : memref<5x16x128xbf16, #tpu.memory_space<vmem>>, vector<1x16x128xbf16>
    %83 = vector.shape_cast %82 : vector<1x16x128xbf16> to vector<16x128xbf16>
    %84 = arith.extf %83 : vector<16x128xbf16> to vector<16x128xf32>
    %85 = arith.truncf %78 : vector<16x32xf32> to vector<16x32xbf16>
    %cst_26 = arith.constant dense<0.000000e+00> : vector<16x128xf32>
    %86 = tpu.matmul %85, %12, %cst_26 {dimension_numbers = #tpu.dot_dimension_numbers<[1], [0], [0], [1], [0, 0, 1, 1], [], []>} : vector<16x32xbf16>, vector<32x128xbf16>, vector<16x128xf32> -> vector<16x128xf32>
    %87 = arith.addf %84, %86 : vector<16x128xf32>
    %88 = vector.extract_strided_slice %87 {offsets = [0, 0], sizes = [16, 96], strides = [1, 1]} : vector<16x128xf32> to vector<16x96xf32>
    %89 = arith.negf %88 : vector<16x96xf32>
    %90 = math.exp %89 : vector<16x96xf32>
    %cst_27 = arith.constant 1.000000e+00 : f32
    %91 = vector.broadcast %cst_27 : f32 to vector<16x96xf32>
    %92 = arith.addf %91, %90 : vector<16x96xf32>
    %93 = arith.divf %91, %92 : vector<16x96xf32>
    %94 = vector.extract_strided_slice %87 {offsets = [0, 96], sizes = [16, 32], strides = [1, 1]} : vector<16x128xf32> to vector<16x32xf32>
    %95 = math.tanh %94 : vector<16x32xf32>
    %96 = vector.extract_strided_slice %93 {offsets = [0, 0], sizes = [16, 32], strides = [1, 1]} : vector<16x96xf32> to vector<16x32xf32>
    %97 = vector.extract_strided_slice %93 {offsets = [0, 32], sizes = [16, 32], strides = [1, 1]} : vector<16x96xf32> to vector<16x32xf32>
    %98 = vector.extract_strided_slice %93 {offsets = [0, 64], sizes = [16, 32], strides = [1, 1]} : vector<16x96xf32> to vector<16x32xf32>
    %99 = arith.mulf %97, %79 : vector<16x32xf32>
    %100 = arith.mulf %96, %95 : vector<16x32xf32>
    %101 = arith.addf %99, %100 : vector<16x32xf32>
    %102 = math.tanh %101 : vector<16x32xf32>
    %103 = arith.mulf %98, %102 : vector<16x32xf32>
    %104 = vector.broadcast %c2_i32 : i32 to vector<16x32xi32>
    %105 = vector.broadcast %80 : i32 to vector<16x32xi32>
    %106 = arith.select %16, %104, %105 : vector<16x32xi1>, vector<16x32xi32>
    %107 = vector.broadcast %13 : vector<16x1xi32> to vector<16x32xi32>
    %108 = arith.cmpi sgt, %107, %106 : vector<16x32xi32>
    %109 = arith.select %108, %103, %78 : vector<16x32xi1>, vector<16x32xf32>
    %110 = arith.select %108, %101, %79 : vector<16x32xi1>, vector<16x32xf32>
    %c3_i32 = arith.constant 3 : i32
    %c4_i32_28 = arith.constant 4 : i32
    %111 = arith.subi %c4_i32_28, %c3_i32 : i32
    %112 = arith.index_cast %c3_i32 : i32 to index
    %c0_29 = arith.constant 0 : index
    %c0_30 = arith.constant 0 : index
    %113 = vector.load %arg8[%112, %c0_29, %c0_30] : memref<5x16x128xbf16, #tpu.memory_space<vmem>>, vector<1x16x128xbf16>
    %114 = vector.shape_cast %113 : vector<1x16x128xbf16> to vector<16x128xbf16>
    %115 = arith.extf %114 : vector<16x128xbf16> to vector<16x128xf32>
    %116 = arith.truncf %109 : vector<16x32xf32> to vector<16x32xbf16>
    %cst_31 = arith.constant dense<0.000000e+00> : vector<16x128xf32>
    %117 = tpu.matmul %116, %12, %cst_31 {dimension_numbers = #tpu.dot_dimension_numbers<[1], [0], [0], [1], [0, 0, 1, 1], [], []>} : vector<16x32xbf16>, vector<32x128xbf16>, vector<16x128xf32> -> vector<16x128xf32>
    %118 = arith.addf %115, %117 : vector<16x128xf32>
    %119 = vector.extract_strided_slice %118 {offsets = [0, 0], sizes = [16, 96], strides = [1, 1]} : vector<16x128xf32> to vector<16x96xf32>
    %120 = arith.negf %119 : vector<16x96xf32>
    %121 = math.exp %120 : vector<16x96xf32>
    %cst_32 = arith.constant 1.000000e+00 : f32
    %122 = vector.broadcast %cst_32 : f32 to vector<16x96xf32>
    %123 = arith.addf %122, %121 : vector<16x96xf32>
    %124 = arith.divf %122, %123 : vector<16x96xf32>
    %125 = vector.extract_strided_slice %118 {offsets = [0, 96], sizes = [16, 32], strides = [1, 1]} : vector<16x128xf32> to vector<16x32xf32>
    %126 = math.tanh %125 : vector<16x32xf32>
    %127 = vector.extract_strided_slice %124 {offsets = [0, 0], sizes = [16, 32], strides = [1, 1]} : vector<16x96xf32> to vector<16x32xf32>
    %128 = vector.extract_strided_slice %124 {offsets = [0, 32], sizes = [16, 32], strides = [1, 1]} : vector<16x96xf32> to vector<16x32xf32>
    %129 = vector.extract_strided_slice %124 {offsets = [0, 64], sizes = [16, 32], strides = [1, 1]} : vector<16x96xf32> to vector<16x32xf32>
    %130 = arith.mulf %128, %110 : vector<16x32xf32>
    %131 = arith.mulf %127, %126 : vector<16x32xf32>
    %132 = arith.addf %130, %131 : vector<16x32xf32>
    %133 = math.tanh %132 : vector<16x32xf32>
    %134 = arith.mulf %129, %133 : vector<16x32xf32>
    %135 = vector.broadcast %c3_i32 : i32 to vector<16x32xi32>
    %136 = vector.broadcast %111 : i32 to vector<16x32xi32>
    %137 = arith.select %16, %135, %136 : vector<16x32xi1>, vector<16x32xi32>
    %138 = vector.broadcast %13 : vector<16x1xi32> to vector<16x32xi32>
    %139 = arith.cmpi sgt, %138, %137 : vector<16x32xi32>
    %140 = arith.select %139, %134, %109 : vector<16x32xi1>, vector<16x32xf32>
    %141 = arith.select %139, %132, %110 : vector<16x32xi1>, vector<16x32xf32>
    %c4_i32_33 = arith.constant 4 : i32
    %c4_i32_34 = arith.constant 4 : i32
    %142 = arith.subi %c4_i32_34, %c4_i32_33 : i32
    %143 = arith.index_cast %c4_i32_33 : i32 to index
    %c0_35 = arith.constant 0 : index
    %c0_36 = arith.constant 0 : index
    %144 = vector.load %arg8[%143, %c0_35, %c0_36] : memref<5x16x128xbf16, #tpu.memory_space<vmem>>, vector<1x16x128xbf16>
    %145 = vector.shape_cast %144 : vector<1x16x128xbf16> to vector<16x128xbf16>
    %146 = arith.extf %145 : vector<16x128xbf16> to vector<16x128xf32>
    %147 = arith.truncf %140 : vector<16x32xf32> to vector<16x32xbf16>
    %cst_37 = arith.constant dense<0.000000e+00> : vector<16x128xf32>
    %148 = tpu.matmul %147, %12, %cst_37 {dimension_numbers = #tpu.dot_dimension_numbers<[1], [0], [0], [1], [0, 0, 1, 1], [], []>} : vector<16x32xbf16>, vector<32x128xbf16>, vector<16x128xf32> -> vector<16x128xf32>
    %149 = arith.addf %146, %148 : vector<16x128xf32>
    %150 = vector.extract_strided_slice %149 {offsets = [0, 0], sizes = [16, 96], strides = [1, 1]} : vector<16x128xf32> to vector<16x96xf32>
    %151 = arith.negf %150 : vector<16x96xf32>
    %152 = math.exp %151 : vector<16x96xf32>
    %cst_38 = arith.constant 1.000000e+00 : f32
    %153 = vector.broadcast %cst_38 : f32 to vector<16x96xf32>
    %154 = arith.addf %153, %152 : vector<16x96xf32>
    %155 = arith.divf %153, %154 : vector<16x96xf32>
    %156 = vector.extract_strided_slice %149 {offsets = [0, 96], sizes = [16, 32], strides = [1, 1]} : vector<16x128xf32> to vector<16x32xf32>
    %157 = math.tanh %156 : vector<16x32xf32>
    %158 = vector.extract_strided_slice %155 {offsets = [0, 0], sizes = [16, 32], strides = [1, 1]} : vector<16x96xf32> to vector<16x32xf32>
    %159 = vector.extract_strided_slice %155 {offsets = [0, 32], sizes = [16, 32], strides = [1, 1]} : vector<16x96xf32> to vector<16x32xf32>
    %160 = vector.extract_strided_slice %155 {offsets = [0, 64], sizes = [16, 32], strides = [1, 1]} : vector<16x96xf32> to vector<16x32xf32>
    %161 = arith.mulf %159, %141 : vector<16x32xf32>
    %162 = arith.mulf %158, %157 : vector<16x32xf32>
    %163 = arith.addf %161, %162 : vector<16x32xf32>
    %164 = math.tanh %163 : vector<16x32xf32>
    %165 = arith.mulf %160, %164 : vector<16x32xf32>
    %166 = vector.broadcast %c4_i32_33 : i32 to vector<16x32xi32>
    %167 = vector.broadcast %142 : i32 to vector<16x32xi32>
    %168 = arith.select %16, %166, %167 : vector<16x32xi1>, vector<16x32xi32>
    %169 = vector.broadcast %13 : vector<16x1xi32> to vector<16x32xi32>
    %170 = arith.cmpi sgt, %169, %168 : vector<16x32xi32>
    %171 = arith.select %170, %165, %140 : vector<16x32xi1>, vector<16x32xf32>
    %172 = arith.select %170, %163, %141 : vector<16x32xi1>, vector<16x32xf32>
    %c5_i32 = arith.constant 5 : i32
    %c0_39 = arith.constant 0 : index
    %c0_40 = arith.constant 0 : index
    %173 = vector.load %arg6[%c0_39, %c0_40] : memref<32x32xf32, #tpu.memory_space<vmem>>, vector<32x32xf32>
    %174 = arith.truncf %171 : vector<16x32xf32> to vector<16x32xbf16>
    %175 = arith.truncf %173 : vector<32x32xf32> to vector<32x32xbf16>
    %cst_41 = arith.constant dense<0.000000e+00> : vector<16x32xf32>
    %176 = tpu.matmul %174, %175, %cst_41 {dimension_numbers = #tpu.dot_dimension_numbers<[1], [0], [0], [1], [0, 0, 1, 1], [], []>} : vector<16x32xbf16>, vector<32x32xbf16>, vector<16x32xf32> -> vector<16x32xf32>
    %c0_42 = arith.constant 0 : index
    %c0_43 = arith.constant 0 : index
    %177 = vector.load %arg7[%c0_42, %c0_43] : memref<16x32xf32, #tpu.memory_space<vmem>>, vector<16x32xf32>
    tpu.vector_store %arg7[%c0_42, %c0_43], %176 {strides = array<i32>} : memref<16x32xf32, #tpu.memory_space<vmem>>, vector<16x32xf32>,
    return
  }
  func.func @transform_0(%arg0: i32) -> (i32, i32, i32) {
    %c0_i32 = arith.constant 0 : i32
    %c0_i32_0 = arith.constant 0 : i32
    %c0_i32_1 = arith.constant 0 : i32
    return %c0_i32, %arg0, %c0_i32_0 : i32, i32, i32
  }
  func.func @transform_1(%arg0: i32) -> (i32, i32) {
    %c0_i32 = arith.constant 0 : i32
    %c0_i32_0 = arith.constant 0 : i32
    return %arg0, %c0_i32 : i32, i32
  }
  func.func @transform_2(%arg0: i32) -> (i32, i32) {
    %c0_i32 = arith.constant 0 : i32
    %c0_i32_0 = arith.constant 0 : i32
    %c0_i32_1 = arith.constant 0 : i32
    return %c0_i32, %c0_i32_0 : i32, i32
  }
  func.func @transform_3(%arg0: i32) -> (i32, i32) {
    %c0_i32 = arith.constant 0 : i32
    %c0_i32_0 = arith.constant 0 : i32
    %c0_i32_1 = arith.constant 0 : i32
    return %c0_i32, %c0_i32_0 : i32, i32
  }
  func.func @transform_4(%arg0: i32) -> (i32, i32) {
    %c0_i32 = arith.constant 0 : i32
    %c0_i32_0 = arith.constant 0 : i32
    %c0_i32_1 = arith.constant 0 : i32
    return %c0_i32, %c0_i32_0 : i32, i32
  }
  func.func @transform_5(%arg0: i32) -> (i32, i32) {
    %c0_i32 = arith.constant 0 : i32
    %c0_i32_0 = arith.constant 0 : i32
    %c0_i32_1 = arith.constant 0 : i32
    return %c0_i32, %c0_i32_0 : i32, i32
  }
  func.func @transform_6(%arg0: i32) -> (i32, i32) {
    %c0_i32 = arith.constant 0 : i32
    %c0_i32_0 = arith.constant 0 : i32
    return %arg0, %c0_i32 : i32, i32
  }
}

module attributes {stable_mosaic.version = 11 : i64} {
  func.func @_ctx_kernel(%arg0: i32, %arg1: memref<5x32x64xbf16, #tpu.memory_space<vmem>>, %arg2: memref<32x1xi32, #tpu.memory_space<vmem>>, %arg3: memref<16x1xi32, #tpu.memory_space<vmem>>, %arg4: memref<64x128xf32, #tpu.memory_space<vmem>>, %arg5: memref<1x128xf32, #tpu.memory_space<vmem>>, %arg6: memref<32x128xf32, #tpu.memory_space<vmem>>, %arg7: memref<32x32xf32, #tpu.memory_space<vmem>>, %arg8: memref<16x32xf32, #tpu.memory_space<vmem>>, %arg9: memref<5x32x128xbf16, #tpu.memory_space<vmem>>) attributes {dimension_semantics = [#tpu.dimension_semantics<parallel>], iteration_bounds = array<i64: 1>, scalar_prefetch = 0 : i64, scratch_operands = 1 : i64, tpu.core_type = #tpu.core_type<tc>, window_params = [{transform_indices = @transform_0, window_bounds = array<i64: 5, 32, 64>}, {transform_indices = @transform_1, window_bounds = array<i64: 32, 1>}, {transform_indices = @transform_2, window_bounds = array<i64: 16, 1>}, {pipeline_mode = #tpu.pipeline_mode<synchronous>, transform_indices = @transform_3, window_bounds = array<i64: 64, 128>}, {pipeline_mode = #tpu.pipeline_mode<synchronous>, transform_indices = @transform_4, window_bounds = array<i64: 1, 128>}, {pipeline_mode = #tpu.pipeline_mode<synchronous>, transform_indices = @transform_5, window_bounds = array<i64: 32, 128>}, {pipeline_mode = #tpu.pipeline_mode<synchronous>, transform_indices = @transform_6, window_bounds = array<i64: 32, 32>}, {transform_indices = @transform_7, window_bounds = array<i64: 16, 32>}]} {
    %c0 = arith.constant 0 : index
    %c0_0 = arith.constant 0 : index
    %c0_1 = arith.constant 0 : index
    %0 = vector.load %arg1[%c0, %c0_0, %c0_1] : memref<5x32x64xbf16, #tpu.memory_space<vmem>>, vector<5x32x64xbf16>
    %1 = vector.shape_cast %0 : vector<5x32x64xbf16> to vector<160x64xbf16>
    %c0_2 = arith.constant 0 : index
    %c0_3 = arith.constant 0 : index
    %2 = vector.load %arg4[%c0_2, %c0_3] : memref<64x128xf32, #tpu.memory_space<vmem>>, vector<64x128xf32>
    %3 = arith.truncf %2 : vector<64x128xf32> to vector<64x128xbf16>
    %cst = arith.constant dense<0.000000e+00> : vector<160x128xf32>
    %4 = tpu.matmul %1, %3, %cst {dimension_numbers = #tpu.dot_dimension_numbers<[1], [0], [0], [1], [0, 0, 1, 1], [], []>} : vector<160x64xbf16>, vector<64x128xbf16>, vector<160x128xf32> -> vector<160x128xf32>
    %c0_4 = arith.constant 0 : index
    %c0_5 = arith.constant 0 : index
    %5 = vector.load %arg5[%c0_4, %c0_5] : memref<1x128xf32, #tpu.memory_space<vmem>>, vector<1x128xf32>
    %6 = vector.broadcast %5 : vector<1x128xf32> to vector<160x128xf32>
    %7 = arith.addf %4, %6 : vector<160x128xf32>
    %8 = vector.shape_cast %7 : vector<160x128xf32> to vector<5x32x128xf32>
    %9 = arith.truncf %8 : vector<5x32x128xf32> to vector<5x32x128xbf16>
    %c0_6 = arith.constant 0 : index
    %c0_7 = arith.constant 0 : index
    %c0_8 = arith.constant 0 : index
    %10 = vector.load %arg9[%c0_6, %c0_7, %c0_8] : memref<5x32x128xbf16, #tpu.memory_space<vmem>>, vector<5x32x128xbf16>
    tpu.vector_store %arg9[%c0_6, %c0_7, %c0_8], %9 {strides = array<i32>} : memref<5x32x128xbf16, #tpu.memory_space<vmem>>, vector<5x32x128xbf16>,
    %c0_9 = arith.constant 0 : index
    %c0_10 = arith.constant 0 : index
    %11 = vector.load %arg6[%c0_9, %c0_10] : memref<32x128xf32, #tpu.memory_space<vmem>>, vector<32x128xf32>
    %12 = arith.truncf %11 : vector<32x128xf32> to vector<32x128xbf16>
    %c0_11 = arith.constant 0 : index
    %c0_12 = arith.constant 0 : index
    %13 = vector.load %arg2[%c0_11, %c0_12] : memref<32x1xi32, #tpu.memory_space<vmem>>, vector<32x1xi32>
    %14 = tpu.iota {dimensions = array<i32: 1>} : vector<32x32xi32>
    %c16_i32 = arith.constant 16 : i32
    %15 = vector.broadcast %c16_i32 : i32 to vector<32x32xi32>
    %16 = arith.cmpi slt, %14, %15 : vector<32x32xi32>
    %cst_13 = arith.constant 0.000000e+00 : f32
    %17 = vector.broadcast %cst_13 : f32 to vector<32x32xf32>
    %c0_i32 = arith.constant 0 : i32
    %c4_i32 = arith.constant 4 : i32
    %18 = arith.subi %c4_i32, %c0_i32 : i32
    %19 = arith.index_cast %c0_i32 : i32 to index
    %c0_14 = arith.constant 0 : index
    %c0_15 = arith.constant 0 : index
    %20 = vector.load %arg9[%19, %c0_14, %c0_15] : memref<5x32x128xbf16, #tpu.memory_space<vmem>>, vector<1x32x128xbf16>
    %21 = vector.shape_cast %20 : vector<1x32x128xbf16> to vector<32x128xbf16>
    %22 = arith.extf %21 : vector<32x128xbf16> to vector<32x128xf32>
    %23 = arith.truncf %17 : vector<32x32xf32> to vector<32x32xbf16>
    %cst_16 = arith.constant dense<0.000000e+00> : vector<32x128xf32>
    %24 = tpu.matmul %23, %12, %cst_16 {dimension_numbers = #tpu.dot_dimension_numbers<[1], [0], [0], [1], [0, 0, 1, 1], [], []>} : vector<32x32xbf16>, vector<32x128xbf16>, vector<32x128xf32> -> vector<32x128xf32>
    %25 = arith.addf %22, %24 : vector<32x128xf32>
    %26 = vector.extract_strided_slice %25 {offsets = [0, 0], sizes = [32, 96], strides = [1, 1]} : vector<32x128xf32> to vector<32x96xf32>
    %27 = arith.negf %26 : vector<32x96xf32>
    %28 = math.exp %27 : vector<32x96xf32>
    %cst_17 = arith.constant 1.000000e+00 : f32
    %29 = vector.broadcast %cst_17 : f32 to vector<32x96xf32>
    %30 = arith.addf %29, %28 : vector<32x96xf32>
    %31 = arith.divf %29, %30 : vector<32x96xf32>
    %32 = vector.extract_strided_slice %25 {offsets = [0, 96], sizes = [32, 32], strides = [1, 1]} : vector<32x128xf32> to vector<32x32xf32>
    %33 = math.tanh %32 : vector<32x32xf32>
    %34 = vector.extract_strided_slice %31 {offsets = [0, 0], sizes = [32, 32], strides = [1, 1]} : vector<32x96xf32> to vector<32x32xf32>
    %35 = vector.extract_strided_slice %31 {offsets = [0, 32], sizes = [32, 32], strides = [1, 1]} : vector<32x96xf32> to vector<32x32xf32>
    %36 = vector.extract_strided_slice %31 {offsets = [0, 64], sizes = [32, 32], strides = [1, 1]} : vector<32x96xf32> to vector<32x32xf32>
    %37 = arith.mulf %35, %17 : vector<32x32xf32>
    %38 = arith.mulf %34, %33 : vector<32x32xf32>
    %39 = arith.addf %37, %38 : vector<32x32xf32>
    %40 = math.tanh %39 : vector<32x32xf32>
    %41 = arith.mulf %36, %40 : vector<32x32xf32>
    %42 = vector.broadcast %c0_i32 : i32 to vector<32x32xi32>
    %43 = vector.broadcast %18 : i32 to vector<32x32xi32>
    %44 = arith.select %16, %42, %43 : vector<32x32xi1>, vector<32x32xi32>
    %45 = vector.broadcast %13 : vector<32x1xi32> to vector<32x32xi32>
    %46 = arith.cmpi sgt, %45, %44 : vector<32x32xi32>
    %47 = arith.select %46, %41, %17 : vector<32x32xi1>, vector<32x32xf32>
    %48 = arith.select %46, %39, %17 : vector<32x32xi1>, vector<32x32xf32>
    %c1_i32 = arith.constant 1 : i32
    %c4_i32_18 = arith.constant 4 : i32
    %49 = arith.subi %c4_i32_18, %c1_i32 : i32
    %50 = arith.index_cast %c1_i32 : i32 to index
    %c0_19 = arith.constant 0 : index
    %c0_20 = arith.constant 0 : index
    %51 = vector.load %arg9[%50, %c0_19, %c0_20] : memref<5x32x128xbf16, #tpu.memory_space<vmem>>, vector<1x32x128xbf16>
    %52 = vector.shape_cast %51 : vector<1x32x128xbf16> to vector<32x128xbf16>
    %53 = arith.extf %52 : vector<32x128xbf16> to vector<32x128xf32>
    %54 = arith.truncf %47 : vector<32x32xf32> to vector<32x32xbf16>
    %cst_21 = arith.constant dense<0.000000e+00> : vector<32x128xf32>
    %55 = tpu.matmul %54, %12, %cst_21 {dimension_numbers = #tpu.dot_dimension_numbers<[1], [0], [0], [1], [0, 0, 1, 1], [], []>} : vector<32x32xbf16>, vector<32x128xbf16>, vector<32x128xf32> -> vector<32x128xf32>
    %56 = arith.addf %53, %55 : vector<32x128xf32>
    %57 = vector.extract_strided_slice %56 {offsets = [0, 0], sizes = [32, 96], strides = [1, 1]} : vector<32x128xf32> to vector<32x96xf32>
    %58 = arith.negf %57 : vector<32x96xf32>
    %59 = math.exp %58 : vector<32x96xf32>
    %cst_22 = arith.constant 1.000000e+00 : f32
    %60 = vector.broadcast %cst_22 : f32 to vector<32x96xf32>
    %61 = arith.addf %60, %59 : vector<32x96xf32>
    %62 = arith.divf %60, %61 : vector<32x96xf32>
    %63 = vector.extract_strided_slice %56 {offsets = [0, 96], sizes = [32, 32], strides = [1, 1]} : vector<32x128xf32> to vector<32x32xf32>
    %64 = math.tanh %63 : vector<32x32xf32>
    %65 = vector.extract_strided_slice %62 {offsets = [0, 0], sizes = [32, 32], strides = [1, 1]} : vector<32x96xf32> to vector<32x32xf32>
    %66 = vector.extract_strided_slice %62 {offsets = [0, 32], sizes = [32, 32], strides = [1, 1]} : vector<32x96xf32> to vector<32x32xf32>
    %67 = vector.extract_strided_slice %62 {offsets = [0, 64], sizes = [32, 32], strides = [1, 1]} : vector<32x96xf32> to vector<32x32xf32>
    %68 = arith.mulf %66, %48 : vector<32x32xf32>
    %69 = arith.mulf %65, %64 : vector<32x32xf32>
    %70 = arith.addf %68, %69 : vector<32x32xf32>
    %71 = math.tanh %70 : vector<32x32xf32>
    %72 = arith.mulf %67, %71 : vector<32x32xf32>
    %73 = vector.broadcast %c1_i32 : i32 to vector<32x32xi32>
    %74 = vector.broadcast %49 : i32 to vector<32x32xi32>
    %75 = arith.select %16, %73, %74 : vector<32x32xi1>, vector<32x32xi32>
    %76 = vector.broadcast %13 : vector<32x1xi32> to vector<32x32xi32>
    %77 = arith.cmpi sgt, %76, %75 : vector<32x32xi32>
    %78 = arith.select %77, %72, %47 : vector<32x32xi1>, vector<32x32xf32>
    %79 = arith.select %77, %70, %48 : vector<32x32xi1>, vector<32x32xf32>
    %c2_i32 = arith.constant 2 : i32
    %c4_i32_23 = arith.constant 4 : i32
    %80 = arith.subi %c4_i32_23, %c2_i32 : i32
    %81 = arith.index_cast %c2_i32 : i32 to index
    %c0_24 = arith.constant 0 : index
    %c0_25 = arith.constant 0 : index
    %82 = vector.load %arg9[%81, %c0_24, %c0_25] : memref<5x32x128xbf16, #tpu.memory_space<vmem>>, vector<1x32x128xbf16>
    %83 = vector.shape_cast %82 : vector<1x32x128xbf16> to vector<32x128xbf16>
    %84 = arith.extf %83 : vector<32x128xbf16> to vector<32x128xf32>
    %85 = arith.truncf %78 : vector<32x32xf32> to vector<32x32xbf16>
    %cst_26 = arith.constant dense<0.000000e+00> : vector<32x128xf32>
    %86 = tpu.matmul %85, %12, %cst_26 {dimension_numbers = #tpu.dot_dimension_numbers<[1], [0], [0], [1], [0, 0, 1, 1], [], []>} : vector<32x32xbf16>, vector<32x128xbf16>, vector<32x128xf32> -> vector<32x128xf32>
    %87 = arith.addf %84, %86 : vector<32x128xf32>
    %88 = vector.extract_strided_slice %87 {offsets = [0, 0], sizes = [32, 96], strides = [1, 1]} : vector<32x128xf32> to vector<32x96xf32>
    %89 = arith.negf %88 : vector<32x96xf32>
    %90 = math.exp %89 : vector<32x96xf32>
    %cst_27 = arith.constant 1.000000e+00 : f32
    %91 = vector.broadcast %cst_27 : f32 to vector<32x96xf32>
    %92 = arith.addf %91, %90 : vector<32x96xf32>
    %93 = arith.divf %91, %92 : vector<32x96xf32>
    %94 = vector.extract_strided_slice %87 {offsets = [0, 96], sizes = [32, 32], strides = [1, 1]} : vector<32x128xf32> to vector<32x32xf32>
    %95 = math.tanh %94 : vector<32x32xf32>
    %96 = vector.extract_strided_slice %93 {offsets = [0, 0], sizes = [32, 32], strides = [1, 1]} : vector<32x96xf32> to vector<32x32xf32>
    %97 = vector.extract_strided_slice %93 {offsets = [0, 32], sizes = [32, 32], strides = [1, 1]} : vector<32x96xf32> to vector<32x32xf32>
    %98 = vector.extract_strided_slice %93 {offsets = [0, 64], sizes = [32, 32], strides = [1, 1]} : vector<32x96xf32> to vector<32x32xf32>
    %99 = arith.mulf %97, %79 : vector<32x32xf32>
    %100 = arith.mulf %96, %95 : vector<32x32xf32>
    %101 = arith.addf %99, %100 : vector<32x32xf32>
    %102 = math.tanh %101 : vector<32x32xf32>
    %103 = arith.mulf %98, %102 : vector<32x32xf32>
    %104 = vector.broadcast %c2_i32 : i32 to vector<32x32xi32>
    %105 = vector.broadcast %80 : i32 to vector<32x32xi32>
    %106 = arith.select %16, %104, %105 : vector<32x32xi1>, vector<32x32xi32>
    %107 = vector.broadcast %13 : vector<32x1xi32> to vector<32x32xi32>
    %108 = arith.cmpi sgt, %107, %106 : vector<32x32xi32>
    %109 = arith.select %108, %103, %78 : vector<32x32xi1>, vector<32x32xf32>
    %110 = arith.select %108, %101, %79 : vector<32x32xi1>, vector<32x32xf32>
    %c3_i32 = arith.constant 3 : i32
    %c4_i32_28 = arith.constant 4 : i32
    %111 = arith.subi %c4_i32_28, %c3_i32 : i32
    %112 = arith.index_cast %c3_i32 : i32 to index
    %c0_29 = arith.constant 0 : index
    %c0_30 = arith.constant 0 : index
    %113 = vector.load %arg9[%112, %c0_29, %c0_30] : memref<5x32x128xbf16, #tpu.memory_space<vmem>>, vector<1x32x128xbf16>
    %114 = vector.shape_cast %113 : vector<1x32x128xbf16> to vector<32x128xbf16>
    %115 = arith.extf %114 : vector<32x128xbf16> to vector<32x128xf32>
    %116 = arith.truncf %109 : vector<32x32xf32> to vector<32x32xbf16>
    %cst_31 = arith.constant dense<0.000000e+00> : vector<32x128xf32>
    %117 = tpu.matmul %116, %12, %cst_31 {dimension_numbers = #tpu.dot_dimension_numbers<[1], [0], [0], [1], [0, 0, 1, 1], [], []>} : vector<32x32xbf16>, vector<32x128xbf16>, vector<32x128xf32> -> vector<32x128xf32>
    %118 = arith.addf %115, %117 : vector<32x128xf32>
    %119 = vector.extract_strided_slice %118 {offsets = [0, 0], sizes = [32, 96], strides = [1, 1]} : vector<32x128xf32> to vector<32x96xf32>
    %120 = arith.negf %119 : vector<32x96xf32>
    %121 = math.exp %120 : vector<32x96xf32>
    %cst_32 = arith.constant 1.000000e+00 : f32
    %122 = vector.broadcast %cst_32 : f32 to vector<32x96xf32>
    %123 = arith.addf %122, %121 : vector<32x96xf32>
    %124 = arith.divf %122, %123 : vector<32x96xf32>
    %125 = vector.extract_strided_slice %118 {offsets = [0, 96], sizes = [32, 32], strides = [1, 1]} : vector<32x128xf32> to vector<32x32xf32>
    %126 = math.tanh %125 : vector<32x32xf32>
    %127 = vector.extract_strided_slice %124 {offsets = [0, 0], sizes = [32, 32], strides = [1, 1]} : vector<32x96xf32> to vector<32x32xf32>
    %128 = vector.extract_strided_slice %124 {offsets = [0, 32], sizes = [32, 32], strides = [1, 1]} : vector<32x96xf32> to vector<32x32xf32>
    %129 = vector.extract_strided_slice %124 {offsets = [0, 64], sizes = [32, 32], strides = [1, 1]} : vector<32x96xf32> to vector<32x32xf32>
    %130 = arith.mulf %128, %110 : vector<32x32xf32>
    %131 = arith.mulf %127, %126 : vector<32x32xf32>
    %132 = arith.addf %130, %131 : vector<32x32xf32>
    %133 = math.tanh %132 : vector<32x32xf32>
    %134 = arith.mulf %129, %133 : vector<32x32xf32>
    %135 = vector.broadcast %c3_i32 : i32 to vector<32x32xi32>
    %136 = vector.broadcast %111 : i32 to vector<32x32xi32>
    %137 = arith.select %16, %135, %136 : vector<32x32xi1>, vector<32x32xi32>
    %138 = vector.broadcast %13 : vector<32x1xi32> to vector<32x32xi32>
    %139 = arith.cmpi sgt, %138, %137 : vector<32x32xi32>
    %140 = arith.select %139, %134, %109 : vector<32x32xi1>, vector<32x32xf32>
    %141 = arith.select %139, %132, %110 : vector<32x32xi1>, vector<32x32xf32>
    %c4_i32_33 = arith.constant 4 : i32
    %c4_i32_34 = arith.constant 4 : i32
    %142 = arith.subi %c4_i32_34, %c4_i32_33 : i32
    %143 = arith.index_cast %c4_i32_33 : i32 to index
    %c0_35 = arith.constant 0 : index
    %c0_36 = arith.constant 0 : index
    %144 = vector.load %arg9[%143, %c0_35, %c0_36] : memref<5x32x128xbf16, #tpu.memory_space<vmem>>, vector<1x32x128xbf16>
    %145 = vector.shape_cast %144 : vector<1x32x128xbf16> to vector<32x128xbf16>
    %146 = arith.extf %145 : vector<32x128xbf16> to vector<32x128xf32>
    %147 = arith.truncf %140 : vector<32x32xf32> to vector<32x32xbf16>
    %cst_37 = arith.constant dense<0.000000e+00> : vector<32x128xf32>
    %148 = tpu.matmul %147, %12, %cst_37 {dimension_numbers = #tpu.dot_dimension_numbers<[1], [0], [0], [1], [0, 0, 1, 1], [], []>} : vector<32x32xbf16>, vector<32x128xbf16>, vector<32x128xf32> -> vector<32x128xf32>
    %149 = arith.addf %146, %148 : vector<32x128xf32>
    %150 = vector.extract_strided_slice %149 {offsets = [0, 0], sizes = [32, 96], strides = [1, 1]} : vector<32x128xf32> to vector<32x96xf32>
    %151 = arith.negf %150 : vector<32x96xf32>
    %152 = math.exp %151 : vector<32x96xf32>
    %cst_38 = arith.constant 1.000000e+00 : f32
    %153 = vector.broadcast %cst_38 : f32 to vector<32x96xf32>
    %154 = arith.addf %153, %152 : vector<32x96xf32>
    %155 = arith.divf %153, %154 : vector<32x96xf32>
    %156 = vector.extract_strided_slice %149 {offsets = [0, 96], sizes = [32, 32], strides = [1, 1]} : vector<32x128xf32> to vector<32x32xf32>
    %157 = math.tanh %156 : vector<32x32xf32>
    %158 = vector.extract_strided_slice %155 {offsets = [0, 0], sizes = [32, 32], strides = [1, 1]} : vector<32x96xf32> to vector<32x32xf32>
    %159 = vector.extract_strided_slice %155 {offsets = [0, 32], sizes = [32, 32], strides = [1, 1]} : vector<32x96xf32> to vector<32x32xf32>
    %160 = vector.extract_strided_slice %155 {offsets = [0, 64], sizes = [32, 32], strides = [1, 1]} : vector<32x96xf32> to vector<32x32xf32>
    %161 = arith.mulf %159, %141 : vector<32x32xf32>
    %162 = arith.mulf %158, %157 : vector<32x32xf32>
    %163 = arith.addf %161, %162 : vector<32x32xf32>
    %164 = math.tanh %163 : vector<32x32xf32>
    %165 = arith.mulf %160, %164 : vector<32x32xf32>
    %166 = vector.broadcast %c4_i32_33 : i32 to vector<32x32xi32>
    %167 = vector.broadcast %142 : i32 to vector<32x32xi32>
    %168 = arith.select %16, %166, %167 : vector<32x32xi1>, vector<32x32xi32>
    %169 = vector.broadcast %13 : vector<32x1xi32> to vector<32x32xi32>
    %170 = arith.cmpi sgt, %169, %168 : vector<32x32xi32>
    %171 = arith.select %170, %165, %140 : vector<32x32xi1>, vector<32x32xf32>
    %172 = arith.select %170, %163, %141 : vector<32x32xi1>, vector<32x32xf32>
    %c5_i32 = arith.constant 5 : i32
    %c0_39 = arith.constant 0 : index
    %c0_40 = arith.constant 0 : index
    %173 = vector.load %arg3[%c0_39, %c0_40] : memref<16x1xi32, #tpu.memory_space<vmem>>, vector<16x1xi32>
    %174 = tpu.iota {dimensions = array<i32: 0>} : vector<16x32xi32>
    %175 = tpu.iota {dimensions = array<i32: 1>} : vector<16x32xi32>
    %c2_i32_41 = arith.constant 2 : i32
    %176 = vector.broadcast %c2_i32_41 : i32 to vector<16x32xi32>
    %177 = arith.muli %174, %176 : vector<16x32xi32>
    %178 = arith.cmpi sge, %175, %177 : vector<16x32xi32>
    %179 = vector.broadcast %173 : vector<16x1xi32> to vector<16x32xi32>
    %180 = arith.addi %177, %179 : vector<16x32xi32>
    %181 = arith.cmpi slt, %175, %180 : vector<16x32xi32>
    %182 = arith.andi %178, %181 : vector<16x32xi1>
    %183 = arith.extui %182 : vector<16x32xi1> to vector<16x32xi32>
    %184 = arith.sitofp %183 : vector<16x32xi32> to vector<16x32xf32>
    %185 = arith.truncf %184 : vector<16x32xf32> to vector<16x32xbf16>
    %186 = arith.truncf %171 : vector<32x32xf32> to vector<32x32xbf16>
    %cst_42 = arith.constant dense<0.000000e+00> : vector<16x32xf32>
    %187 = tpu.matmul %185, %186, %cst_42 {dimension_numbers = #tpu.dot_dimension_numbers<[1], [0], [0], [1], [0, 0, 1, 1], [], []>} : vector<16x32xbf16>, vector<32x32xbf16>, vector<16x32xf32> -> vector<16x32xf32>
    %188 = arith.sitofp %173 : vector<16x1xi32> to vector<16x1xf32>
    %cst_43 = arith.constant 1.000000e-10 : f32
    %189 = vector.broadcast %cst_43 : f32 to vector<16x1xf32>
    %190 = arith.maximumf %188, %189 : vector<16x1xf32>
    %cst_44 = arith.constant 1.000000e+00 : f32
    %191 = vector.broadcast %cst_44 : f32 to vector<16x1xf32>
    %192 = arith.divf %191, %190 : vector<16x1xf32>
    %193 = vector.broadcast %192 : vector<16x1xf32> to vector<16x32xf32>
    %194 = arith.mulf %187, %193 : vector<16x32xf32>
    %c0_45 = arith.constant 0 : index
    %c0_46 = arith.constant 0 : index
    %195 = vector.load %arg7[%c0_45, %c0_46] : memref<32x32xf32, #tpu.memory_space<vmem>>, vector<32x32xf32>
    %196 = arith.truncf %194 : vector<16x32xf32> to vector<16x32xbf16>
    %197 = arith.truncf %195 : vector<32x32xf32> to vector<32x32xbf16>
    %cst_47 = arith.constant dense<0.000000e+00> : vector<16x32xf32>
    %198 = tpu.matmul %196, %197, %cst_47 {dimension_numbers = #tpu.dot_dimension_numbers<[1], [0], [0], [1], [0, 0, 1, 1], [], []>} : vector<16x32xbf16>, vector<32x32xbf16>, vector<16x32xf32> -> vector<16x32xf32>
    %c0_48 = arith.constant 0 : index
    %c0_49 = arith.constant 0 : index
    %199 = vector.load %arg8[%c0_48, %c0_49] : memref<16x32xf32, #tpu.memory_space<vmem>>, vector<16x32xf32>
    tpu.vector_store %arg8[%c0_48, %c0_49], %198 {strides = array<i32>} : memref<16x32xf32, #tpu.memory_space<vmem>>, vector<16x32xf32>,
    return
  }
  func.func @transform_0(%arg0: i32) -> (i32, i32, i32) {
    %c0_i32 = arith.constant 0 : i32
    %c0_i32_0 = arith.constant 0 : i32
    %c0_i32_1 = arith.constant 0 : i32
    return %c0_i32, %arg0, %c0_i32_0 : i32, i32, i32
  }
  func.func @transform_1(%arg0: i32) -> (i32, i32) {
    %c0_i32 = arith.constant 0 : i32
    %c0_i32_0 = arith.constant 0 : i32
    return %arg0, %c0_i32 : i32, i32
  }
  func.func @transform_2(%arg0: i32) -> (i32, i32) {
    %c0_i32 = arith.constant 0 : i32
    %c0_i32_0 = arith.constant 0 : i32
    return %arg0, %c0_i32 : i32, i32
  }
  func.func @transform_3(%arg0: i32) -> (i32, i32) {
    %c0_i32 = arith.constant 0 : i32
    %c0_i32_0 = arith.constant 0 : i32
    %c0_i32_1 = arith.constant 0 : i32
    return %c0_i32, %c0_i32_0 : i32, i32
  }
  func.func @transform_4(%arg0: i32) -> (i32, i32) {
    %c0_i32 = arith.constant 0 : i32
    %c0_i32_0 = arith.constant 0 : i32
    %c0_i32_1 = arith.constant 0 : i32
    return %c0_i32, %c0_i32_0 : i32, i32
  }
  func.func @transform_5(%arg0: i32) -> (i32, i32) {
    %c0_i32 = arith.constant 0 : i32
    %c0_i32_0 = arith.constant 0 : i32
    %c0_i32_1 = arith.constant 0 : i32
    return %c0_i32, %c0_i32_0 : i32, i32
  }
  func.func @transform_6(%arg0: i32) -> (i32, i32) {
    %c0_i32 = arith.constant 0 : i32
    %c0_i32_0 = arith.constant 0 : i32
    %c0_i32_1 = arith.constant 0 : i32
    return %c0_i32, %c0_i32_0 : i32, i32
  }
  func.func @transform_7(%arg0: i32) -> (i32, i32) {
    %c0_i32 = arith.constant 0 : i32
    %c0_i32_0 = arith.constant 0 : i32
    return %arg0, %c0_i32 : i32, i32
  }
}

</mosaic_0001>

<bundles_post_ra>
// kernel: ans_seq_encoder_forward.3
= control target key start
LH: loop header
LB: loop body
LE: loop exit
PB: predicated region body
PF: predicated region fallthrough
CT: control target
= control target key end

     0   :  { %v1042_v3 = vmov 0   ;;  %vm72_vm0 = vcmask 392192   ;;  %s1044_s25 = smov 96   ;;  %s1045_s29 = smov 64   ;;  %vm157_vm12 = vcmask 261120   ;;  %s1366_s2 = inlined_call_operand.vmem [shape: f32[48,128], index: 2, kind: input, shape index: {}]   ;;  %s1367_s4 = inlined_call_operand.vmem [shape: f32[32,128], index: 4, kind: input, shape index: {}]   ;;  %s1368_s3 = inlined_call_operand.vmem [shape: f32[1,128], index: 3, kind: input, shape index: {}]   ;;  %s1369_s0 = inlined_call_operand.vmem [shape: bf16[5,16,48], index: 0, kind: input, shape index: {}]   ;;  %s1370_s1 = inlined_call_operand.vmem [shape: s32[16,1], index: 1, kind: input, shape index: {}]   ;;  %s1371_s5 = inlined_call_operand.vmem [shape: f32[32,32], index: 5, kind: input, shape index: {}]   ;;  %s1372_s6 = inlined_call_operand.vmem [shape: f32[16,32], index: 6, kind: output, shape index: {}]  }
   0x1   :  { %v38_v0 = vld [vmem:[%s1366_s2 + $0x20] sm:$0xff]  ;;  %v39_v1 = vld [vmem:[%s1366_s2 + $0x28] sm:$0xff]  ;;  %v36_v2 = vld [vmem:[%s1366_s2 + $0x10] sm:$0xff]  ;;  %930 = vset.pattern.permute.xlu1 %v1042_v3  ;;  %929 = vset.pattern.permute.xlu0 %v1042_v3 }
   0x2   :  { %v42_v4 = vpack.c.bf16 %v39_v1, %v38_v0  ;;  %v37_v5 = vld [vmem:[%s1366_s2 + $0x18] sm:$0xff]  ;;  %v144_v6 = vld [vmem:[%s1367_s4 + $0x10] sm:$0xff]  ;;  %v34_v9 = vld [vmem:[%s1366_s2] sm:$0xff] }
   0x3   :  { %v41_v7 = vpack.c.bf16 %v37_v5, %v36_v2  ;;  %v145_v8 = vld [vmem:[%s1367_s4 + $0x18] sm:$0xff]  ;;  %v35_v10 = vld [vmem:[%s1366_s2 + $0x8] sm:$0xff]  ;;  %v142_v12 = vld [vmem:[%s1367_s4] sm:$0xff] }
   0x4   :  { %93 = vmatpush.bf16.msra.mxu0 %v42_v4  ;;  %916 = vmatpush.bf16.msra.mxu1 %v42_v4  ;;  %v1110_v11 = vpack.c.bf16 %v145_v8, %v144_v6  ;;  %v143_v13 = vld [vmem:[%s1367_s4 + $0x8] sm:$0xff]  ;;  %v40_v14 = vpack.c.bf16 %v35_v10, %v34_v9  ;;  %v862_v16 = vld [vmem:[%s1369_s0] sm:$0xff]  ;;  %v865_v17 = vld [vmem:[%s1369_s0 + $0x18] sm:$0xff] }
   0x5   :  { %917 = vmatpush.bf16.msra.mxu2 %v42_v4  ;;  %v1119_v15 = vpack.c.bf16 %v143_v13, %v142_v12  ;;  %v1140_v20 = vld [vmem:[%s1368_s3] ss:$0 sm:$0xff]  ;;  %s1043_s3 = smov 32   ;;  %v149_v4 = vld [vmem:[%s1370_s1 + $0x8] sm:$0xff] }
   0x6   :  { %425 = vmatpush.bf16.msra.mxu3 %v1110_v11  ;;  %v148_v5 = vld [vmem:[%s1370_s1] sm:$0xff] }
   0x8   :  { %94 = vmatpush.bf16.msra.mxu0 %v41_v7  ;;  %918 = vmatpush.bf16.msra.mxu1 %v41_v7 }
   0x9   :  { %919 = vmatpush.bf16.msra.mxu2 %v41_v7 }
   0xa   :  { %426 = vmatpush.bf16.msra.mxu3 %v1119_v15 }
   0xc   :  { %95 = vmatpush.bf16.msra.mxu0 %v40_v14  ;;  %920 = vmatpush.bf16.msra.mxu1 %v40_v14 }
   0xd   :  { %921 = vmatpush.bf16.msra.mxu2 %v40_v14 }
   0xf   :  { %842 = vmatmul.msk.bf16.vlgmr.msra.gmra.mxu0 %vm72_vm0, %v862_v16  ;;  %845 = vmatmul.msk.bf16.vlgmr.msra.gmra.mxu1 %vm72_vm0, %v865_v17  ;;  %v866_v16 = vld [vmem:[%s1369_s0 + $0x20] sm:$0xff]  ;;  %v863_v17 = vld [vmem:[%s1369_s0 + $0x8] sm:$0xff] }
  0x10   :  { %167 = vmatpush.bf16.msrb.mxu1 %v1110_v11  ;;  %846 = vmatmul.msk.bf16.vlgmr.msra.gmra.mxu2 %vm72_vm0, %v866_v16 }
  0x11   :  { %295 = vmatpush.bf16.msrb.mxu2 %v1110_v11 }
  0x14   :  { %168 = vmatpush.bf16.msrb.mxu1 %v1119_v15 }
  0x15   :  { %296 = vmatpush.bf16.msrb.mxu2 %v1119_v15 }
  0x18   :  { %549 = vmatpush.bf16.msra.mxu1 %v1110_v11 }
  0x19   :  { %687 = vmatpush.bf16.msra.mxu2 %v1110_v11  ;;  %v1046_v11 = vmov 4  }
  0x1c   :  { %550 = vmatpush.bf16.msra.mxu1 %v1119_v15 }
  0x1d   :  { %688 = vmatpush.bf16.msra.mxu2 %v1119_v15 }
  0x1f   :  { %169 = vmatmul.bf16.vlgmr.msrb.gmra.mxu1 %v1042_v3  ;;  %843 = vmatmul.msk.bf16.gmra.mxu0 %vm72_vm0, %v863_v17 }
  0x8c   :  { %v97_v18 = vpop.f32.mrf.mxu0  ;;  %v112_v19 = vpop.f32.mrf.mxu1 }
  0x8d   :  { %v98_v23 = vadd.f32 %v1140_v20, %v97_v18  ;;  %v113_v24 = vadd.f32 %v1140_v20, %v112_v19 }
  0x94   :  { %v99_v21 = vpop.f32.mrf.mxu0  ;;  %v114_v22 = vpop.f32.mrf.mxu1 }
  0x95   :  { %v100_v25 = vadd.f32 %v1140_v20, %v99_v21  ;;  %v115_v26 = vadd.f32 %v1140_v20, %v114_v22 }
  0x97   :  { %v870_v27 = vpack.c.bf16 %v100_v25, %v98_v23  ;;  %v1146_v28 = vpack.c.bf16 %v115_v26, %v113_v24  ;;  %v150_v24 = vlaneseq }
  0x99   :  { %v894_v29 = vunpack.c.l.bf16 %v870_v27  ;;  %v895_v32 = vunpack.c.h.bf16 %v870_v27  ;;  %v1174_v26 = vand.u32 127, %v150_v24 }
  0x9b   :  { %vm152_vm9 = vcmp.lt.s32.totalorder %v1174_v26, 16 }
  0x9c   :  { %v170_v30 = vpop.f32.mrf.mxu1  ;;  %v251_v15 = vsel %vm152_vm9, 0, %v1046_v11 }
  0x9d   :  { %v175_v31 = vadd.f32 %v894_v29, %v170_v30 }
  0x9f   :  { %962 = vtanh.f32 %v175_v31  ;;  %v847_v37 = vmul.f32 -1.442695, %v175_v31 }
  0xa4   :  { %v172_v33 = vpop.f32.mrf.mxu1 }
  0xa5   :  { %v963_v34 = vpop.eup %962  ;;  %v176_v35 = vadd.f32 %v895_v32, %v172_v33 }
  0xa6   :  { %221 = vrot.lane.b32.xlu0 %v963_v34, %s1043_s3 }
  0xa7   :  { %964 = vtanh.f32 %v176_v35  ;;  %v848_v38 = vmul.f32 -1.442695, %v176_v35 }
  0xa8   :  { %966 = vpow2.f32 %v847_v37  ;;  %v102_v37 = vpop.f32.mrf.mxu0 }
  0xa9   :  { %968 = vpow2.f32 %v848_v38  ;;  %v1197_v38 = vpop.f32.mrf.mxu2 }
  0xad   :  { %v965_v36 = vpop.eup %964 }
  0xae   :  { %223 = vrot.lane.b32.xlu0 %v965_v36, %s1043_s3  ;;  %v967_v39 = vpop.eup %966 }
  0xaf   :  { %v183_v40 = vadd.f32 1.0, %v967_v39  ;;  %v969_v41 = vpop.eup %968 }
  0xb0   :  { %v184_v42 = vadd.f32 1.0, %v969_v41  ;;  %v104_v39 = vpop.f32.mrf.mxu0 }
  0xb1   :  { %970 = vrcp.f32 %v183_v40  ;;  %v196_v51 = vand.u32 2147483648, %v183_v40  ;;  %vm190_vm2 = vweird.f32 %v183_v40  ;;  %v194_v52 = vand.u32 2147483647, %v183_v40 }
  0xb2   :  { %972 = vrcp.f32 %v184_v42  ;;  %v211_v60 = vand.u32 2147483648, %v184_v42  ;;  %vm205_vm6 = vweird.f32 %v184_v42  ;;  %v209_v61 = vand.u32 2147483647, %v184_v42 }
  0xb3   :  { %v197_v55 = vor.u32 1.1754944e-38, %v196_v51  ;;  %vm195_vm4 = vcmp.eq.f32.partialorder %v194_v52, 8.507059e+37  ;;  %v105_v41 = vadd.f32 %v1140_v20, %v104_v39 }
  0xb4   :  { %v212_v63 = vor.u32 1.1754944e-38, %v211_v60  ;;  %vm210_vm8 = vcmp.eq.f32.partialorder %v209_v61, 8.507059e+37 }
  0xb6   :  { %253 = vperm.xlu0 %929, %v148_v5  }
  0xb7   :  { %v971_v43 = vpop.eup %970 }
  0xb8   :  { %v186_v44 = vmul.f32 %v971_v43, %v183_v40  ;;  %v973_v46 = vpop.eup %972  ;;  %vm191_vm1 = vweird.f32 %v971_v43  ;;  %v103_v40 = vadd.f32 %v1140_v20, %v102_v37 }
  0xb9   :  { %v201_v48 = vmul.f32 %v973_v46, %v184_v42  ;;  %vm192_vm3 = vmor %vm190_vm2, %vm191_vm1  ;;  %vm206_vm5 = vweird.f32 %v973_v46  ;;  %v1201_v42 = vpop.f32.mrf.mxu2 }
  0xba   :  { %v187_v45 = vsub.f32 1.0, %v186_v44  ;;  %vm207_vm7 = vmor %vm205_vm6, %vm206_vm5 }
  0xbb   :  { %v202_v50 = vsub.f32 1.0, %v201_v48 }
  0xbc   :  { %v188_v47 = vmul.f32 %v971_v43, %v187_v45 }
  0xbd   :  { %v203_v54 = vmul.f32 %v973_v46, %v202_v50 }
  0xbe   :  { %v189_v49 = vadd.f32 %v971_v43, %v188_v47 }
  0xbf   :  { %v204_v59 = vadd.f32 %v973_v46, %v203_v54 }
  0xc0   :  { %v193_v53 = vsel %vm192_vm3, %v971_v43, %v189_v49  ;;  %v875_v43 = vpack.c.bf16 %v105_v41, %v103_v40  ;;  %v864_v40 = vld [vmem:[%s1369_s0 + $0x10] sm:$0xff] }
  0xc1   :  { %v198_v57 = vsel %vm195_vm4, %v197_v55, %v193_v53  ;;  %v208_v62 = vsel %vm207_vm7, %v973_v46, %v204_v59  ;;  %844 = vmatmul.msk.bf16.gmra.mxu0 %vm72_vm0, %v864_v40 }
  0xc2   :  { %v213_v0 = vsel %vm210_vm8, %v212_v63, %v208_v62  ;;  %v217_v6 = vmul.f32 0.0, %v198_v57  ;;  %v898_v44 = vunpack.c.l.bf16 %v875_v43  ;;  %v899_v47 = vunpack.c.h.bf16 %v875_v43 }
  0xc3   :  { %v218_v9 = vmul.f32 0.0, %v213_v0 }
 0x118   :  { %v222_v56 = vpop.permute.xlu0 %221 }
 0x119   :  { %v227_v58 = vmul.f32 %v222_v56, %v198_v57 }
 0x11b   :  { %231 = vrot.lane.b32.xlu1 %v227_v58, %s1043_s3 }
 0x120   :  { %v224_v1 = vpop.permute.xlu0 %223 }
 0x121   :  { %v228_v2 = vmul.f32 %v224_v1, %v213_v0 }
 0x123   :  { %233 = vrot.lane.b32.xlu1 %v228_v2, %s1043_s3 }
 0x128   :  { %v1178_v27 = vpop.permute.xlu0 %253 }
 0x129   :  { %vm258_vm10 = vcmp.gt.s32.totalorder %v1178_v27, %v251_v15 }
 0x12b   :  { %256 = vperm.xlu1 %930, %v149_v4  }
 0x18d   :  { %v232_v7 = vpop.permute.xlu1 %231 }
 0x18e   :  { %v237_v8 = vadd.f32 %v232_v7, %v217_v6 }
 0x190   :  { %974 = vtanh.f32 %v237_v8  ;;  %272 = vrot.lane.b32.xlu1 %v237_v8, %s1044_s25 }
 0x195   :  { %v234_v10 = vpop.permute.xlu1 %233 }
 0x196   :  { %v975_v12 = vpop.eup %974  ;;  %v238_v13 = vadd.f32 %v234_v10, %v218_v9 }
 0x197   :  { %243 = vrot.lane.b32.xlu2 %v975_v12, %s1043_s3 }
 0x198   :  { %976 = vtanh.f32 %v238_v13 }
 0x19d   :  { %v1172_v25 = vpop.permute.xlu1 %256 }
 0x19e   :  { %v977_v14 = vpop.eup %976  ;;  %vm259_vm11 = vcmp.gt.s32.totalorder %v1172_v25, %v251_v15 }
 0x19f   :  { %245 = vrot.lane.b32.xlu2 %v977_v14, %s1043_s3 }
 0x1f1   :  { %v244_v18 = vpop.permute.xlu2 %243 }
 0x1f2   :  { %v249_v21 = vmul.f32 %v244_v18, %v198_v57 }
 0x1f9   :  { %v246_v19 = vpop.permute.xlu2 %245 }
 0x1fa   :  { %v250_v22 = vmul.f32 %v246_v19, %v213_v0 }
 0x1fc   :  { %v931_v23 = vpack.i.bf16 %v250_v22, %v249_v21 }
 0x1fe   :  { %932 = vrot.lane.b32.xlu2 %v931_v23, %s1045_s29 }
 0x202   :  { %v273_v29 = vpop.permute.xlu1 %272 }
 0x203   :  { %v1183_v30 = vsel %vm258_vm10, %v273_v29, 0.0 }
 0x206   :  { %274 = vrot.lane.b32.xlu2 %v238_v13, %s1044_s25 }
 0x20e   :  { %347 = vrot.lane.b32.xlu2 %v1183_v30, %s1043_s3 }
 0x258   :  { %v933_v31 = vpop.permute.xlu2 %932 }
 0x259   :  { %v935_v32 = vunpack.i.h.bf16 %v933_v31  ;;  %v934_v33 = vunpack.i.l.bf16 %v933_v31 }
 0x25b   :  { %v1190_v34 = vsel %vm259_vm11, %v935_v32, 0.0  ;;  %v1192_v35 = vsel %vm258_vm10, %v934_v33, 0.0 }
 0x25c   :  { %v285_v36 = vpack.c.bf16 %v1190_v34, %v1192_v35 }
 0x25e   :  { %849 = vmatmul.msk.bf16.vlgmr.msrb.gmra.mxu2 %vm157_vm12, %v285_v36 }
 0x260   :  { %v275_v51 = vpop.permute.xlu2 %274 }
 0x261   :  { %v1206_v53 = vsel %vm259_vm11, %v275_v51, 0.0 }
 0x268   :  { %v348_v24 = vpop.permute.xlu2 %347 }
 0x2e1   :  { %v298_v45 = vpop.f32.mrf.mxu2 }
 0x2e2   :  { %v303_v46 = vadd.f32 %v898_v44, %v298_v45 }
 0x2e4   :  { %978 = vtanh.f32 %v303_v46  ;;  %v850_v54 = vmul.f32 -1.442695, %v303_v46 }
 0x2e9   :  { %v300_v48 = vpop.f32.mrf.mxu2 }
 0x2ea   :  { %v979_v49 = vpop.eup %978  ;;  %v304_v50 = vadd.f32 %v899_v47, %v300_v48  ;;  %v1047_v47 = vmov 3  }
 0x2eb   :  { %357 = vrot.lane.b32.xlu0 %v979_v49, %s1043_s3  ;;  %v387_v48 = vsel %vm152_vm9, 1, %v1047_v47 }
 0x2ec   :  { %980 = vtanh.f32 %v304_v50  ;;  %v851_v55 = vmul.f32 -1.442695, %v304_v50  ;;  %vm388_vm6 = vcmp.gt.s32.totalorder %v1178_v27, %v387_v48  ;;  %vm389_vm0 = vcmp.gt.s32.totalorder %v1172_v25, %v387_v48 }
 0x2ed   :  { %982 = vpow2.f32 %v850_v54 }
 0x2ee   :  { %984 = vpow2.f32 %v851_v55 }
 0x2f2   :  { %v981_v52 = vpop.eup %980 }
 0x2f3   :  { %349 = vrot.lane.b32.xlu0 %v1206_v53, %s1043_s3  ;;  %359 = vrot.lane.b32.xlu1 %v981_v52, %s1043_s3  ;;  %v983_v56 = vpop.eup %982 }
 0x2f4   :  { %v311_v57 = vadd.f32 1.0, %v983_v56  ;;  %v985_v58 = vpop.eup %984 }
 0x2f5   :  { %v312_v59 = vadd.f32 1.0, %v985_v58  ;;  %v107_v58 = vpop.f32.mrf.mxu0 }
 0x2f6   :  { %986 = vrcp.f32 %v311_v57  ;;  %v324_v5 = vand.u32 2147483648, %v311_v57  ;;  %vm318_vm14 = vweird.f32 %v311_v57  ;;  %v322_v6 = vand.u32 2147483647, %v311_v57 }
 0x2f7   :  { %988 = vrcp.f32 %v312_v59  ;;  %v339_v16 = vand.u32 2147483648, %v312_v59  ;;  %vm333_vm3 = vweird.f32 %v312_v59  ;;  %v337_v17 = vand.u32 2147483647, %v312_v59 }
 0x2f8   :  { %v325_v9 = vor.u32 1.1754944e-38, %v324_v5  ;;  %vm323_vm1 = vcmp.eq.f32.partialorder %v322_v6, 8.507059e+37 }
 0x2f9   :  { %v340_v19 = vor.u32 1.1754944e-38, %v339_v16  ;;  %vm338_vm5 = vcmp.eq.f32.partialorder %v337_v17, 8.507059e+37 }
 0x2fc   :  { %v987_v60 = vpop.eup %986 }
 0x2fd   :  { %v314_v61 = vmul.f32 %v987_v60, %v311_v57  ;;  %v989_v63 = vpop.eup %988  ;;  %vm319_vm13 = vweird.f32 %v987_v60 }
 0x2fe   :  { %v329_v1 = vmul.f32 %v989_v63, %v312_v59  ;;  %vm320_vm15 = vmor %vm318_vm14, %vm319_vm13  ;;  %vm334_vm2 = vweird.f32 %v989_v63  ;;  %v109_v59 = vpop.f32.mrf.mxu0 }
 0x2ff   :  { %v315_v62 = vsub.f32 1.0, %v314_v61  ;;  %vm335_vm4 = vmor %vm333_vm3, %vm334_vm2  ;;  %vm517_vm2 = vcmp.gt.s32.totalorder %v1178_v27, 2  ;;  %vm518_vm3 = vcmp.gt.s32.totalorder %v1172_v25, 2 }
 0x300   :  { %v330_v4 = vsub.f32 1.0, %v329_v1 }
 0x301   :  { %v316_v0 = vmul.f32 %v987_v60, %v315_v62 }
 0x302   :  { %v331_v8 = vmul.f32 %v989_v63, %v330_v4 }
 0x303   :  { %v317_v2 = vadd.f32 %v987_v60, %v316_v0 }
 0x304   :  { %v332_v14 = vadd.f32 %v989_v63, %v331_v8 }
 0x305   :  { %v321_v7 = vsel %vm320_vm15, %v987_v60, %v317_v2  ;;  %v108_v60 = vadd.f32 %v1140_v20, %v107_v58 }
 0x306   :  { %v326_v12 = vsel %vm323_vm1, %v325_v9, %v321_v7  ;;  %v336_v18 = vsel %vm335_vm4, %v989_v63, %v332_v14 }
 0x307   :  { %v341_v21 = vsel %vm338_vm5, %v340_v19, %v336_v18  ;;  %v353_v33 = vmul.f32 %v348_v24, %v326_v12 }
 0x35d   :  { %v358_v10 = vpop.permute.xlu0 %357 }
 0x35e   :  { %v363_v13 = vmul.f32 %v358_v10, %v326_v12 }
 0x360   :  { %367 = vrot.lane.b32.xlu1 %v363_v13, %s1043_s3 }
 0x365   :  { %v360_v22 = vpop.permute.xlu1 %359  ;;  %v350_v11 = vpop.permute.xlu0 %349 }
 0x366   :  { %v364_v23 = vmul.f32 %v360_v22, %v341_v21  ;;  %v354_v15 = vmul.f32 %v350_v11, %v341_v21 }
 0x368   :  { %369 = vrot.lane.b32.xlu2 %v364_v23, %s1043_s3 }
 0x3c2   :  { %v370_v29 = vpop.permute.xlu2 %369 }
 0x3c3   :  { %v374_v31 = vadd.f32 %v370_v29, %v354_v15 }
 0x3c5   :  { %990 = vtanh.f32 %v374_v31 }
 0x3cb   :  { %v991_v32 = vpop.eup %990 }
 0x3cc   :  { %381 = vrot.lane.b32.xlu1 %v991_v32, %s1043_s3 }
 0x3d2   :  { %v368_v36 = vpop.permute.xlu1 %367 }
 0x3d3   :  { %v373_v37 = vadd.f32 %v368_v36, %v353_v33 }
 0x3d4   :  { %404 = vrot.lane.b32.xlu1 %v374_v31, %s1044_s25 }
 0x3d5   :  { %992 = vtanh.f32 %v373_v37 }
 0x3db   :  { %v993_v39 = vpop.eup %992 }
 0x3dc   :  { %379 = vrot.lane.b32.xlu0 %v993_v39, %s1043_s3 }
 0x3e4   :  { %402 = vrot.lane.b32.xlu0 %v373_v37, %s1044_s25 }
 0x43e   :  { %v382_v41 = vpop.permute.xlu1 %381 }
 0x43f   :  { %v386_v44 = vmul.f32 %v382_v41, %v341_v21 }
 0x446   :  { %v405_v5 = vpop.permute.xlu1 %404 }
 0x447   :  { %v409_v7 = vsel %vm389_vm0, %v405_v5, %v1206_v53 }
 0x44e   :  { %v380_v43 = vpop.permute.xlu0 %379 }
 0x44f   :  { %v385_v45 = vmul.f32 %v380_v43, %v326_v12 }
 0x451   :  { %v936_v46 = vpack.i.bf16 %v386_v44, %v385_v45 }
 0x453   :  { %937 = vrot.lane.b32.xlu2 %v936_v46, %s1045_s29 }
 0x456   :  { %v403_v49 = vpop.permute.xlu0 %402 }
 0x457   :  { %v408_v50 = vsel %vm388_vm6, %v403_v49, %v1183_v30 }
 0x458   :  { %477 = vrot.lane.b32.xlu1 %v408_v50, %s1043_s3 }
 0x4ad   :  { %v938_v51 = vpop.permute.xlu2 %937 }
 0x4ae   :  { %v940_v52 = vunpack.i.h.bf16 %v938_v51  ;;  %v939_v54 = vunpack.i.l.bf16 %v938_v51 }
 0x4b0   :  { %v1229_v55 = vsel %vm388_vm6, %v939_v54, %v1192_v35  ;;  %v1234_v56 = vsel %vm389_vm0, %v940_v52, %v1190_v34  ;;  %v110_v35 = vadd.f32 %v1140_v20, %v109_v59 }
 0x4b1   :  { %v415_v57 = vpack.c.bf16 %v1234_v56, %v1229_v55  ;;  %v941_v30 = vpack.i.bf16 %v1234_v56, %v1229_v55 }
 0x4b2   :  { %v880_v61 = vpack.c.bf16 %v110_v35, %v108_v60 }
 0x4b3   :  { %852 = vmatmul.msk.bf16.vlgmr.msra.gmra.mxu3 %vm157_vm12, %v415_v57 }
 0x4b4   :  { %v902_v62 = vunpack.c.l.bf16 %v880_v61  ;;  %v903_v34 = vunpack.c.h.bf16 %v880_v61 }
 0x4ca   :  { %v1255_v47 = vpop.permute.xlu1 %477 }
 0x536   :  { %v428_v63 = vpop.f32.mrf.mxu3 }
 0x537   :  { %v433_v0 = vadd.f32 %v902_v62, %v428_v63 }
 0x539   :  { %994 = vtanh.f32 %v433_v0  ;;  %v853_v8 = vmul.f32 -1.442695, %v433_v0 }
 0x53e   :  { %v430_v1 = vpop.f32.mrf.mxu3 }
 0x53f   :  { %v995_v2 = vpop.eup %994  ;;  %v434_v4 = vadd.f32 %v903_v34, %v430_v1 }
 0x540   :  { %487 = vrot.lane.b32.xlu2 %v995_v2, %s1043_s3 }
 0x541   :  { %996 = vtanh.f32 %v434_v4  ;;  %v854_v16 = vmul.f32 -1.442695, %v434_v4  ;;  %v906_v4 = vunpack.c.l.bf16 %v1146_v28 }
 0x542   :  { %998 = vpow2.f32 %v853_v8 }
 0x547   :  { %v997_v6 = vpop.eup %996 }
 0x548   :  { %489 = vrot.lane.b32.xlu0 %v997_v6, %s1043_s3  ;;  %479 = vrot.lane.b32.xlu2 %v409_v7, %s1043_s3  ;;  %v999_v9 = vpop.eup %998  ;;  %v907_v7 = vunpack.c.h.bf16 %v1146_v28 }
 0x549   :  { %v441_v10 = vadd.f32 1.0, %v999_v9 }
 0x54b   :  { %1000 = vrcp.f32 %v441_v10  ;;  %v454_v19 = vand.u32 2147483648, %v441_v10  ;;  %vm448_vm8 = vweird.f32 %v441_v10  ;;  %v452_v53 = vand.u32 2147483647, %v441_v10 }
 0x54c   :  { %1002 = vpow2.f32 %v854_v16 }
 0x54d   :  { %v455_v23 = vor.u32 1.1754944e-38, %v454_v19  ;;  %vm453_vm11 = vcmp.eq.f32.partialorder %v452_v53, 8.507059e+37 }
 0x551   :  { %v1001_v12 = vpop.eup %1000 }
 0x552   :  { %v444_v13 = vmul.f32 %v1001_v12, %v441_v10  ;;  %vm449_vm7 = vweird.f32 %v1001_v12  ;;  %v1003_v21 = vpop.eup %1002 }
 0x553   :  { %vm450_vm10 = vmor %vm448_vm8, %vm449_vm7  ;;  %v442_v24 = vadd.f32 1.0, %v1003_v21 }
 0x554   :  { %v445_v14 = vsub.f32 1.0, %v444_v13 }
 0x555   :  { %1004 = vrcp.f32 %v442_v24  ;;  %v469_v39 = vand.u32 2147483648, %v442_v24  ;;  %vm463_vm14 = vweird.f32 %v442_v24  ;;  %v467_v40 = vand.u32 2147483647, %v442_v24 }
 0x556   :  { %v446_v17 = vmul.f32 %v1001_v12, %v445_v14 }
 0x557   :  { %v470_v43 = vor.u32 1.1754944e-38, %v469_v39  ;;  %vm468_vm1 = vcmp.eq.f32.partialorder %v467_v40, 8.507059e+37 }
 0x558   :  { %v447_v18 = vadd.f32 %v1001_v12, %v446_v17 }
 0x55a   :  { %v451_v22 = vsel %vm450_vm10, %v1001_v12, %v447_v18 }
 0x55b   :  { %v456_v15 = vsel %vm453_vm11, %v455_v23, %v451_v22  ;;  %v1005_v31 = vpop.eup %1004 }
 0x55c   :  { %v459_v32 = vmul.f32 %v1005_v31, %v442_v24  ;;  %vm464_vm13 = vweird.f32 %v1005_v31  ;;  %v483_v48 = vmul.f32 %v1255_v47, %v456_v15 }
 0x55d   :  { %vm465_vm15 = vmor %vm463_vm14, %vm464_vm13 }
 0x55e   :  { %v460_v33 = vsub.f32 1.0, %v459_v32 }
 0x560   :  { %v461_v36 = vmul.f32 %v1005_v31, %v460_v33 }
 0x562   :  { %v462_v37 = vadd.f32 %v1005_v31, %v461_v36 }
 0x564   :  { %v466_v41 = vsel %vm465_vm15, %v1005_v31, %v462_v37 }
 0x565   :  { %v471_v44 = vsel %vm468_vm1, %v470_v43, %v466_v41 }
 0x59a   :  { %v488_v11 = vpop.permute.xlu2 %487 }
 0x59b   :  { %v493_v29 = vmul.f32 %v488_v11, %v456_v15 }
 0x59d   :  { %497 = vrot.lane.b32.xlu0 %v493_v29, %s1043_s3 }
 0x5a2   :  { %v1262_v52 = vpop.permute.xlu2 %479 }
 0x5a3   :  { %v484_v54 = vmul.f32 %v1262_v52, %v471_v44 }
 0x5ba   :  { %v490_v45 = vpop.permute.xlu0 %489 }
 0x5bb   :  { %v494_v46 = vmul.f32 %v490_v45, %v471_v44 }
 0x5bd   :  { %499 = vrot.lane.b32.xlu1 %v494_v46, %s1043_s3 }
 0x5c5   :  { %942 = vrot.lane.b32.xlu1 %v941_v30, %s1045_s29 }
 0x60f   :  { %v498_v49 = vpop.permute.xlu0 %497 }
 0x610   :  { %v1258_v50 = vadd.f32 %v498_v49, %v483_v48 }
 0x612   :  { %1006 = vtanh.f32 %v1258_v50 }
 0x618   :  { %v1007_v51 = vpop.eup %1006 }
 0x619   :  { %509 = vrot.lane.b32.xlu2 %v1007_v51, %s1043_s3 }
 0x62f   :  { %v500_v57 = vpop.permute.xlu1 %499 }
 0x630   :  { %v1265_v58 = vadd.f32 %v500_v57, %v484_v54  ;;  %v529_v54 = vsel %vm517_vm2, %v1258_v50, %v1255_v47 }
 0x632   :  { %1008 = vtanh.f32 %v1265_v58 }
 0x637   :  { %v943_v30 = vpop.permute.xlu1 %942 }
 0x638   :  { %v1009_v55 = vpop.eup %1008  ;;  %v945_v35 = vunpack.i.h.bf16 %v943_v30  ;;  %v944_v61 = vunpack.i.l.bf16 %v943_v30 }
 0x639   :  { %511 = vrot.lane.b32.xlu0 %v1009_v55, %s1043_s3 }
 0x673   :  { %v510_v56 = vpop.permute.xlu2 %509 }
 0x674   :  { %v515_v59 = vmul.f32 %v510_v56, %v456_v15 }
 0x676   :  { %v1273_v63 = vsel %vm517_vm2, %v515_v59, %v944_v61  ;;  %v530_v59 = vsel %vm518_vm3, %v1265_v58, %v1262_v52  ;;  %v1048_v52 = vmov 1  }
 0x677   :  { %v633_v58 = vsel %vm152_vm9, 3, %v1048_v52 }
 0x678   :  { %vm634_vm13 = vcmp.gt.s32.totalorder %v1178_v27, %v633_v58  ;;  %vm635_vm14 = vcmp.gt.s32.totalorder %v1172_v25, %v633_v58 }
 0x6ab   :  { %v512_v60 = vpop.permute.xlu0 %511 }
 0x6ac   :  { %v516_v62 = vmul.f32 %v512_v60, %v471_v44 }
 0x6ae   :  { %v1277_v0 = vsel %vm518_vm3, %v516_v62, %v945_v35 }
 0x6af   :  { %v536_v34 = vpack.c.bf16 %v1277_v0, %v1273_v63  ;;  %v951_v1 = vpack.i.bf16 %v1277_v0, %v1273_v63 }
 0x6b1   :  { %538 = vrot.lane.b32.xlu2 %v536_v34, %s1045_s29 }
 0x70b   :  { %v539_v2 = vpop.permute.xlu2 %538 }
 0x70c   :  { %855 = vmatmul.msk.bf16.vlgmr.msra.gmra.mxu1 %vm157_vm12, %v539_v2 }
 0x789   :  { %v552_v5 = vpop.f32.mrf.mxu1 }
 0x78a   :  { %v557_v6 = vadd.f32 %v906_v4, %v552_v5 }
 0x78c   :  { %1010 = vtanh.f32 %v557_v6  ;;  %v856_v13 = vmul.f32 -1.442695, %v557_v6 }
 0x791   :  { %v554_v8 = vpop.f32.mrf.mxu1 }
 0x792   :  { %v1011_v9 = vpop.eup %1010  ;;  %v558_v10 = vadd.f32 %v907_v7, %v554_v8 }
 0x793   :  { %603 = vrot.lane.b32.xlu0 %v1011_v9, %s1043_s3 }
 0x794   :  { %1012 = vtanh.f32 %v558_v10  ;;  %v857_v14 = vmul.f32 -1.442695, %v558_v10 }
 0x795   :  { %1014 = vpow2.f32 %v856_v13 }
 0x796   :  { %1016 = vpow2.f32 %v857_v14 }
 0x79a   :  { %v1013_v12 = vpop.eup %1012 }
 0x79b   :  { %605 = vrot.lane.b32.xlu1 %v1013_v12, %s1043_s3  ;;  %v1015_v16 = vpop.eup %1014 }
 0x79c   :  { %v565_v17 = vadd.f32 1.0, %v1015_v16  ;;  %v1017_v18 = vpop.eup %1016  ;;  %v118_v16 = vadd.f32 %v1140_v20, %v1197_v38 }
 0x79d   :  { %v566_v19 = vadd.f32 1.0, %v1017_v18 }
 0x79e   :  { %1018 = vrcp.f32 %v565_v17  ;;  %v578_v29 = vand.u32 2147483648, %v565_v17  ;;  %vm572_vm5 = vweird.f32 %v565_v17  ;;  %v576_v31 = vand.u32 2147483647, %v565_v17 }
 0x79f   :  { %1020 = vrcp.f32 %v566_v19  ;;  %v593_v43 = vand.u32 2147483648, %v566_v19  ;;  %vm587_vm8 = vweird.f32 %v566_v19  ;;  %v591_v44 = vand.u32 2147483647, %v566_v19 }
 0x7a0   :  { %v579_v36 = vor.u32 1.1754944e-38, %v578_v29  ;;  %vm577_vm0 = vcmp.eq.f32.partialorder %v576_v31, 8.507059e+37 }
 0x7a1   :  { %v594_v46 = vor.u32 1.1754944e-38, %v593_v43  ;;  %vm592_vm11 = vcmp.eq.f32.partialorder %v591_v44, 8.507059e+37 }
 0x7a4   :  { %v1019_v53 = vpop.eup %1018 }
 0x7a5   :  { %v568_v28 = vmul.f32 %v1019_v53, %v565_v17  ;;  %v1021_v22 = vpop.eup %1020  ;;  %vm573_vm4 = vweird.f32 %v1019_v53  ;;  %v120_v17 = vadd.f32 %v1140_v20, %v1201_v42 }
 0x7a6   :  { %v583_v24 = vmul.f32 %v1021_v22, %v566_v19  ;;  %vm574_vm6 = vmor %vm572_vm5, %vm573_vm4  ;;  %vm588_vm7 = vweird.f32 %v1021_v22 }
 0x7a7   :  { %v569_v21 = vsub.f32 1.0, %v568_v28  ;;  %vm589_vm10 = vmor %vm587_vm8, %vm588_vm7  ;;  %v890_v18 = vpack.c.bf16 %v120_v17, %v118_v16  ;;  %v793_v16 = vld [vmem:[%s1371_s5 + $0x8] sm:$0xff] }
 0x7a8   :  { %v584_v15 = vsub.f32 1.0, %v583_v24 }
 0x7a9   :  { %v570_v23 = vmul.f32 %v1019_v53, %v569_v21  ;;  %v910_v19 = vunpack.c.l.bf16 %v890_v18  ;;  %v911_v21 = vunpack.c.h.bf16 %v890_v18 }
 0x7aa   :  { %v585_v33 = vmul.f32 %v1021_v22, %v584_v15 }
 0x7ab   :  { %v571_v11 = vadd.f32 %v1019_v53, %v570_v23 }
 0x7ac   :  { %v586_v41 = vadd.f32 %v1021_v22, %v585_v33 }
 0x7ad   :  { %v575_v32 = vsel %vm574_vm6, %v1019_v53, %v571_v11 }
 0x7ae   :  { %v580_v39 = vsel %vm577_vm0, %v579_v36, %v575_v32  ;;  %v590_v45 = vsel %vm589_vm10, %v1021_v22, %v586_v41 }
 0x7af   :  { %v595_v49 = vsel %vm592_vm11, %v594_v46, %v590_v45  ;;  %v599_v57 = vmul.f32 %v580_v39, %v529_v54 }
 0x7b0   :  { %v600_v47 = vmul.f32 %v595_v49, %v530_v59 }
 0x805   :  { %v604_v37 = vpop.permute.xlu0 %603 }
 0x806   :  { %v609_v40 = vmul.f32 %v604_v37, %v580_v39 }
 0x808   :  { %613 = vrot.lane.b32.xlu2 %v609_v40, %s1043_s3 }
 0x80d   :  { %v606_v48 = vpop.permute.xlu1 %605 }
 0x80e   :  { %v610_v51 = vmul.f32 %v606_v48, %v595_v49 }
 0x810   :  { %615 = vrot.lane.b32.xlu0 %v610_v51, %s1043_s3 }
 0x862   :  { %v614_v55 = vpop.permute.xlu2 %613 }
 0x863   :  { %v619_v56 = vadd.f32 %v614_v55, %v599_v57 }
 0x865   :  { %1022 = vtanh.f32 %v619_v56 }
 0x86b   :  { %v1023_v30 = vpop.eup %1022 }
 0x86c   :  { %625 = vrot.lane.b32.xlu1 %v1023_v30, %s1043_s3 }
 0x874   :  { %952 = vrot.lane.b32.xlu1 %v951_v1, %s1045_s29 }
 0x87c   :  { %664 = vrot.lane.b32.xlu1 %v529_v54, %s1044_s25 }
 0x882   :  { %v616_v50 = vpop.permute.xlu0 %615 }
 0x883   :  { %v620_v60 = vadd.f32 %v616_v50, %v600_v47 }
 0x885   :  { %1024 = vtanh.f32 %v620_v60 }
 0x88b   :  { %v1025_v35 = vpop.eup %1024 }
 0x88c   :  { %627 = vrot.lane.b32.xlu2 %v1025_v35, %s1043_s3 }
 0x894   :  { %656 = vrot.lane.b32.xlu2 %v619_v56, %s1044_s25 }
 0x89c   :  { %666 = vrot.lane.b32.xlu2 %v530_v59, %s1044_s25 }
 0x8de   :  { %v626_v61 = vpop.permute.xlu1 %625 }
 0x8df   :  { %v631_v0 = vmul.f32 %v626_v61, %v580_v39 }
 0x8e6   :  { %v953_v62 = vpop.permute.xlu1 %952  ;;  %v628_v63 = vpop.permute.xlu2 %627 }
 0x8e7   :  { %v632_v34 = vmul.f32 %v628_v63, %v595_v49  ;;  %v955_v7 = vunpack.i.h.bf16 %v953_v62  ;;  %v954_v8 = vunpack.i.l.bf16 %v953_v62 }
 0x8e9   :  { %v946_v1 = vpack.i.bf16 %v632_v34, %v631_v0 }
 0x8eb   :  { %947 = vrot.lane.b32.xlu0 %v946_v1, %s1045_s29 }
 0x8ee   :  { %v665_v2 = vpop.permute.xlu1 %664  ;;  %v657_v4 = vpop.permute.xlu2 %656 }
 0x8ef   :  { %v670_v5 = vsel %vm634_vm13, %v657_v4, %v665_v2 }
 0x8f0   :  { %739 = vrot.lane.b32.xlu2 %v670_v5, %s1043_s3 }
 0x8f3   :  { %658 = vrot.lane.b32.xlu0 %v620_v60, %s1044_s25 }
 0x8f6   :  { %v667_v15 = vpop.permute.xlu2 %666 }
 0x94a   :  { %v740_v0 = vpop.permute.xlu2 %739 }
 0x95d   :  { %v948_v6 = vpop.permute.xlu0 %947 }
 0x95e   :  { %v950_v9 = vunpack.i.h.bf16 %v948_v6  ;;  %v949_v10 = vunpack.i.l.bf16 %v948_v6 }
 0x960   :  { %v1317_v12 = vsel %vm635_vm14, %v950_v9, %v955_v7  ;;  %v1319_v13 = vsel %vm634_vm13, %v949_v10, %v954_v8  ;;  %v794_v8 = vld [vmem:[%s1371_s5 + $0x10] sm:$0xff]  ;;  %v795_v9 = vld [vmem:[%s1371_s5 + $0x18] sm:$0xff]  ;;  %v792_v10 = vld [vmem:[%s1371_s5] sm:$0xff] }
 0x961   :  { %v677_v14 = vpack.c.bf16 %v1317_v12, %v1319_v13  ;;  %v797_v17 = vpack.c.bf16 %v793_v16, %v792_v10 }
 0x963   :  { %858 = vmatmul.msk.bf16.vlgmr.msra.gmra.mxu2 %vm157_vm12, %v677_v14  ;;  %v798_v14 = vpack.c.bf16 %v795_v9, %v794_v8 }
 0x965   :  { %v659_v11 = vpop.permute.xlu0 %658  ;;  %808 = vmatpush.bf16.msrb.mxu3 %v798_v14 }
 0x966   :  { %v671_v38 = vsel %vm635_vm14, %v659_v11, %v667_v15 }
 0x969   :  { %809 = vmatpush.bf16.msrb.mxu3 %v797_v17 }
 0x9e6   :  { %v690_v53 = vpop.f32.mrf.mxu2 }
 0x9e7   :  { %v695_v28 = vadd.f32 %v910_v19, %v690_v53 }
 0x9e9   :  { %1026 = vtanh.f32 %v695_v28  ;;  %v859_v20 = vmul.f32 -1.442695, %v695_v28 }
 0x9ee   :  { %v692_v22 = vpop.f32.mrf.mxu2 }
 0x9ef   :  { %v1027_v23 = vpop.eup %1026  ;;  %v696_v24 = vadd.f32 %v911_v21, %v692_v22  ;;  %v779_v22 = vsel %vm152_vm9, 4, %v1042_v3 }
 0x9f0   :  { %749 = vrot.lane.b32.xlu0 %v1027_v23, %s1043_s3  ;;  %vm780_vm7 = vcmp.gt.s32.totalorder %v1178_v27, %v779_v22  ;;  %vm781_vm8 = vcmp.gt.s32.totalorder %v1172_v25, %v779_v22 }
 0x9f1   :  { %1028 = vtanh.f32 %v696_v24  ;;  %v860_v42 = vmul.f32 -1.442695, %v696_v24 }
 0x9f2   :  { %1030 = vpow2.f32 %v859_v20 }
 0x9f3   :  { %1032 = vpow2.f32 %v860_v42 }
 0x9f7   :  { %v1029_v29 = vpop.eup %1028 }
 0x9f8   :  { %751 = vrot.lane.b32.xlu1 %v1029_v29, %s1043_s3  ;;  %741 = vrot.lane.b32.xlu0 %v671_v38, %s1043_s3  ;;  %v1031_v31 = vpop.eup %1030 }
 0x9f9   :  { %v703_v32 = vadd.f32 1.0, %v1031_v31  ;;  %v1033_v33 = vpop.eup %1032 }
 0x9fa   :  { %v704_v36 = vadd.f32 1.0, %v1033_v33 }
 0x9fb   :  { %1034 = vrcp.f32 %v703_v32  ;;  %v716_v48 = vand.u32 2147483648, %v703_v32  ;;  %vm710_vm1 = vweird.f32 %v703_v32  ;;  %v714_v49 = vand.u32 2147483647, %v703_v32 }
 0x9fc   :  { %1036 = vrcp.f32 %v704_v36  ;;  %v731_v47 = vand.u32 2147483648, %v704_v36  ;;  %vm725_vm5 = vweird.f32 %v704_v36  ;;  %v729_v50 = vand.u32 2147483647, %v704_v36 }
 0x9fd   :  { %v717_v57 = vor.u32 1.1754944e-38, %v716_v48  ;;  %vm715_vm3 = vcmp.eq.f32.partialorder %v714_v49, 8.507059e+37 }
 0x9fe   :  { %v732_v35 = vor.u32 1.1754944e-38, %v731_v47  ;;  %vm730_vm0 = vcmp.eq.f32.partialorder %v729_v50, 8.507059e+37 }
 0xa01   :  { %v1035_v37 = vpop.eup %1034 }
 0xa02   :  { %v706_v39 = vmul.f32 %v1035_v37, %v703_v32  ;;  %v1037_v41 = vpop.eup %1036  ;;  %vm711_vm15 = vweird.f32 %v1035_v37 }
 0xa03   :  { %v721_v44 = vmul.f32 %v1037_v41, %v704_v36  ;;  %vm712_vm2 = vmor %vm710_vm1, %vm711_vm15  ;;  %vm726_vm4 = vweird.f32 %v1037_v41 }
 0xa04   :  { %v707_v40 = vsub.f32 1.0, %v706_v39  ;;  %vm727_vm6 = vmor %vm725_vm5, %vm726_vm4 }
 0xa05   :  { %v722_v46 = vsub.f32 1.0, %v721_v44 }
 0xa06   :  { %v708_v43 = vmul.f32 %v1035_v37, %v707_v40 }
 0xa07   :  { %v723_v54 = vmul.f32 %v1037_v41, %v722_v46 }
 0xa08   :  { %v709_v45 = vadd.f32 %v1035_v37, %v708_v43 }
 0xa09   :  { %v724_v59 = vadd.f32 %v1037_v41, %v723_v54 }
 0xa0a   :  { %v713_v51 = vsel %vm712_vm2, %v1035_v37, %v709_v45 }
 0xa0b   :  { %v718_v56 = vsel %vm715_vm3, %v717_v57, %v713_v51  ;;  %v728_v60 = vsel %vm727_vm6, %v1037_v41, %v724_v59 }
 0xa0c   :  { %v733_v62 = vsel %vm730_vm0, %v732_v35, %v728_v60  ;;  %v745_v4 = vmul.f32 %v740_v0, %v718_v56 }
 0xa62   :  { %v750_v55 = vpop.permute.xlu0 %749 }
 0xa63   :  { %v755_v30 = vmul.f32 %v750_v55, %v718_v56 }
 0xa65   :  { %759 = vrot.lane.b32.xlu1 %v755_v30, %s1043_s3 }
 0xa6a   :  { %v752_v61 = vpop.permute.xlu1 %751  ;;  %v742_v34 = vpop.permute.xlu0 %741 }
 0xa6b   :  { %v756_v63 = vmul.f32 %v752_v61, %v733_v62  ;;  %v746_v1 = vmul.f32 %v742_v34, %v733_v62 }
 0xa6d   :  { %761 = vrot.lane.b32.xlu2 %v756_v63, %s1043_s3 }
 0xac7   :  { %v762_v52 = vpop.permute.xlu2 %761 }
 0xac8   :  { %v766_v58 = vadd.f32 %v762_v52, %v746_v1 }
 0xaca   :  { %1038 = vtanh.f32 %v766_v58 }
 0xad0   :  { %v1039_v2 = vpop.eup %1038 }
 0xad1   :  { %773 = vrot.lane.b32.xlu1 %v1039_v2, %s1043_s3 }
 0xad7   :  { %v760_v5 = vpop.permute.xlu1 %759 }
 0xad8   :  { %v765_v6 = vadd.f32 %v760_v5, %v745_v4 }
 0xada   :  { %1040 = vtanh.f32 %v765_v6 }
 0xae0   :  { %v1041_v7 = vpop.eup %1040 }
 0xae1   :  { %771 = vrot.lane.b32.xlu0 %v1041_v7, %s1043_s3 }
 0xb43   :  { %v774_v18 = vpop.permute.xlu1 %773 }
 0xb44   :  { %v778_v53 = vmul.f32 %v774_v18, %v733_v62 }
 0xb53   :  { %v772_v19 = vpop.permute.xlu0 %771 }
 0xb54   :  { %v777_v28 = vmul.f32 %v772_v19, %v718_v56 }
 0xb56   :  { %v956_v21 = vpack.i.bf16 %v778_v53, %v777_v28 }
 0xb58   :  { %957 = vrot.lane.b32.xlu2 %v956_v21, %s1045_s29 }
 0xbb2   :  { %v958_v23 = vpop.permute.xlu2 %957 }
 0xbb3   :  { %v960_v24 = vunpack.i.h.bf16 %v958_v23  ;;  %v959_v11 = vunpack.i.l.bf16 %v958_v23 }
 0xbb5   :  { %v791_v15 = vsel %vm781_vm8, %v960_v24, %v1317_v12  ;;  %v790_v29 = vsel %vm780_vm7, %v959_v11, %v1319_v13 }
 0xbb6   :  { %v796_v38 = vpack.c.bf16 %v791_v15, %v790_v29 }
 0xbb8   :  { %861 = vmatmul.msk.bf16.vlgmr.msrb.gmra.mxu3 %vm157_vm12, %v796_v38 }
 0xc3b   :  { %v811_v20 = vpop.f32.mrf.mxu3 }
 0xc3c   :  { %816 = vst.msk [vmem:[%s1372_s6] sm:$0xff] %vm157_vm12, %v811_v20 }
 0xc43   :  { %v813_v3 = vpop.f32.mrf.mxu3 }
 0xc44   :  { %817 = vst.msk [vmem:[%s1372_s6 + $0x8] sm:$0xff] %vm157_vm12, %v813_v3 }

// kernel: ans_seq_encoder_forward.4
= control target key start
LH: loop header
LB: loop body
LE: loop exit
PB: predicated region body
PF: predicated region fallthrough
CT: control target
= control target key end

     0   :  { %v1255_v3 = vmov 0   ;;  %vm85_vm0 = vcmask 392192   ;;  %s1256_s27 = smov 32   ;;  %s1257_s10 = smov 96   ;;  %vm182_vm12 = vcmask 261120   ;;  %s1640_s3 = inlined_call_operand.vmem [shape: f32[48,128], index: 3, kind: input, shape index: {}]   ;;  %s1641_s5 = inlined_call_operand.vmem [shape: f32[32,128], index: 5, kind: input, shape index: {}]   ;;  %s1642_s4 = inlined_call_operand.vmem [shape: f32[1,128], index: 4, kind: input, shape index: {}]   ;;  %s1643_s0 = inlined_call_operand.vmem [shape: bf16[6,16,48], index: 0, kind: input, shape index: {}]   ;;  %s1644_s1 = inlined_call_operand.vmem [shape: s32[16,1], index: 1, kind: input, shape index: {}]   ;;  %s1645_s6 = inlined_call_operand.vmem [shape: f32[32,32], index: 6, kind: input, shape index: {}]   ;;  %s1646_s7 = inlined_call_operand.vmem [shape: f32[16,32], index: 7, kind: input, shape index: {}]   ;;  %s1647_s2 = inlined_call_operand.vmem [shape: f32[16,16], index: 2, kind: input, shape index: {}]   ;;  %s1648_s8 = inlined_call_operand.vmem [shape: f32[16,32], index: 8, kind: output, shape index: {}]  }
   0x1   :  { %v46_v0 = vld [vmem:[%s1640_s3 + $0x20] sm:$0xff]  ;;  %v47_v1 = vld [vmem:[%s1640_s3 + $0x28] sm:$0xff]  ;;  %v44_v2 = vld [vmem:[%s1640_s3 + $0x10] sm:$0xff]  ;;  %1126 = vset.pattern.permute.xlu1 %v1255_v3  ;;  %1125 = vset.pattern.permute.xlu0 %v1255_v3  ;;  %s1258_s12 = smov 64  }
   0x2   :  { %v50_v4 = vpack.c.bf16 %v47_v1, %v46_v0  ;;  %v45_v5 = vld [vmem:[%s1640_s3 + $0x18] sm:$0xff]  ;;  %v169_v6 = vld [vmem:[%s1641_s5 + $0x10] sm:$0xff]  ;;  %v167_v10 = vld [vmem:[%s1641_s5] sm:$0xff] }
   0x3   :  { %v170_v7 = vld [vmem:[%s1641_s5 + $0x18] sm:$0xff]  ;;  %v49_v8 = vpack.c.bf16 %v45_v5, %v44_v2  ;;  %v168_v11 = vld [vmem:[%s1641_s5 + $0x8] sm:$0xff]  ;;  %v42_v12 = vld [vmem:[%s1640_s3] sm:$0xff] }
   0x4   :  { %109 = vmatpush.bf16.msra.mxu0 %v50_v4  ;;  %v1329_v9 = vpack.c.bf16 %v170_v7, %v169_v6  ;;  %1113 = vmatpush.bf16.msra.mxu3 %v50_v4  ;;  %v43_v13 = vld [vmem:[%s1640_s3 + $0x8] sm:$0xff]  ;;  %v1344_v14 = vpack.c.bf16 %v168_v11, %v167_v10  ;;  %v1048_v16 = vld [vmem:[%s1643_s0] sm:$0xff] }
   0x5   :  { %v48_v15 = vpack.c.bf16 %v43_v13, %v42_v12  ;;  %v1363_v18 = vld [vmem:[%s1642_s4] ss:$0 sm:$0xff]  ;;  %v174_v61 = vld [vmem:[%s1644_s1 + $0x8] sm:$0xff] }
   0x6   :  { %192 = vmatpush.bf16.msra.mxu1 %v1329_v9  ;;  %320 = vmatpush.bf16.msra.mxu2 %v1329_v9  ;;  %v173_v62 = vld [vmem:[%s1644_s1] sm:$0xff] }
   0x8   :  { %110 = vmatpush.bf16.msra.mxu0 %v49_v8  ;;  %1114 = vmatpush.bf16.msra.mxu3 %v49_v8  ;;  %v1049_v8 = vld [vmem:[%s1643_s0 + $0x8] sm:$0xff] }
   0xa   :  { %193 = vmatpush.bf16.msra.mxu1 %v1344_v14  ;;  %321 = vmatpush.bf16.msra.mxu2 %v1344_v14 }
   0xc   :  { %111 = vmatpush.bf16.msra.mxu0 %v48_v15  ;;  %1115 = vmatpush.bf16.msra.mxu3 %v48_v15  ;;  %v175_v15 = vlaneseq }
   0xd   :  { %194 = vmatmul.bf16.vlgmr.msra.gmra.mxu1 %v1255_v3 }
   0xe   :  { %580 = vmatpush.bf16.msrb.mxu1 %v1329_v9  ;;  %710 = vmatpush.bf16.msrb.mxu2 %v1329_v9 }
   0xf   :  { %1023 = vmatmul.msk.bf16.vlgmr.msra.gmra.mxu0 %vm85_vm0, %v1048_v16 }
  0x10   :  { %450 = vmatpush.bf16.msrb.mxu3 %v1329_v9 }
  0x12   :  { %581 = vmatpush.bf16.msrb.mxu1 %v1344_v14  ;;  %711 = vmatpush.bf16.msrb.mxu2 %v1344_v14 }
  0x14   :  { %451 = vmatpush.bf16.msrb.mxu3 %v1344_v14 }
  0x1f   :  { %1024 = vmatmul.msk.bf16.gmra.mxu0 %vm85_vm0, %v1049_v8 }
  0x8a   :  { %v195_v21 = vpop.f32.mrf.mxu1 }
  0x8c   :  { %v113_v17 = vpop.f32.mrf.mxu0 }
  0x8d   :  { %v114_v20 = vadd.f32 %v1363_v18, %v113_v17  ;;  %v1385_v17 = vand.u32 127, %v175_v15 }
  0x8f   :  { %vm177_vm9 = vcmp.lt.s32.totalorder %v1385_v17, 16 }
  0x92   :  { %v197_v27 = vpop.f32.mrf.mxu1 }
  0x94   :  { %v115_v19 = vpop.f32.mrf.mxu0 }
  0x95   :  { %v116_v22 = vadd.f32 %v1363_v18, %v115_v19 }
  0x97   :  { %v1057_v23 = vpack.c.bf16 %v116_v22, %v114_v20 }
  0x99   :  { %v1086_v24 = vunpack.c.l.bf16 %v1057_v23  ;;  %v1087_v26 = vunpack.c.h.bf16 %v1057_v23 }
  0x9b   :  { %v200_v25 = vadd.f32 %v1086_v24, %v195_v21  ;;  %v201_v28 = vadd.f32 %v1087_v26, %v197_v27  ;;  %v1259_v21 = vmov 5  }
  0x9c   :  { %v276_v22 = vsel %vm177_vm9, 0, %v1259_v21 }
  0x9d   :  { %1158 = vtanh.f32 %v200_v25  ;;  %v1029_v31 = vmul.f32 -1.442695, %v200_v25  ;;  %v1030_v32 = vmul.f32 -1.442695, %v201_v28 }
  0x9e   :  { %1160 = vtanh.f32 %v201_v28 }
  0x9f   :  { %1162 = vpow2.f32 %v1029_v31  ;;  %v118_v31 = vpop.f32.mrf.mxu0 }
  0xa0   :  { %1164 = vpow2.f32 %v1030_v32 }
  0xa3   :  { %v1159_v29 = vpop.eup %1158 }
  0xa4   :  { %246 = vrot.lane.b32.xlu0 %v1159_v29, %s1256_s27  ;;  %v1161_v30 = vpop.eup %1160 }
  0xa5   :  { %v1163_v33 = vpop.eup %1162 }
  0xa6   :  { %v208_v34 = vadd.f32 1.0, %v1163_v33  ;;  %v1165_v35 = vpop.eup %1164  ;;  %v119_v33 = vadd.f32 %v1363_v18, %v118_v31 }
  0xa7   :  { %v209_v36 = vadd.f32 1.0, %v1165_v35  ;;  %v120_v32 = vpop.f32.mrf.mxu0 }
  0xa8   :  { %1166 = vrcp.f32 %v208_v34  ;;  %v221_v45 = vand.u32 2147483648, %v208_v34  ;;  %vm215_vm2 = vweird.f32 %v208_v34  ;;  %v219_v46 = vand.u32 2147483647, %v208_v34 }
  0xa9   :  { %1168 = vrcp.f32 %v209_v36  ;;  %v236_v54 = vand.u32 2147483648, %v209_v36  ;;  %vm230_vm6 = vweird.f32 %v209_v36  ;;  %v234_v55 = vand.u32 2147483647, %v209_v36 }
  0xaa   :  { %v222_v49 = vor.u32 1.1754944e-38, %v221_v45  ;;  %vm220_vm4 = vcmp.eq.f32.partialorder %v219_v46, 8.507059e+37 }
  0xab   :  { %v237_v57 = vor.u32 1.1754944e-38, %v236_v54  ;;  %vm235_vm8 = vcmp.eq.f32.partialorder %v234_v55, 8.507059e+37 }
  0xac   :  { %248 = vrot.lane.b32.xlu0 %v1161_v30, %s1256_s27 }
  0xae   :  { %v1167_v37 = vpop.eup %1166 }
  0xaf   :  { %v211_v38 = vmul.f32 %v1167_v37, %v208_v34  ;;  %v1169_v40 = vpop.eup %1168  ;;  %vm216_vm1 = vweird.f32 %v1167_v37  ;;  %v121_v34 = vadd.f32 %v1363_v18, %v120_v32  ;;  %v1052_v32 = vld [vmem:[%s1643_s0 + $0x20] sm:$0xff] }
  0xb0   :  { %v226_v42 = vmul.f32 %v1169_v40, %v209_v36  ;;  %vm217_vm3 = vmor %vm215_vm2, %vm216_vm1  ;;  %vm231_vm5 = vweird.f32 %v1169_v40  ;;  %1027 = vmatmul.msk.bf16.vlgmr.msra.gmra.mxu3 %vm85_vm0, %v1052_v32 }
  0xb1   :  { %v212_v39 = vsub.f32 1.0, %v211_v38  ;;  %vm232_vm7 = vmor %vm230_vm6, %vm231_vm5  ;;  %v1062_v35 = vpack.c.bf16 %v121_v34, %v119_v33  ;;  %v1050_v33 = vld [vmem:[%s1643_s0 + $0x10] sm:$0xff]  ;;  %840 = vmatpush.bf16.msra.mxu3 %v1329_v9  ;;  %v1053_v34 = vld [vmem:[%s1643_s0 + $0x28] sm:$0xff] }
  0xb2   :  { %v227_v44 = vsub.f32 1.0, %v226_v42  ;;  %1025 = vmatmul.msk.bf16.gmra.mxu0 %vm85_vm0, %v1050_v33 }
  0xb3   :  { %v213_v41 = vmul.f32 %v1167_v37, %v212_v39  ;;  %v1090_v36 = vunpack.c.l.bf16 %v1062_v35  ;;  %v1091_v39 = vunpack.c.h.bf16 %v1062_v35 }
  0xb4   :  { %v228_v48 = vmul.f32 %v1169_v40, %v227_v44  ;;  %278 = vperm.xlu0 %1125, %v173_v62  }
  0xb5   :  { %v214_v43 = vadd.f32 %v1167_v37, %v213_v41  ;;  %841 = vmatpush.bf16.msra.mxu3 %v1344_v14 }
  0xb6   :  { %v229_v53 = vadd.f32 %v1169_v40, %v228_v48 }
  0xb7   :  { %v218_v47 = vsel %vm217_vm3, %v1167_v37, %v214_v43 }
  0xb8   :  { %v223_v51 = vsel %vm220_vm4, %v222_v49, %v218_v47  ;;  %v233_v56 = vsel %vm232_vm7, %v1169_v40, %v229_v53 }
  0xb9   :  { %v238_v58 = vsel %vm235_vm8, %v237_v57, %v233_v56  ;;  %v242_v63 = vmul.f32 0.0, %v223_v51 }
  0xba   :  { %v243_v2 = vmul.f32 0.0, %v238_v58 }
  0xc0   :  { %1028 = vmatmul.msk.bf16.gmra.mxu3 %vm85_vm0, %v1053_v34 }
 0x116   :  { %v247_v50 = vpop.permute.xlu0 %246 }
 0x117   :  { %v252_v52 = vmul.f32 %v247_v50, %v223_v51 }
 0x119   :  { %256 = vrot.lane.b32.xlu1 %v252_v52, %s1256_s27 }
 0x11e   :  { %v249_v59 = vpop.permute.xlu0 %248 }
 0x11f   :  { %v253_v60 = vmul.f32 %v249_v59, %v238_v58 }
 0x121   :  { %258 = vrot.lane.b32.xlu1 %v253_v60, %s1256_s27 }
 0x126   :  { %v1391_v20 = vpop.permute.xlu0 %278 }
 0x127   :  { %vm283_vm10 = vcmp.gt.s32.totalorder %v1391_v20, %v276_v22 }
 0x129   :  { %281 = vperm.xlu1 %1126, %v174_v61  }
 0x18b   :  { %v257_v0 = vpop.permute.xlu1 %256 }
 0x18c   :  { %v262_v1 = vadd.f32 %v257_v0, %v242_v63 }
 0x18e   :  { %1170 = vtanh.f32 %v262_v1  ;;  %297 = vrot.lane.b32.xlu1 %v262_v1, %s1257_s10 }
 0x193   :  { %v259_v4 = vpop.permute.xlu1 %258 }
 0x194   :  { %v1171_v5 = vpop.eup %1170  ;;  %v263_v6 = vadd.f32 %v259_v4, %v243_v2 }
 0x195   :  { %268 = vrot.lane.b32.xlu2 %v1171_v5, %s1256_s27 }
 0x196   :  { %1172 = vtanh.f32 %v263_v6 }
 0x19b   :  { %v1387_v19 = vpop.permute.xlu1 %281 }
 0x19c   :  { %v1173_v7 = vpop.eup %1172  ;;  %vm284_vm11 = vcmp.gt.s32.totalorder %v1387_v19, %v276_v22 }
 0x19d   :  { %270 = vrot.lane.b32.xlu2 %v1173_v7, %s1256_s27 }
 0x1ef   :  { %v269_v10 = vpop.permute.xlu2 %268 }
 0x1f0   :  { %v274_v12 = vmul.f32 %v269_v10, %v223_v51 }
 0x1f7   :  { %v271_v11 = vpop.permute.xlu2 %270 }
 0x1f8   :  { %v275_v13 = vmul.f32 %v271_v11, %v238_v58 }
 0x1fa   :  { %v1127_v16 = vpack.i.bf16 %v275_v13, %v274_v12 }
 0x1fc   :  { %1128 = vrot.lane.b32.xlu2 %v1127_v16, %s1258_s12 }
 0x200   :  { %v298_v23 = vpop.permute.xlu1 %297 }
 0x201   :  { %v1396_v24 = vsel %vm283_vm10, %v298_v23, 0.0 }
 0x204   :  { %299 = vrot.lane.b32.xlu2 %v263_v6, %s1257_s10 }
 0x20c   :  { %372 = vrot.lane.b32.xlu2 %v1396_v24, %s1256_s27 }
 0x256   :  { %v1129_v25 = vpop.permute.xlu2 %1128 }
 0x257   :  { %v1131_v26 = vunpack.i.h.bf16 %v1129_v25  ;;  %v1130_v27 = vunpack.i.l.bf16 %v1129_v25 }
 0x259   :  { %v1403_v28 = vsel %vm284_vm11, %v1131_v26, 0.0  ;;  %v1405_v29 = vsel %vm283_vm10, %v1130_v27, 0.0 }
 0x25a   :  { %v310_v30 = vpack.c.bf16 %v1403_v28, %v1405_v29 }
 0x25c   :  { %1031 = vmatmul.msk.bf16.vlgmr.msra.gmra.mxu2 %vm182_vm12, %v310_v30 }
 0x25e   :  { %v300_v43 = vpop.permute.xlu2 %299 }
 0x25f   :  { %v1415_v45 = vsel %vm284_vm11, %v300_v43, 0.0 }
 0x266   :  { %v373_v15 = vpop.permute.xlu2 %372 }
 0x2df   :  { %v323_v37 = vpop.f32.mrf.mxu2 }
 0x2e0   :  { %v328_v38 = vadd.f32 %v1090_v36, %v323_v37 }
 0x2e2   :  { %1174 = vtanh.f32 %v328_v38  ;;  %v1032_v46 = vmul.f32 -1.442695, %v328_v38 }
 0x2e7   :  { %v325_v40 = vpop.f32.mrf.mxu2 }
 0x2e8   :  { %v1175_v41 = vpop.eup %1174  ;;  %v329_v42 = vadd.f32 %v1091_v39, %v325_v40  ;;  %v1260_v40 = vmov 4  }
 0x2e9   :  { %382 = vrot.lane.b32.xlu0 %v1175_v41, %s1256_s27  ;;  %v412_v41 = vsel %vm177_vm9, 1, %v1260_v40 }
 0x2ea   :  { %1176 = vtanh.f32 %v329_v42  ;;  %v1033_v47 = vmul.f32 -1.442695, %v329_v42  ;;  %vm413_vm6 = vcmp.gt.s32.totalorder %v1391_v20, %v412_v41  ;;  %vm414_vm7 = vcmp.gt.s32.totalorder %v1387_v19, %v412_v41 }
 0x2eb   :  { %1178 = vpow2.f32 %v1032_v46 }
 0x2ec   :  { %1180 = vpow2.f32 %v1033_v47 }
 0x2f0   :  { %v1177_v44 = vpop.eup %1176 }
 0x2f1   :  { %374 = vrot.lane.b32.xlu0 %v1415_v45, %s1256_s27  ;;  %384 = vrot.lane.b32.xlu1 %v1177_v44, %s1256_s27  ;;  %v1179_v48 = vpop.eup %1178 }
 0x2f2   :  { %v336_v49 = vadd.f32 1.0, %v1179_v48  ;;  %v1181_v50 = vpop.eup %1180  ;;  %v133_v48 = vpop.f32.mrf.mxu3 }
 0x2f3   :  { %v337_v51 = vadd.f32 1.0, %v1181_v50 }
 0x2f4   :  { %1182 = vrcp.f32 %v336_v49  ;;  %v349_v60 = vand.u32 2147483648, %v336_v49  ;;  %vm343_vm14 = vweird.f32 %v336_v49  ;;  %v347_v61 = vand.u32 2147483647, %v336_v49 }
 0x2f5   :  { %1184 = vrcp.f32 %v337_v51  ;;  %v364_v6 = vand.u32 2147483648, %v337_v51  ;;  %vm358_vm3 = vweird.f32 %v337_v51  ;;  %v362_v7 = vand.u32 2147483647, %v337_v51 }
 0x2f6   :  { %v350_v0 = vor.u32 1.1754944e-38, %v349_v60  ;;  %vm348_vm1 = vcmp.eq.f32.partialorder %v347_v61, 8.507059e+37 }
 0x2f7   :  { %v365_v10 = vor.u32 1.1754944e-38, %v364_v6  ;;  %vm363_vm5 = vcmp.eq.f32.partialorder %v362_v7, 8.507059e+37 }
 0x2fa   :  { %v1183_v52 = vpop.eup %1182  ;;  %v135_v50 = vpop.f32.mrf.mxu3 }
 0x2fb   :  { %v339_v53 = vmul.f32 %v1183_v52, %v336_v49  ;;  %v1185_v55 = vpop.eup %1184  ;;  %vm344_vm13 = vweird.f32 %v1183_v52  ;;  %v134_v49 = vadd.f32 %v1363_v18, %v133_v48 }
 0x2fc   :  { %v354_v57 = vmul.f32 %v1185_v55, %v337_v51  ;;  %vm345_vm15 = vmor %vm343_vm14, %vm344_vm13  ;;  %vm359_vm2 = vweird.f32 %v1185_v55  ;;  %v136_v51 = vadd.f32 %v1363_v18, %v135_v50 }
 0x2fd   :  { %v340_v54 = vsub.f32 1.0, %v339_v53  ;;  %vm360_vm4 = vmor %vm358_vm3, %vm359_vm2  ;;  %v123_v53 = vpop.f32.mrf.mxu0 }
 0x2fe   :  { %v355_v59 = vsub.f32 1.0, %v354_v57 }
 0x2ff   :  { %v341_v56 = vmul.f32 %v1183_v52, %v340_v54 }
 0x300   :  { %v356_v63 = vmul.f32 %v1185_v55, %v355_v59 }
 0x301   :  { %v342_v58 = vadd.f32 %v1183_v52, %v341_v56 }
 0x302   :  { %v357_v5 = vadd.f32 %v1185_v55, %v356_v63  ;;  %v1465_v54 = vpop.f32.mrf.mxu3 }
 0x303   :  { %v346_v62 = vsel %vm345_vm15, %v1183_v52, %v342_v58  ;;  %v1463_v52 = vpack.c.bf16 %v136_v51, %v134_v49 }
 0x304   :  { %v351_v2 = vsel %vm348_vm1, %v350_v0, %v346_v62  ;;  %v361_v8 = vsel %vm360_vm4, %v1185_v55, %v357_v5 }
 0x305   :  { %v366_v11 = vsel %vm363_vm5, %v365_v10, %v361_v8  ;;  %v378_v26 = vmul.f32 %v373_v15, %v351_v2 }
 0x30a   :  { %v1469_v56 = vpop.f32.mrf.mxu3 }
 0x35b   :  { %v383_v1 = vpop.permute.xlu0 %382 }
 0x35c   :  { %v388_v4 = vmul.f32 %v383_v1, %v351_v2 }
 0x35e   :  { %392 = vrot.lane.b32.xlu1 %v388_v4, %s1256_s27 }
 0x363   :  { %v385_v12 = vpop.permute.xlu1 %384  ;;  %v375_v16 = vpop.permute.xlu0 %374 }
 0x364   :  { %v389_v13 = vmul.f32 %v385_v12, %v366_v11  ;;  %v379_v21 = vmul.f32 %v375_v16, %v366_v11 }
 0x366   :  { %394 = vrot.lane.b32.xlu2 %v389_v13, %s1256_s27 }
 0x3c0   :  { %v395_v22 = vpop.permute.xlu2 %394 }
 0x3c1   :  { %v399_v23 = vadd.f32 %v395_v22, %v379_v21 }
 0x3c3   :  { %1186 = vtanh.f32 %v399_v23 }
 0x3c9   :  { %v1187_v25 = vpop.eup %1186 }
 0x3ca   :  { %406 = vrot.lane.b32.xlu1 %v1187_v25, %s1256_s27 }
 0x3d0   :  { %v393_v27 = vpop.permute.xlu1 %392 }
 0x3d1   :  { %v398_v30 = vadd.f32 %v393_v27, %v378_v26 }
 0x3d2   :  { %429 = vrot.lane.b32.xlu1 %v399_v23, %s1257_s10 }
 0x3d3   :  { %1188 = vtanh.f32 %v398_v30 }
 0x3d9   :  { %v1189_v31 = vpop.eup %1188 }
 0x3da   :  { %404 = vrot.lane.b32.xlu0 %v1189_v31, %s1256_s27 }
 0x3e2   :  { %427 = vrot.lane.b32.xlu0 %v398_v30, %s1257_s10 }
 0x43c   :  { %v407_v35 = vpop.permute.xlu1 %406 }
 0x43d   :  { %v411_v37 = vmul.f32 %v407_v35, %v366_v11 }
 0x444   :  { %v430_v1 = vpop.permute.xlu1 %429 }
 0x445   :  { %v1475_v4 = vsel %vm414_vm7, %v430_v1, %v1415_v45 }
 0x44c   :  { %v405_v36 = vpop.permute.xlu0 %404 }
 0x44d   :  { %v410_v38 = vmul.f32 %v405_v36, %v351_v2 }
 0x44f   :  { %v1132_v39 = vpack.i.bf16 %v411_v37, %v410_v38 }
 0x451   :  { %1133 = vrot.lane.b32.xlu2 %v1132_v39, %s1258_s12 }
 0x454   :  { %v428_v9 = vpop.permute.xlu0 %427 }
 0x455   :  { %v1445_v14 = vsel %vm413_vm6, %v428_v9, %v1396_v24 }
 0x456   :  { %502 = vrot.lane.b32.xlu1 %v1445_v14, %s1256_s27 }
 0x4ab   :  { %v1134_v42 = vpop.permute.xlu2 %1133 }
 0x4ac   :  { %v1136_v43 = vunpack.i.h.bf16 %v1134_v42  ;;  %v1135_v44 = vunpack.i.l.bf16 %v1134_v42 }
 0x4ae   :  { %v1453_v46 = vsel %vm414_vm7, %v1136_v43, %v1403_v28  ;;  %v1456_v47 = vsel %vm413_vm6, %v1135_v44, %v1405_v29  ;;  %v125_v28 = vpop.f32.mrf.mxu0  ;;  %v124_v29 = vadd.f32 %v1363_v18, %v123_v53 }
 0x4af   :  { %v440_v24 = vpack.c.bf16 %v1453_v46, %v1456_v47  ;;  %v126_v55 = vadd.f32 %v1363_v18, %v125_v28 }
 0x4b1   :  { %1034 = vmatmul.msk.bf16.vlgmr.msrb.gmra.mxu3 %vm182_vm12, %v440_v24  ;;  %v1067_v57 = vpack.c.bf16 %v126_v55, %v124_v29  ;;  %v1261_v55 = vmov 3  }
 0x4b3   :  { %v1094_v58 = vunpack.c.l.bf16 %v1067_v57  ;;  %v1095_v61 = vunpack.c.h.bf16 %v1067_v57  ;;  %v542_v57 = vsel %vm177_vm9, 2, %v1261_v55 }
 0x4b4   :  { %vm543_vm3 = vcmp.gt.s32.totalorder %v1391_v20, %v542_v57  ;;  %vm544_vm4 = vcmp.gt.s32.totalorder %v1387_v19, %v542_v57 }
 0x4c8   :  { %v503_v42 = vpop.permute.xlu1 %502 }
 0x534   :  { %v453_v59 = vpop.f32.mrf.mxu3 }
 0x535   :  { %v458_v60 = vadd.f32 %v1094_v58, %v453_v59 }
 0x537   :  { %1190 = vtanh.f32 %v458_v60  ;;  %v1035_v5 = vmul.f32 -1.442695, %v458_v60 }
 0x53c   :  { %v455_v62 = vpop.f32.mrf.mxu3 }
 0x53d   :  { %v1191_v63 = vpop.eup %1190  ;;  %v459_v0 = vadd.f32 %v1095_v61, %v455_v62 }
 0x53e   :  { %512 = vrot.lane.b32.xlu2 %v1191_v63, %s1256_s27 }
 0x53f   :  { %1192 = vtanh.f32 %v459_v0  ;;  %v1036_v12 = vmul.f32 -1.442695, %v459_v0  ;;  %v1051_v0 = vld [vmem:[%s1643_s0 + $0x18] sm:$0xff] }
 0x540   :  { %1194 = vpow2.f32 %v1035_v5  ;;  %1026 = vmatmul.msk.bf16.gmra.mxu0 %vm85_vm0, %v1051_v0 }
 0x545   :  { %v1193_v2 = vpop.eup %1192 }
 0x546   :  { %514 = vrot.lane.b32.xlu0 %v1193_v2, %s1256_s27  ;;  %504 = vrot.lane.b32.xlu2 %v1475_v4, %s1256_s27  ;;  %v1195_v6 = vpop.eup %1194 }
 0x547   :  { %v466_v7 = vadd.f32 1.0, %v1195_v6 }
 0x549   :  { %1196 = vrcp.f32 %v466_v7  ;;  %v479_v45 = vand.u32 2147483648, %v466_v7  ;;  %vm473_vm10 = vweird.f32 %v466_v7  ;;  %v477_v16 = vand.u32 2147483647, %v466_v7 }
 0x54a   :  { %1198 = vpow2.f32 %v1036_v12 }
 0x54b   :  { %v480_v23 = vor.u32 1.1754944e-38, %v479_v45  ;;  %vm478_vm13 = vcmp.eq.f32.partialorder %v477_v16, 8.507059e+37 }
 0x54f   :  { %v1197_v8 = vpop.eup %1196 }
 0x550   :  { %v469_v10 = vmul.f32 %v1197_v8, %v466_v7  ;;  %vm474_vm8 = vweird.f32 %v1197_v8  ;;  %v1199_v21 = vpop.eup %1198 }
 0x551   :  { %vm475_vm11 = vmor %vm473_vm10, %vm474_vm8  ;;  %v467_v25 = vadd.f32 1.0, %v1199_v21 }
 0x552   :  { %v470_v11 = vsub.f32 1.0, %v469_v10 }
 0x553   :  { %1200 = vrcp.f32 %v467_v25  ;;  %v494_v36 = vand.u32 2147483648, %v467_v25  ;;  %vm488_vm15 = vweird.f32 %v467_v25  ;;  %v492_v37 = vand.u32 2147483647, %v467_v25 }
 0x554   :  { %v471_v13 = vmul.f32 %v1197_v8, %v470_v11 }
 0x555   :  { %v495_v39 = vor.u32 1.1754944e-38, %v494_v36  ;;  %vm493_vm2 = vcmp.eq.f32.partialorder %v492_v37, 8.507059e+37 }
 0x556   :  { %v472_v15 = vadd.f32 %v1197_v8, %v471_v13 }
 0x558   :  { %v476_v22 = vsel %vm475_vm11, %v1197_v8, %v472_v15 }
 0x559   :  { %v481_v27 = vsel %vm478_vm13, %v480_v23, %v476_v22  ;;  %v1201_v31 = vpop.eup %1200 }
 0x55a   :  { %v484_v32 = vmul.f32 %v1201_v31, %v467_v25  ;;  %vm489_vm14 = vweird.f32 %v1201_v31  ;;  %v508_v43 = vmul.f32 %v503_v42, %v481_v27 }
 0x55b   :  { %vm490_vm1 = vmor %vm488_vm15, %vm489_vm14 }
 0x55c   :  { %v485_v33 = vsub.f32 1.0, %v484_v32 }
 0x55e   :  { %v486_v34 = vmul.f32 %v1201_v31, %v485_v33 }
 0x560   :  { %v487_v35 = vadd.f32 %v1201_v31, %v486_v34 }
 0x562   :  { %v491_v38 = vsel %vm490_vm1, %v1201_v31, %v487_v35 }
 0x563   :  { %v496_v40 = vsel %vm493_vm2, %v495_v39, %v491_v38 }
 0x598   :  { %v513_v26 = vpop.permute.xlu2 %512 }
 0x599   :  { %v518_v30 = vmul.f32 %v513_v26, %v481_v27 }
 0x59b   :  { %522 = vrot.lane.b32.xlu0 %v518_v30, %s1256_s27 }
 0x5a0   :  { %v505_v49 = vpop.permute.xlu2 %504 }
 0x5a1   :  { %v509_v50 = vmul.f32 %v505_v49, %v496_v40 }
 0x5b8   :  { %v515_v41 = vpop.permute.xlu0 %514 }
 0x5b9   :  { %v519_v9 = vmul.f32 %v515_v41, %v496_v40 }
 0x5bb   :  { %524 = vrot.lane.b32.xlu1 %v519_v9, %s1256_s27 }
 0x5bd   :  { %v128_v8 = vpop.f32.mrf.mxu0 }
 0x5be   :  { %v129_v11 = vadd.f32 %v1363_v18, %v128_v8 }
 0x5c5   :  { %v130_v10 = vpop.f32.mrf.mxu0 }
 0x5c6   :  { %v131_v12 = vadd.f32 %v1363_v18, %v130_v10 }
 0x5c8   :  { %v1072_v13 = vpack.c.bf16 %v131_v12, %v129_v11 }
 0x5ca   :  { %v1098_v15 = vunpack.c.l.bf16 %v1072_v13 }
 0x60d   :  { %v523_v44 = vpop.permute.xlu0 %522 }
 0x60e   :  { %v528_v24 = vadd.f32 %v523_v44, %v508_v43 }
 0x610   :  { %1202 = vtanh.f32 %v528_v24 }
 0x616   :  { %v1203_v48 = vpop.eup %1202 }
 0x617   :  { %534 = vrot.lane.b32.xlu2 %v1203_v48, %s1256_s27 }
 0x61f   :  { %557 = vrot.lane.b32.xlu2 %v528_v24, %s1257_s10 }
 0x62d   :  { %v525_v51 = vpop.permute.xlu1 %524 }
 0x62e   :  { %v529_v53 = vadd.f32 %v525_v51, %v509_v50 }
 0x630   :  { %1204 = vtanh.f32 %v529_v53 }
 0x636   :  { %v1205_v28 = vpop.eup %1204 }
 0x637   :  { %536 = vrot.lane.b32.xlu0 %v1205_v28, %s1256_s27 }
 0x63f   :  { %559 = vrot.lane.b32.xlu0 %v529_v53, %s1257_s10 }
 0x671   :  { %v535_v29 = vpop.permute.xlu2 %534 }
 0x672   :  { %v540_v61 = vmul.f32 %v535_v29, %v481_v27 }
 0x679   :  { %v558_v58 = vpop.permute.xlu2 %557 }
 0x67a   :  { %v1490_v59 = vsel %vm543_vm3, %v558_v58, %v1445_v14 }
 0x67b   :  { %632 = vrot.lane.b32.xlu0 %v1490_v59, %s1256_s27 }
 0x6a9   :  { %v537_v60 = vpop.permute.xlu0 %536 }
 0x6aa   :  { %v541_v62 = vmul.f32 %v537_v60, %v496_v40 }
 0x6ac   :  { %v1137_v63 = vpack.i.bf16 %v541_v62, %v540_v61 }
 0x6ae   :  { %1138 = vrot.lane.b32.xlu1 %v1137_v63, %s1258_s12 }
 0x6b1   :  { %v560_v23 = vpop.permute.xlu0 %559 }
 0x6b2   :  { %v1517_v26 = vsel %vm544_vm4, %v560_v23, %v1475_v4 }
 0x6ed   :  { %v633_v60 = vpop.permute.xlu0 %632 }
 0x720   :  { %v1139_v1 = vpop.permute.xlu1 %1138 }
 0x721   :  { %v1141_v2 = vunpack.i.h.bf16 %v1139_v1  ;;  %v1140_v5 = vunpack.i.l.bf16 %v1139_v1 }
 0x723   :  { %v1503_v14 = vsel %vm544_vm4, %v1141_v2, %v1453_v46  ;;  %v1506_v6 = vsel %vm543_vm3, %v1140_v5, %v1456_v47  ;;  %v1099_v46 = vunpack.c.h.bf16 %v1072_v13 }
 0x724   :  { %v570_v7 = vpack.c.bf16 %v1503_v14, %v1506_v6 }
 0x726   :  { %1037 = vmatmul.msk.bf16.vlgmr.msrb.gmra.mxu1 %vm182_vm12, %v570_v7 }
 0x7a3   :  { %v583_v45 = vpop.f32.mrf.mxu1 }
 0x7a4   :  { %v588_v16 = vadd.f32 %v1098_v15, %v583_v45  ;;  %v1262_v45 = vmov 2  }
 0x7a6   :  { %1206 = vtanh.f32 %v588_v16  ;;  %v1038_v31 = vmul.f32 -1.442695, %v588_v16  ;;  %v672_v16 = vsel %vm177_vm9, 3, %v1262_v45 }
 0x7a7   :  { %vm673_vm14 = vcmp.gt.s32.totalorder %v1391_v20, %v672_v16  ;;  %vm674_vm15 = vcmp.gt.s32.totalorder %v1387_v19, %v672_v16 }
 0x7ab   :  { %v585_v21 = vpop.f32.mrf.mxu1 }
 0x7ac   :  { %v1207_v47 = vpop.eup %1206  ;;  %v589_v22 = vadd.f32 %v1099_v46, %v585_v21 }
 0x7ad   :  { %642 = vrot.lane.b32.xlu1 %v1207_v47, %s1256_s27 }
 0x7ae   :  { %1208 = vtanh.f32 %v589_v22  ;;  %v1039_v18 = vmul.f32 -1.442695, %v589_v22 }
 0x7b0   :  { %1210 = vpow2.f32 %v1039_v18 }
 0x7b4   :  { %v1209_v25 = vpop.eup %1208 }
 0x7b5   :  { %644 = vrot.lane.b32.xlu2 %v1209_v25, %s1256_s27  ;;  %634 = vrot.lane.b32.xlu1 %v1517_v26, %s1256_s27 }
 0x7b6   :  { %v1211_v27 = vpop.eup %1210 }
 0x7b7   :  { %v597_v30 = vadd.f32 1.0, %v1211_v27  ;;  %v1102_v27 = vunpack.c.l.bf16 %v1463_v52 }
 0x7b9   :  { %1212 = vrcp.f32 %v597_v30  ;;  %v624_v39 = vand.u32 2147483648, %v597_v30  ;;  %vm618_vm5 = vweird.f32 %v597_v30  ;;  %v622_v40 = vand.u32 2147483647, %v597_v30 }
 0x7ba   :  { %1214 = vpow2.f32 %v1038_v31 }
 0x7bb   :  { %v625_v42 = vor.u32 1.1754944e-38, %v624_v39  ;;  %vm623_vm7 = vcmp.eq.f32.partialorder %v622_v40, 8.507059e+37 }
 0x7bf   :  { %v1213_v32 = vpop.eup %1212 }
 0x7c0   :  { %v1215_v33 = vpop.eup %1214  ;;  %v614_v34 = vmul.f32 %v1213_v32, %v597_v30  ;;  %vm619_vm0 = vweird.f32 %v1213_v32 }
 0x7c1   :  { %v596_v35 = vadd.f32 1.0, %v1215_v33  ;;  %vm620_vm6 = vmor %vm618_vm5, %vm619_vm0 }
 0x7c2   :  { %v615_v36 = vsub.f32 1.0, %v614_v34 }
 0x7c3   :  { %1216 = vrcp.f32 %v596_v35  ;;  %v609_v51 = vand.u32 2147483648, %v596_v35  ;;  %vm603_vm10 = vweird.f32 %v596_v35  ;;  %v607_v53 = vand.u32 2147483647, %v596_v35 }
 0x7c4   :  { %v616_v4 = vmul.f32 %v1213_v32, %v615_v36 }
 0x7c5   :  { %v610_v29 = vor.u32 1.1754944e-38, %v609_v51  ;;  %vm608_vm13 = vcmp.eq.f32.partialorder %v607_v53, 8.507059e+37 }
 0x7c6   :  { %v617_v37 = vadd.f32 %v1213_v32, %v616_v4 }
 0x7c8   :  { %v621_v41 = vsel %vm620_vm6, %v1213_v32, %v617_v37  ;;  %v1103_v32 = vunpack.c.h.bf16 %v1463_v52 }
 0x7c9   :  { %v1217_v38 = vpop.eup %1216  ;;  %v626_v44 = vsel %vm623_vm7, %v625_v42, %v621_v41 }
 0x7ca   :  { %v599_v9 = vmul.f32 %v1217_v38, %v596_v35  ;;  %vm604_vm8 = vweird.f32 %v1217_v38 }
 0x7cb   :  { %vm605_vm11 = vmor %vm603_vm10, %vm604_vm8 }
 0x7cc   :  { %v600_v48 = vsub.f32 1.0, %v599_v9 }
 0x7ce   :  { %v601_v49 = vmul.f32 %v1217_v38, %v600_v48 }
 0x7d0   :  { %v602_v50 = vadd.f32 %v1217_v38, %v601_v49 }
 0x7d2   :  { %v606_v28 = vsel %vm605_vm11, %v1217_v38, %v602_v50 }
 0x7d3   :  { %v611_v57 = vsel %vm608_vm13, %v610_v29, %v606_v28 }
 0x7d4   :  { %v638_v61 = vmul.f32 %v633_v60, %v611_v57 }
 0x80f   :  { %v645_v43 = vpop.permute.xlu2 %644 }
 0x810   :  { %v649_v24 = vmul.f32 %v645_v43, %v626_v44 }
 0x812   :  { %654 = vrot.lane.b32.xlu0 %v649_v24, %s1256_s27 }
 0x81f   :  { %v643_v55 = vpop.permute.xlu1 %642 }
 0x820   :  { %v648_v58 = vmul.f32 %v643_v55, %v611_v57 }
 0x822   :  { %652 = vrot.lane.b32.xlu2 %v648_v58, %s1256_s27 }
 0x827   :  { %v635_v0 = vpop.permute.xlu1 %634 }
 0x828   :  { %v639_v1 = vmul.f32 %v635_v0, %v626_v44 }
 0x87c   :  { %v653_v62 = vpop.permute.xlu2 %652 }
 0x87d   :  { %v658_v63 = vadd.f32 %v653_v62, %v638_v61 }
 0x87f   :  { %1218 = vtanh.f32 %v658_v63 }
 0x884   :  { %v655_v2 = vpop.permute.xlu0 %654 }
 0x885   :  { %v1219_v5 = vpop.eup %1218  ;;  %v659_v7 = vadd.f32 %v655_v2, %v639_v1 }
 0x886   :  { %664 = vrot.lane.b32.xlu1 %v1219_v5, %s1256_s27 }
 0x887   :  { %1220 = vtanh.f32 %v659_v7 }
 0x88d   :  { %v1221_v8 = vpop.eup %1220 }
 0x88e   :  { %687 = vrot.lane.b32.xlu1 %v658_v63, %s1257_s10  ;;  %666 = vrot.lane.b32.xlu2 %v1221_v8, %s1256_s27 }
 0x896   :  { %689 = vrot.lane.b32.xlu2 %v659_v7, %s1257_s10 }
 0x8e8   :  { %v667_v10 = vpop.permute.xlu2 %666 }
 0x8e9   :  { %v671_v12 = vmul.f32 %v667_v10, %v626_v44 }
 0x8f8   :  { %v665_v11 = vpop.permute.xlu1 %664 }
 0x8f9   :  { %v670_v13 = vmul.f32 %v665_v11, %v611_v57 }
 0x8fb   :  { %v1142_v15 = vpack.i.bf16 %v671_v12, %v670_v13 }
 0x8fd   :  { %1143 = vrot.lane.b32.xlu0 %v1142_v15, %s1258_s12 }
 0x900   :  { %v688_v46 = vpop.permute.xlu1 %687 }
 0x901   :  { %v1533_v21 = vsel %vm673_vm14, %v688_v46, %v1490_v59 }
 0x902   :  { %762 = vrot.lane.b32.xlu2 %v1533_v21, %s1256_s27 }
 0x96f   :  { %v1144_v47 = vpop.permute.xlu0 %1143 }
 0x970   :  { %v1146_v22 = vunpack.i.h.bf16 %v1144_v47  ;;  %v1145_v23 = vunpack.i.l.bf16 %v1144_v47 }
 0x972   :  { %v1541_v25 = vsel %vm674_vm15, %v1146_v22, %v1503_v14  ;;  %v1544_v18 = vsel %vm673_vm14, %v1145_v23, %v1506_v6  ;;  %v690_v14 = vpop.permute.xlu2 %689 }
 0x973   :  { %v700_v59 = vpack.c.bf16 %v1541_v25, %v1544_v18  ;;  %v1555_v36 = vsel %vm674_vm15, %v690_v14, %v1517_v26 }
 0x975   :  { %1040 = vmatmul.msk.bf16.vlgmr.msrb.gmra.mxu2 %vm182_vm12, %v700_v59 }
 0x97a   :  { %v763_v5 = vpop.permute.xlu2 %762 }
 0x9f8   :  { %v713_v30 = vpop.f32.mrf.mxu2 }
 0x9f9   :  { %v718_v31 = vadd.f32 %v1102_v27, %v713_v30  ;;  %v1263_v27 = vmov 1  }
 0x9fa   :  { %v802_v30 = vsel %vm177_vm9, 4, %v1263_v27 }
 0x9fb   :  { %1222 = vtanh.f32 %v718_v31  ;;  %v1041_v4 = vmul.f32 -1.442695, %v718_v31  ;;  %vm803_vm8 = vcmp.gt.s32.totalorder %v1391_v20, %v802_v30  ;;  %vm804_vm10 = vcmp.gt.s32.totalorder %v1387_v19, %v802_v30 }
 0xa00   :  { %v715_v33 = vpop.f32.mrf.mxu2 }
 0xa01   :  { %v1223_v34 = vpop.eup %1222  ;;  %v719_v35 = vadd.f32 %v1103_v32, %v715_v33 }
 0xa02   :  { %772 = vrot.lane.b32.xlu0 %v1223_v34, %s1256_s27 }
 0xa03   :  { %1224 = vtanh.f32 %v719_v35  ;;  %v1042_v52 = vmul.f32 -1.442695, %v719_v35 }
 0xa04   :  { %1226 = vpow2.f32 %v1041_v4 }
 0xa05   :  { %1228 = vpow2.f32 %v1042_v52 }
 0xa09   :  { %v1225_v6 = vpop.eup %1224 }
 0xa0a   :  { %774 = vrot.lane.b32.xlu1 %v1225_v6, %s1256_s27  ;;  %764 = vrot.lane.b32.xlu0 %v1555_v36, %s1256_s27  ;;  %v1227_v37 = vpop.eup %1226 }
 0xa0b   :  { %v726_v38 = vadd.f32 1.0, %v1227_v37  ;;  %v1229_v39 = vpop.eup %1228 }
 0xa0c   :  { %v727_v40 = vadd.f32 1.0, %v1229_v39 }
 0xa0d   :  { %1230 = vrcp.f32 %v726_v38  ;;  %v739_v49 = vand.u32 2147483648, %v726_v38  ;;  %vm733_vm2 = vweird.f32 %v726_v38  ;;  %v737_v50 = vand.u32 2147483647, %v726_v38 }
 0xa0e   :  { %1232 = vrcp.f32 %v727_v40  ;;  %v754_v60 = vand.u32 2147483648, %v727_v40  ;;  %vm748_vm5 = vweird.f32 %v727_v40  ;;  %v752_v61 = vand.u32 2147483647, %v727_v40 }
 0xa0f   :  { %v740_v28 = vor.u32 1.1754944e-38, %v739_v49  ;;  %vm738_vm4 = vcmp.eq.f32.partialorder %v737_v50, 8.507059e+37 }
 0xa10   :  { %v755_v63 = vor.u32 1.1754944e-38, %v754_v60  ;;  %vm753_vm7 = vcmp.eq.f32.partialorder %v752_v61, 8.507059e+37 }
 0xa13   :  { %v1231_v41 = vpop.eup %1230 }
 0xa14   :  { %v729_v9 = vmul.f32 %v1231_v41, %v726_v38  ;;  %v1233_v26 = vpop.eup %1232  ;;  %vm734_vm1 = vweird.f32 %v1231_v41 }
 0xa15   :  { %v744_v44 = vmul.f32 %v1233_v26, %v727_v40  ;;  %vm735_vm3 = vmor %vm733_vm2, %vm734_vm1  ;;  %vm749_vm0 = vweird.f32 %v1233_v26 }
 0xa16   :  { %v730_v42 = vsub.f32 1.0, %v729_v9  ;;  %vm750_vm6 = vmor %vm748_vm5, %vm749_vm0  ;;  %vm958_vm0 = vcmask 130048  }
 0xa17   :  { %v745_v48 = vsub.f32 1.0, %v744_v44 }
 0xa18   :  { %v731_v43 = vmul.f32 %v1231_v41, %v730_v42 }
 0xa19   :  { %v746_v53 = vmul.f32 %v1233_v26, %v745_v48 }
 0xa1a   :  { %v732_v24 = vadd.f32 %v1231_v41, %v731_v43 }
 0xa1b   :  { %v747_v58 = vadd.f32 %v1233_v26, %v746_v53 }
 0xa1c   :  { %v736_v51 = vsel %vm735_vm3, %v1231_v41, %v732_v24 }
 0xa1d   :  { %v741_v55 = vsel %vm738_vm4, %v740_v28, %v736_v51  ;;  %v751_v62 = vsel %vm750_vm6, %v1233_v26, %v747_v58 }
 0xa1e   :  { %v756_v1 = vsel %vm753_vm7, %v755_v63, %v751_v62  ;;  %v768_v13 = vmul.f32 %v763_v5, %v741_v55 }
 0xa74   :  { %v773_v29 = vpop.permute.xlu0 %772 }
 0xa75   :  { %v778_v57 = vmul.f32 %v773_v29, %v741_v55 }
 0xa77   :  { %782 = vrot.lane.b32.xlu1 %v778_v57, %s1256_s27 }
 0xa7c   :  { %v775_v0 = vpop.permute.xlu1 %774  ;;  %v765_v7 = vpop.permute.xlu0 %764 }
 0xa7d   :  { %v779_v2 = vmul.f32 %v775_v0, %v756_v1  ;;  %v769_v8 = vmul.f32 %v765_v7, %v756_v1 }
 0xa7f   :  { %784 = vrot.lane.b32.xlu2 %v779_v2, %s1256_s27 }
 0xad9   :  { %v785_v10 = vpop.permute.xlu2 %784 }
 0xada   :  { %v789_v11 = vadd.f32 %v785_v10, %v769_v8 }
 0xadc   :  { %1234 = vtanh.f32 %v789_v11 }
 0xae2   :  { %v1235_v12 = vpop.eup %1234 }
 0xae3   :  { %796 = vrot.lane.b32.xlu1 %v1235_v12, %s1256_s27 }
 0xae9   :  { %v783_v15 = vpop.permute.xlu1 %782 }
 0xaea   :  { %v788_v45 = vadd.f32 %v783_v15, %v768_v13 }
 0xaeb   :  { %819 = vrot.lane.b32.xlu1 %v789_v11, %s1257_s10 }
 0xaec   :  { %1236 = vtanh.f32 %v788_v45 }
 0xaf2   :  { %v1237_v16 = vpop.eup %1236 }
 0xaf3   :  { %794 = vrot.lane.b32.xlu0 %v1237_v16, %s1256_s27 }
 0xafb   :  { %817 = vrot.lane.b32.xlu0 %v788_v45, %s1257_s10 }
 0xb55   :  { %v797_v46 = vpop.permute.xlu1 %796 }
 0xb56   :  { %v801_v22 = vmul.f32 %v797_v46, %v756_v1 }
 0xb5d   :  { %v820_v26 = vpop.permute.xlu1 %819 }
 0xb65   :  { %v795_v47 = vpop.permute.xlu0 %794 }
 0xb66   :  { %v800_v23 = vmul.f32 %v795_v47, %v741_v55 }
 0xb68   :  { %v1147_v59 = vpack.i.bf16 %v801_v22, %v800_v23 }
 0xb6a   :  { %1148 = vrot.lane.b32.xlu2 %v1147_v59, %s1258_s12 }
 0xb6d   :  { %v818_v31 = vpop.permute.xlu0 %817 }
 0xb6e   :  { %v823_v32 = vsel %vm803_vm8, %v818_v31, %v1533_v21  ;;  %v1254_v21 = vld [vmem:[%s1642_s4] ss:$0 sm:$0xff] }
 0xb6f   :  { %892 = vrot.lane.b32.xlu1 %v823_v32, %s1256_s27  ;;  %v139_v52 = vadd.f32 %v1254_v21, %v1465_v54  ;;  %v141_v37 = vadd.f32 %v1254_v21, %v1469_v56  ;;  %v824_v54 = vsel %vm804_vm10, %v820_v26, %v1555_v36  ;;  %v955_v21 = vld [vmem:[%s1646_s7 + $0x8] sm:$0xff] }
 0xb70   :  { %v953_v26 = vld [vmem:[%s1647_s2 + $0x8] sm:$0xff] }
 0xb71   :  { %v1082_v38 = vpack.c.bf16 %v141_v37, %v139_v52  ;;  %v945_v52 = vld [vmem:[%s1645_s6] sm:$0xff]  ;;  %v946_v37 = vld [vmem:[%s1645_s6 + $0x8] sm:$0xff] }
 0xb73   :  { %v1106_v39 = vunpack.c.l.bf16 %v1082_v38 }
 0xbc4   :  { %v1149_v33 = vpop.permute.xlu2 %1148 }
 0xbc5   :  { %v1151_v34 = vunpack.i.h.bf16 %v1149_v33  ;;  %v1150_v35 = vunpack.i.l.bf16 %v1149_v33  ;;  %v947_v33 = vld [vmem:[%s1645_s6 + $0x10] sm:$0xff] }
 0xbc7   :  { %v1576_v14 = vsel %vm804_vm10, %v1151_v34, %v1541_v25  ;;  %v1579_v6 = vsel %vm803_vm8, %v1150_v35, %v1544_v18  ;;  %v1107_v18 = vunpack.c.h.bf16 %v1082_v38  ;;  %v948_v34 = vld [vmem:[%s1645_s6 + $0x18] sm:$0xff]  ;;  %v954_v35 = vld [vmem:[%s1646_s7] sm:$0xff] }
 0xbc8   :  { %v830_v4 = vpack.c.bf16 %v1576_v14, %v1579_v6  ;;  %v957_v38 = vpack.c.bf16 %v955_v21, %v954_v35 }
 0xbca   :  { %1043 = vmatmul.msk.bf16.vlgmr.msra.gmra.mxu3 %vm182_vm12, %v830_v4  ;;  %v951_v4 = vpack.c.bf16 %v948_v34, %v947_v33  ;;  %969 = vmatpush.bf16.msra.mxu1 %v957_v38 }
 0xbcc   :  { %985 = vmatpush.bf16.msra.mxu2 %v951_v4 }
 0xbe1   :  { %v893_v16 = vpop.permute.xlu1 %892 }
 0xc4d   :  { %v843_v25 = vpop.f32.mrf.mxu3 }
 0xc4e   :  { %v848_v40 = vadd.f32 %v1106_v39, %v843_v25  ;;  %v950_v39 = vpack.c.bf16 %v946_v37, %v945_v52 }
 0xc50   :  { %1238 = vtanh.f32 %v848_v40  ;;  %v1044_v56 = vmul.f32 -1.442695, %v848_v40  ;;  %986 = vmatpush.bf16.msra.mxu2 %v950_v39 }
 0xc55   :  { %v845_v41 = vpop.f32.mrf.mxu3 }
 0xc56   :  { %v1239_v9 = vpop.eup %1238  ;;  %v849_v42 = vadd.f32 %v1107_v18, %v845_v41 }
 0xc57   :  { %902 = vrot.lane.b32.xlu2 %v1239_v9, %s1256_s27 }
 0xc58   :  { %1240 = vtanh.f32 %v849_v42  ;;  %v1045_v51 = vmul.f32 -1.442695, %v849_v42  ;;  %v952_v42 = vld [vmem:[%s1647_s2] sm:$0xff] }
 0xc59   :  { %1242 = vpow2.f32 %v1044_v56 }
 0xc5e   :  { %v1241_v43 = vpop.eup %1240 }
 0xc5f   :  { %904 = vrot.lane.b32.xlu0 %v1241_v43, %s1256_s27  ;;  %894 = vrot.lane.b32.xlu2 %v824_v54, %s1256_s27  ;;  %v1243_v44 = vpop.eup %1242  ;;  %v956_v43 = vpack.c.bf16 %v953_v26, %v952_v42  ;;  %v932_v54 = vsel %vm177_vm9, 5, %v1255_v3 }
 0xc60   :  { %v856_v24 = vadd.f32 1.0, %v1243_v44  ;;  %vm933_vm5 = vcmp.gt.s32.totalorder %v1391_v20, %v932_v54  ;;  %vm934_vm6 = vcmp.gt.s32.totalorder %v1387_v19, %v932_v54 }
 0xc61   :  { %1046 = vmatmul.msk.bf16.vlgmr.msra.gmra.mxu1 %vm958_vm0, %v956_v43 }
 0xc62   :  { %1244 = vrcp.f32 %v856_v24  ;;  %v869_v29 = vand.u32 2147483648, %v856_v24  ;;  %vm863_vm13 = vweird.f32 %v856_v24  ;;  %v867_v36 = vand.u32 2147483647, %v856_v24 }
 0xc63   :  { %1246 = vpow2.f32 %v1045_v51 }
 0xc64   :  { %v870_v58 = vor.u32 1.1754944e-38, %v869_v29  ;;  %vm868_vm15 = vcmp.eq.f32.partialorder %v867_v36, 8.507059e+37 }
 0xc68   :  { %v1245_v48 = vpop.eup %1244 }
 0xc69   :  { %v859_v49 = vmul.f32 %v1245_v48, %v856_v24  ;;  %vm864_vm11 = vweird.f32 %v1245_v48  ;;  %v1247_v55 = vpop.eup %1246 }
 0xc6a   :  { %vm865_vm14 = vmor %vm863_vm13, %vm864_vm11  ;;  %v857_v60 = vadd.f32 1.0, %v1247_v55 }
 0xc6b   :  { %v860_v50 = vsub.f32 1.0, %v859_v49 }
 0xc6c   :  { %1248 = vrcp.f32 %v857_v60  ;;  %v884_v8 = vand.u32 2147483648, %v857_v60  ;;  %vm878_vm2 = vweird.f32 %v857_v60  ;;  %v882_v10 = vand.u32 2147483647, %v857_v60 }
 0xc6d   :  { %v861_v53 = vmul.f32 %v1245_v48, %v860_v50 }
 0xc6e   :  { %v885_v12 = vor.u32 1.1754944e-38, %v884_v8  ;;  %vm883_vm4 = vcmp.eq.f32.partialorder %v882_v10, 8.507059e+37 }
 0xc6f   :  { %v862_v28 = vadd.f32 %v1245_v48, %v861_v53 }
 0xc71   :  { %v866_v57 = vsel %vm865_vm14, %v1245_v48, %v862_v28 }
 0xc72   :  { %v871_v62 = vsel %vm868_vm15, %v870_v58, %v866_v57  ;;  %v1249_v0 = vpop.eup %1248 }
 0xc73   :  { %v874_v1 = vmul.f32 %v1249_v0, %v857_v60  ;;  %vm879_vm1 = vweird.f32 %v1249_v0  ;;  %v898_v46 = vmul.f32 %v893_v16, %v871_v62 }
 0xc74   :  { %vm880_vm3 = vmor %vm878_vm2, %vm879_vm1 }
 0xc75   :  { %v875_v2 = vsub.f32 1.0, %v874_v1 }
 0xc77   :  { %v876_v5 = vmul.f32 %v1249_v0, %v875_v2 }
 0xc79   :  { %v877_v7 = vadd.f32 %v1249_v0, %v876_v5 }
 0xc7b   :  { %v881_v11 = vsel %vm880_vm3, %v1249_v0, %v877_v7 }
 0xc7c   :  { %v886_v13 = vsel %vm883_vm4, %v885_v12, %v881_v11 }
 0xcb1   :  { %v903_v61 = vpop.permute.xlu2 %902 }
 0xcb2   :  { %v908_v63 = vmul.f32 %v903_v61, %v871_v62 }
 0xcb4   :  { %912 = vrot.lane.b32.xlu0 %v908_v63, %s1256_s27 }
 0xcb9   :  { %v895_v59 = vpop.permute.xlu2 %894 }
 0xcba   :  { %v899_v27 = vmul.f32 %v895_v59, %v886_v13 }
 0xcd1   :  { %v905_v15 = vpop.permute.xlu0 %904 }
 0xcd2   :  { %v909_v45 = vmul.f32 %v905_v15, %v886_v13 }
 0xcd4   :  { %914 = vrot.lane.b32.xlu1 %v909_v45, %s1256_s27 }
 0xcde   :  { %v971_v51 = vpop.f32.mrf.mxu1 }
 0xce6   :  { %v973_v3 = vpop.f32.mrf.mxu1 }
 0xd26   :  { %v913_v47 = vpop.permute.xlu0 %912 }
 0xd27   :  { %v918_v22 = vadd.f32 %v913_v47, %v898_v46 }
 0xd29   :  { %1250 = vtanh.f32 %v918_v22 }
 0xd2f   :  { %v1251_v23 = vpop.eup %1250 }
 0xd30   :  { %924 = vrot.lane.b32.xlu2 %v1251_v23, %s1256_s27 }
 0xd46   :  { %v915_v30 = vpop.permute.xlu1 %914 }
 0xd47   :  { %v919_v31 = vadd.f32 %v915_v30, %v899_v27 }
 0xd49   :  { %1252 = vtanh.f32 %v919_v31 }
 0xd4f   :  { %v1253_v32 = vpop.eup %1252 }
 0xd50   :  { %926 = vrot.lane.b32.xlu0 %v1253_v32, %s1256_s27 }
 0xd8a   :  { %v925_v25 = vpop.permute.xlu2 %924 }
 0xd8b   :  { %v930_v18 = vmul.f32 %v925_v25, %v871_v62 }
 0xdc2   :  { %v927_v40 = vpop.permute.xlu0 %926 }
 0xdc3   :  { %v931_v41 = vmul.f32 %v927_v40, %v886_v13 }
 0xdc5   :  { %v1152_v9 = vpack.i.bf16 %v931_v41, %v930_v18 }
 0xdc7   :  { %1153 = vrot.lane.b32.xlu1 %v1152_v9, %s1258_s12 }
 0xe39   :  { %v1154_v56 = vpop.permute.xlu1 %1153 }
 0xe3a   :  { %v1156_v44 = vunpack.i.h.bf16 %v1154_v56  ;;  %v1155_v24 = vunpack.i.l.bf16 %v1154_v56 }
 0xe3c   :  { %v944_v48 = vsel %vm934_vm6, %v1156_v44, %v1576_v14  ;;  %v943_v49 = vsel %vm933_vm5, %v1155_v24, %v1579_v6 }
 0xe3d   :  { %v949_v50 = vpack.c.bf16 %v944_v48, %v943_v49 }
 0xe3f   :  { %1047 = vmatmul.msk.bf16.vlgmr.msra.gmra.mxu2 %vm182_vm12, %v949_v50 }
 0xec2   :  { %v988_v53 = vpop.f32.mrf.mxu2 }
 0xec3   :  { %v989_v28 = vadd.f32 %v988_v53, %v971_v51 }
 0xec5   :  { %993 = vst.msk [vmem:[%s1648_s8] sm:$0xff] %vm182_vm12, %v989_v28 }
 0xeca   :  { %v990_v17 = vpop.f32.mrf.mxu2 }
 0xecb   :  { %v991_v20 = vadd.f32 %v990_v17, %v973_v3 }
 0xecd   :  { %994 = vst.msk [vmem:[%s1648_s8 + $0x8] sm:$0xff] %vm182_vm12, %v991_v20 }

// kernel: ans_seq_encoder_forward.5
= control target key start
LH: loop header
LB: loop body
LE: loop exit
PB: predicated region body
PF: predicated region fallthrough
CT: control target
= control target key end

     0   :  { %v2038_v11 = vmov 0   ;;  %vm113_vm0 = vcmask 523264   ;;  %s2040_s16 = smov 96   ;;  %s2041_s17 = smov 64   ;;  %s2750_s3 = inlined_call_operand.vmem [shape: f32[64,128], index: 3, kind: input, shape index: {}]   ;;  %s2751_s5 = inlined_call_operand.vmem [shape: f32[32,128], index: 5, kind: input, shape index: {}]   ;;  %s2752_s4 = inlined_call_operand.vmem [shape: f32[1,128], index: 4, kind: input, shape index: {}]   ;;  %s2753_s0 = inlined_call_operand.vmem [shape: bf16[5,32,64], index: 0, kind: input, shape index: {}]   ;;  %s2754_s1 = inlined_call_operand.vmem [shape: s32[32,1], index: 1, kind: input, shape index: {}]   ;;  %s2755_s2 = inlined_call_operand.vmem [shape: s32[16,1], index: 2, kind: input, shape index: {}]   ;;  %s2756_s6 = inlined_call_operand.vmem [shape: f32[32,32], index: 6, kind: input, shape index: {}]   ;;  %s2757_s7 = inlined_call_operand.vmem [shape: f32[16,32], index: 7, kind: output, shape index: {}]  }
   0x1   :  { %v53_v0 = vld [vmem:[%s2750_s3 + $0x30] sm:$0xff]  ;;  %v54_v1 = vld [vmem:[%s2750_s3 + $0x38] sm:$0xff]  ;;  %v51_v2 = vld [vmem:[%s2750_s3 + $0x20] sm:$0xff]  ;;  %1811 = vset.pattern.permute.xlu1 %v2038_v11  ;;  %1810 = vset.pattern.permute.xlu0 %v2038_v11 }
   0x2   :  { %v58_v3 = vpack.c.bf16 %v54_v1, %v53_v0  ;;  %v52_v4 = vld [vmem:[%s2750_s3 + $0x28] sm:$0xff]  ;;  %v245_v6 = vld [vmem:[%s2751_s5 + $0x10] sm:$0xff]  ;;  %v246_v7 = vld [vmem:[%s2751_s5 + $0x18] sm:$0xff]  ;;  %1817 = vset.pattern.permute.xlu2 %v2038_v11 }
   0x3   :  { %v57_v5 = vpack.c.bf16 %v52_v4, %v51_v2  ;;  %v49_v8 = vld [vmem:[%s2750_s3 + $0x10] sm:$0xff]  ;;  %v50_v9 = vld [vmem:[%s2750_s3 + $0x18] sm:$0xff]  ;;  %v2110_v10 = vpack.c.bf16 %v246_v7, %v245_v6  ;;  %v243_v12 = vld [vmem:[%s2751_s5] sm:$0xff] }
   0x4   :  { %1794 = vmatpush.bf16.msra.mxu1 %v58_v3  ;;  %148 = vmatpush.bf16.msra.mxu0 %v58_v3  ;;  %v244_v13 = vld [vmem:[%s2751_s5 + $0x8] sm:$0xff]  ;;  %v56_v14 = vpack.c.bf16 %v50_v9, %v49_v8  ;;  %v47_v15 = vld [vmem:[%s2750_s3] sm:$0xff]  ;;  %v1686_v19 = vld [vmem:[%s2753_s0 + $0x30] sm:$0xff] }
   0x5   :  { %1795 = vmatpush.bf16.msra.mxu2 %v58_v3  ;;  %768 = vmatpush.bf16.msra.mxu3 %v2110_v10  ;;  %v48_v16 = vld [vmem:[%s2750_s3 + $0x8] sm:$0xff]  ;;  %v2128_v17 = vpack.c.bf16 %v244_v13, %v243_v12  ;;  %v1680_v20 = vld [vmem:[%s2753_s0] sm:$0xff]  ;;  %v1687_v21 = vld [vmem:[%s2753_s0 + $0x38] sm:$0xff] }
   0x6   :  { %v55_v18 = vpack.c.bf16 %v48_v16, %v47_v15  ;;  %v1681_v22 = vld [vmem:[%s2753_s0 + $0x8] sm:$0xff]  ;;  %v2158_v24 = vld [vmem:[%s2752_s4] ss:$0 sm:$0xff]  ;;  %s2039_s4 = smov 32  }
   0x8   :  { %1796 = vmatpush.bf16.msra.mxu1 %v57_v5  ;;  %149 = vmatpush.bf16.msra.mxu0 %v57_v5 }
   0x9   :  { %1797 = vmatpush.bf16.msra.mxu2 %v57_v5  ;;  %769 = vmatpush.bf16.msra.mxu3 %v2128_v17 }
   0xc   :  { %1798 = vmatpush.bf16.msra.mxu1 %v56_v14  ;;  %150 = vmatpush.bf16.msra.mxu0 %v56_v14 }
   0xd   :  { %1799 = vmatpush.bf16.msra.mxu2 %v56_v14 }
  0x10   :  { %1800 = vmatpush.bf16.msra.mxu1 %v55_v18  ;;  %151 = vmatpush.bf16.msra.mxu0 %v55_v18 }
  0x11   :  { %1801 = vmatpush.bf16.msra.mxu2 %v55_v18 }
  0x13   :  { %1644 = vmatmul.msk.bf16.vlgmr.msra.gmra.mxu1 %vm113_vm0, %v1686_v19  ;;  %1638 = vmatmul.msk.bf16.vlgmr.msra.gmra.mxu0 %vm113_vm0, %v1680_v20 }
  0x14   :  { %274 = vmatpush.bf16.msrb.mxu1 %v2110_v10 }
  0x15   :  { %519 = vmatpush.bf16.msrb.mxu2 %v2110_v10 }
  0x18   :  { %275 = vmatpush.bf16.msrb.mxu1 %v2128_v17 }
  0x19   :  { %520 = vmatpush.bf16.msrb.mxu2 %v2128_v17 }
  0x1c   :  { %1006 = vmatpush.bf16.msra.mxu1 %v2110_v10 }
  0x20   :  { %1007 = vmatpush.bf16.msra.mxu1 %v2128_v17 }
  0x23   :  { %1645 = vmatmul.msk.bf16.gmra.mxu1 %vm113_vm0, %v1687_v21  ;;  %1639 = vmatmul.msk.bf16.gmra.mxu0 %vm113_vm0, %v1681_v22 }
  0x33   :  { %276 = vmatmul.bf16.vlgmr.msrb.gmra.mxu1 %v2038_v11 }
  0x43   :  { %281 = vmatmul.bf16.gmra.mxu1 %v2038_v11 }
  0x90   :  { %v183_v23 = vpop.f32.mrf.mxu1  ;;  %v153_v25 = vpop.f32.mrf.mxu0 }
  0x91   :  { %v184_v27 = vadd.f32 %v2158_v24, %v183_v23  ;;  %v154_v32 = vadd.f32 %v2158_v24, %v153_v25 }
  0x98   :  { %v185_v26 = vpop.f32.mrf.mxu1  ;;  %v155_v31 = vpop.f32.mrf.mxu0 }
  0x99   :  { %v186_v28 = vadd.f32 %v2158_v24, %v185_v26  ;;  %v156_v33 = vadd.f32 %v2158_v24, %v155_v31 }
  0x9b   :  { %v2162_v29 = vpack.c.bf16 %v186_v28, %v184_v27  ;;  %v1693_v38 = vpack.c.bf16 %v156_v33, %v154_v32 }
  0x9d   :  { %v1742_v40 = vunpack.c.l.bf16 %v1693_v38  ;;  %v1743_v46 = vunpack.c.h.bf16 %v1693_v38 }
  0xa0   :  { %v188_v30 = vpop.f32.mrf.mxu1  ;;  %v158_v37 = vpop.f32.mrf.mxu0 }
  0xa1   :  { %v189_v35 = vadd.f32 %v2158_v24, %v188_v30  ;;  %v159_v44 = vadd.f32 %v2158_v24, %v158_v37 }
  0xa8   :  { %v190_v34 = vpop.f32.mrf.mxu1  ;;  %v160_v43 = vpop.f32.mrf.mxu0 }
  0xa9   :  { %v191_v36 = vadd.f32 %v2158_v24, %v190_v34  ;;  %v161_v45 = vadd.f32 %v2158_v24, %v160_v43 }
  0xab   :  { %v2168_v39 = vpack.c.bf16 %v191_v36, %v189_v35  ;;  %v1698_v50 = vpack.c.bf16 %v161_v45, %v159_v44 }
  0xad   :  { %v1746_v51 = vunpack.c.l.bf16 %v1698_v50  ;;  %v1747_v55 = vunpack.c.h.bf16 %v1698_v50 }
  0xb0   :  { %v277_v41 = vpop.f32.mrf.mxu1 }
  0xb1   :  { %v287_v42 = vadd.f32 %v1742_v40, %v277_v41 }
  0xb3   :  { %1874 = vtanh.f32 %v287_v42  ;;  %v1648_v60 = vmul.f32 -1.442695, %v287_v42 }
  0xb8   :  { %v279_v47 = vpop.f32.mrf.mxu1 }
  0xb9   :  { %v1875_v48 = vpop.eup %1874  ;;  %v288_v49 = vadd.f32 %v1743_v46, %v279_v47 }
  0xba   :  { %379 = vrot.lane.b32.xlu0 %v1875_v48, %s2039_s4 }
  0xbb   :  { %1876 = vtanh.f32 %v288_v49  ;;  %v1649_v61 = vmul.f32 -1.442695, %v288_v49 }
  0xc0   :  { %v282_v52 = vpop.f32.mrf.mxu1 }
  0xc1   :  { %v1877_v53 = vpop.eup %1876  ;;  %v289_v54 = vadd.f32 %v1746_v51, %v282_v52 }
  0xc2   :  { %381 = vrot.lane.b32.xlu0 %v1877_v53, %s2039_s4 }
  0xc3   :  { %1878 = vtanh.f32 %v289_v54  ;;  %v1650_v0 = vmul.f32 -1.442695, %v289_v54 }
  0xc8   :  { %v284_v56 = vpop.f32.mrf.mxu1 }
  0xc9   :  { %v1879_v57 = vpop.eup %1878  ;;  %v290_v58 = vadd.f32 %v1747_v55, %v284_v56 }
  0xca   :  { %383 = vrot.lane.b32.xlu1 %v1879_v57, %s2039_s4 }
  0xcb   :  { %1880 = vtanh.f32 %v290_v58  ;;  %v1651_v4 = vmul.f32 -1.442695, %v290_v58 }
  0xcc   :  { %1882 = vpow2.f32 %v1648_v60 }
  0xcd   :  { %1884 = vpow2.f32 %v1649_v61 }
  0xd1   :  { %v1881_v59 = vpop.eup %1880 }
  0xd2   :  { %385 = vrot.lane.b32.xlu1 %v1881_v59, %s2039_s4  ;;  %v1883_v62 = vpop.eup %1882 }
  0xd3   :  { %v303_v63 = vadd.f32 1.0, %v1883_v62  ;;  %v1885_v1 = vpop.eup %1884 }
  0xd4   :  { %v304_v2 = vadd.f32 1.0, %v1885_v1 }
  0xd5   :  { %1886 = vrcp.f32 %v303_v63  ;;  %v318_v20 = vand.u32 2147483648, %v303_v63  ;;  %vm312_vm2 = vweird.f32 %v303_v63  ;;  %v316_v21 = vand.u32 2147483647, %v303_v63 }
  0xd6   :  { %1888 = vpow2.f32 %v1650_v0  ;;  %v333_v34 = vand.u32 2147483648, %v304_v2  ;;  %vm327_vm6 = vweird.f32 %v304_v2  ;;  %v331_v35 = vand.u32 2147483647, %v304_v2 }
  0xd7   :  { %1890 = vrcp.f32 %v304_v2  ;;  %v319_v26 = vor.u32 1.1754944e-38, %v318_v20  ;;  %vm317_vm4 = vcmp.eq.f32.partialorder %v316_v21, 8.507059e+37 }
  0xd8   :  { %1892 = vpow2.f32 %v1651_v4  ;;  %v334_v40 = vor.u32 1.1754944e-38, %v333_v34  ;;  %vm332_vm8 = vcmp.eq.f32.partialorder %v331_v35, 8.507059e+37  ;;  %v1689_v35 = vld [vmem:[%s2753_s0 + $0x48] sm:$0xff] }
  0xdb   :  { %v1887_v3 = vpop.eup %1886 }
  0xdc   :  { %v1889_v5 = vpop.eup %1888  ;;  %v308_v6 = vmul.f32 %v1887_v3, %v303_v63  ;;  %vm313_vm1 = vweird.f32 %v1887_v3 }
  0xdd   :  { %v305_v7 = vadd.f32 1.0, %v1889_v5  ;;  %v1891_v9 = vpop.eup %1890  ;;  %vm314_vm3 = vmor %vm312_vm2, %vm313_vm1 }
  0xde   :  { %v309_v8 = vsub.f32 1.0, %v308_v6  ;;  %v1893_v12 = vpop.eup %1892  ;;  %v323_v14 = vmul.f32 %v1891_v9, %v304_v2  ;;  %vm328_vm5 = vweird.f32 %v1891_v9  ;;  %v249_v6 = vld [vmem:[%s2754_s1] sm:$0xff] }
  0xdf   :  { %1894 = vrcp.f32 %v305_v7  ;;  %v306_v15 = vadd.f32 1.0, %v1893_v12  ;;  %vm329_vm7 = vmor %vm327_vm6, %vm328_vm5  ;;  %v348_v46 = vand.u32 2147483648, %v305_v7  ;;  %vm342_vm10 = vweird.f32 %v305_v7 }
  0xe0   :  { %v310_v13 = vmul.f32 %v1887_v3, %v309_v8  ;;  %v324_v18 = vsub.f32 1.0, %v323_v14  ;;  %v346_v47 = vand.u32 2147483647, %v305_v7 }
  0xe1   :  { %1896 = vrcp.f32 %v306_v15  ;;  %v349_v50 = vor.u32 1.1754944e-38, %v348_v46  ;;  %v363_v55 = vand.u32 2147483648, %v306_v15  ;;  %vm357_vm14 = vweird.f32 %v306_v15 }
  0xe2   :  { %v311_v16 = vadd.f32 %v1887_v3, %v310_v13  ;;  %v325_v23 = vmul.f32 %v1891_v9, %v324_v18  ;;  %vm347_vm12 = vcmp.eq.f32.partialorder %v346_v47, 8.507059e+37  ;;  %v361_v56 = vand.u32 2147483647, %v306_v15 }
  0xe3   :  { %v364_v58 = vor.u32 1.1754944e-38, %v363_v55 }
  0xe4   :  { %v315_v22 = vsel %vm314_vm3, %v1887_v3, %v311_v16  ;;  %v326_v31 = vadd.f32 %v1891_v9, %v325_v23  ;;  %vm362_vm1 = vcmp.eq.f32.partialorder %v361_v56, 8.507059e+37  ;;  %v250_v16 = vld [vmem:[%s2754_s1 + $0x8] sm:$0xff] }
  0xe5   :  { %v1895_v19 = vpop.eup %1894  ;;  %v2176_v28 = vsel %vm317_vm4, %v319_v26, %v315_v22  ;;  %v252_v26 = vld [vmem:[%s2754_s1 + $0x18] sm:$0xff] }
  0xe6   :  { %v338_v25 = vmul.f32 %v1895_v19, %v305_v7  ;;  %v330_v36 = vsel %vm329_vm7, %v1891_v9, %v326_v31  ;;  %vm343_vm9 = vweird.f32 %v1895_v19  ;;  %v371_v62 = vmul.f32 0.0, %v2176_v28 }
  0xe7   :  { %v1897_v33 = vpop.eup %1896  ;;  %v2180_v41 = vsel %vm332_vm8, %v334_v40, %v330_v36  ;;  %vm344_vm11 = vmor %vm342_vm10, %vm343_vm9 }
  0xe8   :  { %v339_v32 = vsub.f32 1.0, %v338_v25  ;;  %v353_v38 = vmul.f32 %v1897_v33, %v306_v15  ;;  %vm358_vm13 = vweird.f32 %v1897_v33  ;;  %v372_v1 = vmul.f32 0.0, %v2180_v41 }
  0xe9   :  { %vm359_vm15 = vmor %vm357_vm14, %vm358_vm13 }
  0xea   :  { %v340_v37 = vmul.f32 %v1895_v19, %v339_v32  ;;  %v354_v45 = vsub.f32 1.0, %v353_v38  ;;  %v2042_v38 = vmov 3  }
  0xec   :  { %v341_v44 = vadd.f32 %v1895_v19, %v340_v37  ;;  %v355_v49 = vmul.f32 %v1897_v33, %v354_v45  ;;  %v2044_v45 = vmov 4  }
  0xee   :  { %v345_v48 = vsel %vm344_vm11, %v1895_v19, %v341_v44  ;;  %v356_v54 = vadd.f32 %v1897_v33, %v355_v49  ;;  %v251_v19 = vld [vmem:[%s2754_s1 + $0x10] sm:$0xff]  ;;  %vm264_vm11 = vcmask 261120  }
  0xef   :  { %v2184_v52 = vsel %vm347_vm12, %v349_v50, %v345_v48 }
  0xf0   :  { %v360_v57 = vsel %vm359_vm15, %v1897_v33, %v356_v54  ;;  %v373_v7 = vmul.f32 0.0, %v2184_v52 }
  0xf1   :  { %v365_v59 = vsel %vm362_vm1, %v364_v58, %v360_v57 }
  0xf2   :  { %v374_v12 = vmul.f32 0.0, %v365_v59 }
 0x12c   :  { %v380_v27 = vpop.permute.xlu0 %379 }
 0x12d   :  { %v391_v30 = vmul.f32 %v380_v27, %v2176_v28  ;;  %v1688_v27 = vld [vmem:[%s2753_s0 + $0x40] sm:$0xff] }
 0x12e   :  { %1646 = vmatmul.msk.bf16.vlgmr.msra.gmra.mxu2 %vm113_vm0, %v1688_v27 }
 0x12f   :  { %399 = vrot.lane.b32.xlu2 %v391_v30, %s2039_s4  ;;  %1271 = vmatpush.bf16.msra.mxu2 %v2110_v10  ;;  %v253_v10 = vlaneseq }
 0x131   :  { %v2236_v37 = vand.u32 127, %v253_v10 }
 0x133   :  { %1272 = vmatpush.bf16.msra.mxu2 %v2128_v17  ;;  %vm255_vm2 = vcmp.lt.s32.totalorder %v2236_v37, 16 }
 0x134   :  { %v382_v42 = vpop.permute.xlu0 %381  ;;  %v2243_v40 = vsel %vm255_vm2, 1, %v2042_v38  ;;  %v2274_v46 = vsel %vm255_vm2, 0, %v2044_v45 }
 0x135   :  { %v392_v43 = vmul.f32 %v382_v42, %v2180_v41 }
 0x137   :  { %401 = vrot.lane.b32.xlu2 %v392_v43, %s2039_s4  ;;  %v2252_v43 = vsel %vm255_vm2, 4, %v2038_v11  ;;  %v1683_v11 = vld [vmem:[%s2753_s0 + $0x18] sm:$0xff] }
 0x13c   :  { %v384_v51 = vpop.permute.xlu1 %383 }
 0x13d   :  { %v393_v53 = vmul.f32 %v384_v51, %v2184_v52 }
 0x13e   :  { %1647 = vmatmul.msk.bf16.gmra.mxu2 %vm113_vm0, %v1689_v35 }
 0x13f   :  { %403 = vrot.lane.b32.xlu0 %v393_v53, %s2039_s4 }
 0x144   :  { %v386_v60 = vpop.permute.xlu1 %385 }
 0x145   :  { %v394_v61 = vmul.f32 %v386_v60, %v365_v59 }
 0x147   :  { %405 = vrot.lane.b32.xlu1 %v394_v61, %s2039_s4 }
 0x189   :  { %v400_v63 = vpop.permute.xlu2 %399 }
 0x18a   :  { %v411_v0 = vadd.f32 %v400_v63, %v371_v62 }
 0x18c   :  { %1898 = vtanh.f32 %v411_v0 }
 0x191   :  { %v402_v2 = vpop.permute.xlu2 %401 }
 0x192   :  { %v1899_v3 = vpop.eup %1898  ;;  %v412_v4 = vadd.f32 %v402_v2, %v372_v1 }
 0x193   :  { %423 = vrot.lane.b32.xlu2 %v1899_v3, %s2039_s4 }
 0x194   :  { %1900 = vtanh.f32 %v412_v4 }
 0x19a   :  { %v1901_v5 = vpop.eup %1900 }
 0x19b   :  { %425 = vrot.lane.b32.xlu0 %v1901_v5, %s2039_s4 }
 0x1a3   :  { %441 = vperm.xlu0 %1810, %v249_v6  }
 0x1b1   :  { %v404_v8 = vpop.permute.xlu0 %403  ;;  %v193_v60 = vpop.f32.mrf.mxu2 }
 0x1b2   :  { %v413_v9 = vadd.f32 %v404_v8, %v373_v7  ;;  %v194_v61 = vadd.f32 %v2158_v24, %v193_v60 }
 0x1b4   :  { %1902 = vtanh.f32 %v413_v9 }
 0x1b9   :  { %v406_v13 = vpop.permute.xlu1 %405  ;;  %v195_v62 = vpop.f32.mrf.mxu2 }
 0x1ba   :  { %v1903_v14 = vpop.eup %1902  ;;  %v2197_v15 = vadd.f32 %v406_v13, %v374_v12  ;;  %v196_v63 = vadd.f32 %v2158_v24, %v195_v62 }
 0x1bb   :  { %427 = vrot.lane.b32.xlu1 %v1903_v14, %s2039_s4 }
 0x1bc   :  { %1904 = vtanh.f32 %v2197_v15 }
 0x1c1   :  { %v198_v1 = vpop.f32.mrf.mxu2 }
 0x1c2   :  { %v1905_v18 = vpop.eup %1904  ;;  %v199_v2 = vadd.f32 %v2158_v24, %v198_v1 }
 0x1c3   :  { %444 = vperm.xlu1 %1811, %v250_v16   ;;  %429 = vrot.lane.b32.xlu2 %v1905_v18, %s2039_s4 }
 0x1c9   :  { %v200_v3 = vpop.f32.mrf.mxu2 }
 0x1cb   :  { %447 = vperm.xlu1 %1811, %v251_v19  }
 0x1d3   :  { %480 = vrot.lane.b32.xlu1 %v411_v0, %s2040_s16  ;;  %v2320_v0 = vpack.c.bf16 %v196_v63, %v194_v61 }
 0x1ed   :  { %v424_v20 = vpop.permute.xlu2 %423 }
 0x1ee   :  { %v435_v22 = vmul.f32 %v424_v20, %v2176_v28  ;;  %v1682_v28 = vld [vmem:[%s2753_s0 + $0x10] sm:$0xff] }
 0x1ef   :  { %1640 = vmatmul.msk.bf16.gmra.mxu0 %vm113_vm0, %v1682_v28 }
 0x1ff   :  { %1641 = vmatmul.msk.bf16.gmra.mxu0 %vm113_vm0, %v1683_v11 }
 0x20d   :  { %v426_v21 = vpop.permute.xlu0 %425 }
 0x20e   :  { %v436_v23 = vmul.f32 %v426_v21, %v2180_v41  ;;  %v2043_v41 = vmov 1  }
 0x20f   :  { %v2247_v42 = vsel %vm255_vm2, 3, %v2043_v41 }
 0x210   :  { %v1812_v25 = vpack.i.bf16 %v436_v23, %v435_v22 }
 0x212   :  { %1813 = vrot.lane.b32.xlu2 %v1812_v25, %s2041_s17 }
 0x215   :  { %v2270_v44 = vpop.permute.xlu0 %441 }
 0x216   :  { %vm452_vm10 = vcmp.gt.s32.totalorder %v2270_v44, %v2274_v46 }
 0x21a   :  { %450 = vperm.xlu2 %1817, %v252_v26  }
 0x21d   :  { %v430_v30 = vpop.permute.xlu2 %429 }
 0x21e   :  { %v438_v32 = vmul.f32 %v430_v30, %v365_v59 }
 0x222   :  { %482 = vrot.lane.b32.xlu2 %v412_v4, %s2040_s16  ;;  %v201_v4 = vadd.f32 %v2158_v24, %v200_v3 }
 0x224   :  { %v2324_v5 = vpack.c.bf16 %v201_v4, %v199_v2 }
 0x22a   :  { %484 = vrot.lane.b32.xlu2 %v413_v9, %s2040_s16 }
 0x22d   :  { %v428_v31 = vpop.permute.xlu1 %427 }
 0x22e   :  { %v437_v33 = vmul.f32 %v428_v31, %v2184_v52 }
 0x230   :  { %v1818_v34 = vpack.i.bf16 %v438_v32, %v437_v33 }
 0x232   :  { %1819 = vrot.lane.b32.xlu0 %v1818_v34, %s2041_s17 }
 0x235   :  { %v2233_v36 = vpop.permute.xlu1 %444 }
 0x236   :  { %vm702_vm3 = vcmp.gt.s32.totalorder %v2233_v36, %v2243_v40  ;;  %vm1173_vm5 = vcmp.gt.s32.totalorder %v2233_v36, %v2247_v42  ;;  %vm453_vm9 = vcmp.gt.s32.totalorder %v2233_v36, %v2274_v46 }
 0x23d   :  { %v2239_v17 = vpop.permute.xlu1 %447 }
 0x23e   :  { %vm703_vm4 = vcmp.gt.s32.totalorder %v2239_v17, %v2243_v40  ;;  %vm1174_vm6 = vcmp.gt.s32.totalorder %v2239_v17, %v2247_v42  ;;  %vm454_vm1 = vcmp.gt.s32.totalorder %v2239_v17, %v2274_v46 }
 0x245   :  { %v481_v23 = vpop.permute.xlu1 %480 }
 0x246   :  { %v2335_v25 = vsel %vm452_vm10, %v481_v23, 0.0 }
 0x26c   :  { %v1814_v47 = vpop.permute.xlu2 %1813  ;;  %v163_v6 = vpop.f32.mrf.mxu0 }
 0x26d   :  { %v1816_v48 = vunpack.i.h.bf16 %v1814_v47  ;;  %v1815_v49 = vunpack.i.l.bf16 %v1814_v47  ;;  %v164_v8 = vadd.f32 %v2158_v24, %v163_v6 }
 0x26f   :  { %v2283_v50 = vsel %vm453_vm9, %v1816_v48, 0.0  ;;  %v2288_v51 = vsel %vm452_vm10, %v1815_v49, 0.0 }
 0x270   :  { %v505_v52 = vpack.c.bf16 %v2283_v50, %v2288_v51 }
 0x272   :  { %1652 = vmatmul.msk.bf16.vlgmr.msrb.gmra.mxu2 %vm264_vm11, %v505_v52 }
 0x274   :  { %v2293_v53 = vpop.permute.xlu2 %450  ;;  %v165_v7 = vpop.f32.mrf.mxu0 }
 0x275   :  { %vm704_vm12 = vcmp.gt.s32.totalorder %v2293_v53, %v2243_v40  ;;  %vm1175_vm13 = vcmp.gt.s32.totalorder %v2293_v53, %v2247_v42  ;;  %vm455_vm15 = vcmp.gt.s32.totalorder %v2293_v53, %v2274_v46  ;;  %v166_v9 = vadd.f32 %v2158_v24, %v165_v7 }
 0x277   :  { %v1703_v12 = vpack.c.bf16 %v166_v9, %v164_v8 }
 0x279   :  { %v1750_v13 = vunpack.c.l.bf16 %v1703_v12  ;;  %v1751_v18 = vunpack.c.h.bf16 %v1703_v12 }
 0x27c   :  { %v168_v26 = vpop.f32.mrf.mxu0  ;;  %v483_v11 = vpop.permute.xlu2 %482 }
 0x27d   :  { %v169_v28 = vadd.f32 %v2158_v24, %v168_v26  ;;  %v2348_v47 = vsel %vm453_vm9, %v483_v11, 0.0 }
 0x284   :  { %v170_v27 = vpop.f32.mrf.mxu0  ;;  %v485_v48 = vpop.permute.xlu2 %484 }
 0x285   :  { %v171_v30 = vadd.f32 %v2158_v24, %v170_v27  ;;  %v2356_v52 = vsel %vm454_vm1, %v485_v48, 0.0 }
 0x287   :  { %v1708_v31 = vpack.c.bf16 %v171_v30, %v169_v28 }
 0x289   :  { %v1754_v32 = vunpack.c.l.bf16 %v1708_v31  ;;  %v1755_v34 = vunpack.c.h.bf16 %v1708_v31 }
 0x2a4   :  { %v1820_v54 = vpop.permute.xlu0 %1819 }
 0x2a5   :  { %v1822_v55 = vunpack.i.h.bf16 %v1820_v54  ;;  %v1821_v56 = vunpack.i.l.bf16 %v1820_v54 }
 0x2a7   :  { %v2308_v57 = vsel %vm454_vm1, %v1821_v56, 0.0  ;;  %v2313_v58 = vsel %vm455_vm15, %v1822_v55, 0.0 }
 0x2a8   :  { %v506_v59 = vpack.c.bf16 %v2313_v58, %v2308_v57 }
 0x2aa   :  { %1653 = vmatmul.msk.bf16.gmra.mxu2 %vm264_vm11, %v506_v59 }
 0x2f5   :  { %v522_v14 = vpop.f32.mrf.mxu2 }
 0x2f6   :  { %v532_v16 = vadd.f32 %v1750_v13, %v522_v14 }
 0x2f8   :  { %1906 = vtanh.f32 %v532_v16  ;;  %v1654_v49 = vmul.f32 -1.442695, %v532_v16 }
 0x2fd   :  { %v524_v19 = vpop.f32.mrf.mxu2 }
 0x2fe   :  { %v1907_v20 = vpop.eup %1906  ;;  %v533_v21 = vadd.f32 %v1751_v18, %v524_v19 }
 0x2ff   :  { %640 = vrot.lane.b32.xlu0 %v1907_v20, %s2039_s4 }
 0x300   :  { %1908 = vtanh.f32 %v533_v21  ;;  %v1655_v54 = vmul.f32 -1.442695, %v533_v21 }
 0x306   :  { %v1909_v22 = vpop.eup %1908 }
 0x307   :  { %486 = vrot.lane.b32.xlu0 %v2197_v15, %s2040_s16  ;;  %642 = vrot.lane.b32.xlu1 %v1909_v22, %s2039_s4 }
 0x30f   :  { %620 = vrot.lane.b32.xlu0 %v2335_v25, %s2039_s4 }
 0x32d   :  { %v527_v15 = vpop.f32.mrf.mxu2 }
 0x32e   :  { %v2341_v33 = vadd.f32 %v1754_v32, %v527_v15 }
 0x330   :  { %1910 = vtanh.f32 %v2341_v33 }
 0x335   :  { %v529_v35 = vpop.f32.mrf.mxu2 }
 0x336   :  { %v1911_v38 = vpop.eup %1910  ;;  %v535_v41 = vadd.f32 %v1755_v34, %v529_v35  ;;  %v1656_v35 = vmul.f32 -1.442695, %v2341_v33 }
 0x337   :  { %644 = vrot.lane.b32.xlu1 %v1911_v38, %s2039_s4 }
 0x338   :  { %1912 = vtanh.f32 %v535_v41  ;;  %v1657_v8 = vmul.f32 -1.442695, %v535_v41 }
 0x339   :  { %1914 = vpow2.f32 %v1654_v49 }
 0x33a   :  { %1916 = vpow2.f32 %v1655_v54 }
 0x33e   :  { %v1913_v45 = vpop.eup %1912 }
 0x33f   :  { %622 = vrot.lane.b32.xlu1 %v2348_v47, %s2039_s4  ;;  %646 = vrot.lane.b32.xlu2 %v1913_v45, %s2039_s4  ;;  %v1915_v55 = vpop.eup %1914 }
 0x340   :  { %v548_v56 = vadd.f32 1.0, %v1915_v55  ;;  %v1917_v59 = vpop.eup %1916 }
 0x341   :  { %v549_v60 = vadd.f32 1.0, %v1917_v59 }
 0x342   :  { %1918 = vrcp.f32 %v548_v56  ;;  %v563_v7 = vand.u32 2147483648, %v548_v56  ;;  %vm557_vm9 = vweird.f32 %v548_v56  ;;  %v561_v9 = vand.u32 2147483647, %v548_v56 }
 0x343   :  { %1920 = vrcp.f32 %v549_v60  ;;  %v578_v21 = vand.u32 2147483648, %v549_v60  ;;  %vm572_vm14 = vweird.f32 %v549_v60  ;;  %v576_v22 = vand.u32 2147483647, %v549_v60 }
 0x344   :  { %v564_v14 = vor.u32 1.1754944e-38, %v563_v7  ;;  %1922 = vpow2.f32 %v1657_v8  ;;  %vm562_vm1 = vcmp.eq.f32.partialorder %v561_v9, 8.507059e+37 }
 0x345   :  { %v579_v27 = vor.u32 1.1754944e-38, %v578_v21 }
 0x347   :  { %624 = vrot.lane.b32.xlu1 %v2356_v52, %s2039_s4 }
 0x348   :  { %v1919_v61 = vpop.eup %1918 }
 0x349   :  { %v553_v62 = vmul.f32 %v1919_v61, %v548_v56  ;;  %v1921_v1 = vpop.eup %1920  ;;  %vm558_vm2 = vweird.f32 %v1919_v61 }
 0x34a   :  { %v568_v3 = vmul.f32 %v1921_v1, %v549_v60  ;;  %vm559_vm10 = vmor %vm557_vm9, %vm558_vm2  ;;  %vm573_vm8 = vweird.f32 %v1921_v1  ;;  %v1923_v23 = vpop.eup %1922  ;;  %vm577_vm2 = vcmp.eq.f32.partialorder %v576_v22, 8.507059e+37 }
 0x34b   :  { %v554_v63 = vsub.f32 1.0, %v553_v62  ;;  %vm574_vm7 = vmor %vm572_vm14, %vm573_vm8  ;;  %v551_v28 = vadd.f32 1.0, %v1923_v23 }
 0x34c   :  { %v569_v6 = vsub.f32 1.0, %v568_v3 }
 0x34d   :  { %v555_v2 = vmul.f32 %v1919_v61, %v554_v63  ;;  %1924 = vrcp.f32 %v551_v28  ;;  %v608_v55 = vand.u32 2147483648, %v551_v28  ;;  %vm602_vm8 = vweird.f32 %v551_v28 }
 0x34e   :  { %v570_v13 = vmul.f32 %v1921_v1, %v569_v6  ;;  %1926 = vpow2.f32 %v1656_v35  ;;  %v606_v33 = vand.u32 2147483647, %v551_v28 }
 0x34f   :  { %v556_v4 = vadd.f32 %v1919_v61, %v555_v2  ;;  %v609_v60 = vor.u32 1.1754944e-38, %v608_v55 }
 0x350   :  { %v571_v20 = vadd.f32 %v1921_v1, %v570_v13 }
 0x351   :  { %v560_v12 = vsel %vm559_vm10, %v1919_v61, %v556_v4 }
 0x352   :  { %v2360_v18 = vsel %vm562_vm1, %v564_v14, %v560_v12  ;;  %v575_v26 = vsel %vm574_vm7, %v1921_v1, %v571_v20 }
 0x353   :  { %v2364_v32 = vsel %vm577_vm2, %v579_v27, %v575_v26  ;;  %v1925_v38 = vpop.eup %1924 }
 0x354   :  { %v1927_v41 = vpop.eup %1926  ;;  %v598_v11 = vmul.f32 %v1925_v38, %v551_v28  ;;  %vm603_vm7 = vweird.f32 %v1925_v38 }
 0x355   :  { %v550_v45 = vadd.f32 1.0, %v1927_v41  ;;  %vm604_vm14 = vmor %vm602_vm8, %vm603_vm7  ;;  %vm701_vm7 = vcmp.gt.s32.totalorder %v2270_v44, %v2243_v40 }
 0x356   :  { %v599_v48 = vsub.f32 1.0, %v598_v11 }
 0x357   :  { %1928 = vrcp.f32 %v550_v45  ;;  %v593_v4 = vand.u32 2147483648, %v550_v45  ;;  %vm587_vm10 = vweird.f32 %v550_v45  ;;  %v591_v6 = vand.u32 2147483647, %v550_v45 }
 0x358   :  { %v600_v46 = vmul.f32 %v1925_v38, %v599_v48 }
 0x359   :  { %v594_v8 = vor.u32 1.1754944e-38, %v593_v4  ;;  %vm592_vm2 = vcmp.eq.f32.partialorder %v591_v6, 8.507059e+37 }
 0x35a   :  { %v601_v49 = vadd.f32 %v1925_v38, %v600_v46 }
 0x35c   :  { %v605_v56 = vsel %vm604_vm14, %v1925_v38, %v601_v49 }
 0x35d   :  { %v1929_v54 = vpop.eup %1928 }
 0x35e   :  { %v583_v59 = vmul.f32 %v1929_v54, %v550_v45  ;;  %vm588_vm9 = vweird.f32 %v1929_v54 }
 0x35f   :  { %vm589_vm1 = vmor %vm587_vm10, %vm588_vm9 }
 0x360   :  { %v584_v1 = vsub.f32 1.0, %v583_v59  ;;  %v1684_v59 = vld [vmem:[%s2753_s0 + $0x20] sm:$0xff] }
 0x361   :  { %1642 = vmatmul.msk.bf16.gmra.mxu0 %vm113_vm0, %v1684_v59 }
 0x362   :  { %v585_v2 = vmul.f32 %v1929_v54, %v584_v1 }
 0x364   :  { %v586_v3 = vadd.f32 %v1929_v54, %v585_v2 }
 0x366   :  { %v590_v7 = vsel %vm589_vm1, %v1929_v54, %v586_v3 }
 0x367   :  { %v595_v12 = vsel %vm592_vm2, %v594_v8, %v590_v7 }
 0x371   :  { %v641_v16 = vpop.permute.xlu0 %640 }
 0x372   :  { %v652_v19 = vmul.f32 %v641_v16, %v2360_v18 }
 0x374   :  { %660 = vrot.lane.b32.xlu2 %v652_v19, %s2039_s4 }
 0x379   :  { %v487_v30 = vpop.permute.xlu0 %486  ;;  %v643_v31 = vpop.permute.xlu1 %642 }
 0x37a   :  { %v2369_v15 = vsel %vm455_vm15, %v487_v30, 0.0  ;;  %v653_v34 = vmul.f32 %v643_v31, %v2364_v32  ;;  %vm607_vm15 = vcmp.eq.f32.partialorder %v606_v33, 8.507059e+37 }
 0x37b   :  { %v610_v62 = vsel %vm607_vm15, %v609_v60, %v605_v56 }
 0x37c   :  { %662 = vrot.lane.b32.xlu0 %v653_v34, %s2039_s4  ;;  %626 = vrot.lane.b32.xlu2 %v2369_v15, %s2039_s4 }
 0x381   :  { %v621_v14 = vpop.permute.xlu0 %620 }
 0x382   :  { %v632_v16 = vmul.f32 %v621_v14, %v2360_v18 }
 0x399   :  { %v647_v61 = vpop.permute.xlu2 %646 }
 0x39a   :  { %v655_v63 = vmul.f32 %v647_v61, %v610_v62 }
 0x39c   :  { %666 = vrot.lane.b32.xlu1 %v655_v63, %s2039_s4 }
 0x3a9   :  { %v645_v9 = vpop.permute.xlu1 %644 }
 0x3aa   :  { %v654_v13 = vmul.f32 %v645_v9, %v595_v12 }
 0x3ac   :  { %664 = vrot.lane.b32.xlu0 %v654_v13, %s2039_s4 }
 0x3b1   :  { %v623_v22 = vpop.permute.xlu1 %622 }
 0x3b2   :  { %v633_v23 = vmul.f32 %v623_v22, %v2364_v32 }
 0x3b9   :  { %v625_v30 = vpop.permute.xlu1 %624 }
 0x3ba   :  { %v634_v11 = vmul.f32 %v625_v30, %v595_v12 }
 0x3ce   :  { %v661_v19 = vpop.permute.xlu2 %660 }
 0x3cf   :  { %v672_v20 = vadd.f32 %v661_v19, %v632_v16 }
 0x3d1   :  { %1930 = vtanh.f32 %v672_v20 }
 0x3d6   :  { %v627_v31 = vpop.permute.xlu2 %626 }
 0x3d7   :  { %v1931_v21 = vpop.eup %1930  ;;  %v635_v34 = vmul.f32 %v627_v31, %v610_v62 }
 0x3d8   :  { %684 = vrot.lane.b32.xlu2 %v1931_v21, %s2039_s4 }
 0x3de   :  { %v173_v19 = vpop.f32.mrf.mxu0 }
 0x3df   :  { %v174_v21 = vadd.f32 %v2158_v24, %v173_v19 }
 0x3ee   :  { %v663_v26 = vpop.permute.xlu0 %662 }
 0x3ef   :  { %v673_v27 = vadd.f32 %v663_v26, %v633_v23 }
 0x3f1   :  { %1932 = vtanh.f32 %v673_v27 }
 0x3f7   :  { %v1933_v28 = vpop.eup %1932 }
 0x3f8   :  { %686 = vrot.lane.b32.xlu0 %v1933_v28, %s2039_s4 }
 0x40e   :  { %v667_v35 = vpop.permute.xlu1 %666 }
 0x40f   :  { %v675_v38 = vadd.f32 %v667_v35, %v635_v34 }
 0x411   :  { %1934 = vtanh.f32 %v675_v38 }
 0x417   :  { %v1935_v41 = vpop.eup %1934 }
 0x418   :  { %690 = vrot.lane.b32.xlu2 %v1935_v41, %s2039_s4 }
 0x41e   :  { %v665_v45 = vpop.permute.xlu0 %664 }
 0x41f   :  { %v674_v48 = vadd.f32 %v665_v45, %v634_v11 }
 0x420   :  { %729 = vrot.lane.b32.xlu2 %v672_v20, %s2040_s16  ;;  %v175_v20 = vpop.f32.mrf.mxu0 }
 0x421   :  { %1936 = vtanh.f32 %v674_v48 }
 0x427   :  { %v1937_v46 = vpop.eup %1936 }
 0x428   :  { %688 = vrot.lane.b32.xlu1 %v1937_v46, %s2039_s4 }
 0x432   :  { %v685_v49 = vpop.permute.xlu2 %684 }
 0x433   :  { %v696_v55 = vmul.f32 %v685_v49, %v2360_v18 }
 0x46a   :  { %v687_v54 = vpop.permute.xlu0 %686 }
 0x46b   :  { %v697_v33 = vmul.f32 %v687_v54, %v2364_v32  ;;  %v1685_v32 = vld [vmem:[%s2753_s0 + $0x28] sm:$0xff] }
 0x46c   :  { %1643 = vmatmul.msk.bf16.gmra.mxu0 %vm113_vm0, %v1685_v32 }
 0x46d   :  { %v1823_v56 = vpack.i.bf16 %v697_v33, %v696_v55 }
 0x46f   :  { %1824 = vrot.lane.b32.xlu0 %v1823_v56, %s2041_s17 }
 0x472   :  { %v691_v60 = vpop.permute.xlu2 %690 }
 0x473   :  { %v699_v63 = vmul.f32 %v691_v60, %v610_v62 }
 0x477   :  { %731 = vrot.lane.b32.xlu0 %v673_v27, %s2040_s16 }
 0x47a   :  { %v730_v35 = vpop.permute.xlu2 %729 }
 0x47b   :  { %v741_v11 = vsel %vm701_vm7, %v730_v35, %v2335_v25 }
 0x47f   :  { %733 = vrot.lane.b32.xlu0 %v674_v48, %s2040_s16 }
 0x49a   :  { %v689_v61 = vpop.permute.xlu1 %688 }
 0x49b   :  { %v698_v1 = vmul.f32 %v689_v61, %v595_v12 }
 0x49d   :  { %v1828_v18 = vpack.i.bf16 %v699_v63, %v698_v1 }
 0x49f   :  { %1829 = vrot.lane.b32.xlu1 %v1828_v18, %s2041_s17 }
 0x4e1   :  { %v1825_v2 = vpop.permute.xlu0 %1824 }
 0x4e2   :  { %v1827_v3 = vunpack.i.h.bf16 %v1825_v2  ;;  %v1826_v4 = vunpack.i.l.bf16 %v1825_v2 }
 0x4e4   :  { %v2405_v62 = vsel %vm701_vm7, %v1826_v4, %v2288_v51  ;;  %v2411_v6 = vsel %vm702_vm3, %v1827_v3, %v2283_v50 }
 0x4e5   :  { %v754_v7 = vpack.c.bf16 %v2411_v6, %v2405_v62  ;;  %v1833_v8 = vpack.i.bf16 %v2411_v6, %v2405_v62 }
 0x4e7   :  { %1658 = vmatmul.msk.bf16.vlgmr.msra.gmra.mxu3 %vm264_vm11, %v754_v7 }
 0x4e9   :  { %v178_v41 = vpop.f32.mrf.mxu0  ;;  %v732_v25 = vpop.permute.xlu0 %731 }
 0x4ea   :  { %v179_v48 = vadd.f32 %v2158_v24, %v178_v41 }
 0x4f1   :  { %v180_v45 = vpop.f32.mrf.mxu0  ;;  %v734_v1 = vpop.permute.xlu0 %733 }
 0x4f2   :  { %v181_v46 = vadd.f32 %v2158_v24, %v180_v45  ;;  %v743_v32 = vsel %vm703_vm4, %v734_v1, %v2356_v52 }
 0x4f4   :  { %v1718_v49 = vpack.c.bf16 %v181_v46, %v179_v48 }
 0x4f6   :  { %v1762_v54 = vunpack.c.l.bf16 %v1718_v49 }
 0x511   :  { %v1830_v9 = vpop.permute.xlu1 %1829 }
 0x512   :  { %v1832_v12 = vunpack.i.h.bf16 %v1830_v9  ;;  %v1831_v13 = vunpack.i.l.bf16 %v1830_v9 }
 0x514   :  { %v2422_v51 = vsel %vm703_vm4, %v1831_v13, %v2308_v57  ;;  %v2428_v50 = vsel %vm704_vm12, %v1832_v12, %v2313_v58  ;;  %v176_v57 = vadd.f32 %v2158_v24, %v175_v20  ;;  %v742_v24 = vsel %vm702_vm3, %v732_v25, %v2348_v47 }
 0x515   :  { %v755_v14 = vpack.c.bf16 %v2428_v50, %v2422_v51  ;;  %v1838_v16 = vpack.i.bf16 %v2428_v50, %v2422_v51 }
 0x516   :  { %v1713_v22 = vpack.c.bf16 %v176_v57, %v174_v21 }
 0x517   :  { %1659 = vmatmul.msk.bf16.gmra.mxu3 %vm264_vm11, %v755_v14 }
 0x518   :  { %v1758_v23 = vunpack.c.l.bf16 %v1713_v22  ;;  %v1759_v58 = vunpack.c.h.bf16 %v1713_v22 }
 0x56a   :  { %v771_v26 = vpop.f32.mrf.mxu3 }
 0x56b   :  { %v781_v27 = vadd.f32 %v1758_v23, %v771_v26 }
 0x56d   :  { %1938 = vtanh.f32 %v781_v27  ;;  %v1660_v3 = vmul.f32 -1.442695, %v781_v27 }
 0x572   :  { %v773_v28 = vpop.f32.mrf.mxu3 }
 0x573   :  { %v1939_v30 = vpop.eup %1938  ;;  %v782_v31 = vadd.f32 %v1759_v58, %v773_v28 }
 0x574   :  { %889 = vrot.lane.b32.xlu1 %v1939_v30, %s2039_s4 }
 0x575   :  { %1940 = vtanh.f32 %v782_v31  ;;  %v1661_v61 = vmul.f32 -1.442695, %v782_v31 }
 0x57b   :  { %v1941_v34 = vpop.eup %1940 }
 0x57c   :  { %891 = vrot.lane.b32.xlu2 %v1941_v34, %s2039_s4  ;;  %735 = vrot.lane.b32.xlu1 %v675_v38, %s2040_s16  ;;  %v1763_v38 = vunpack.c.h.bf16 %v1718_v49 }
 0x584   :  { %869 = vrot.lane.b32.xlu1 %v741_v11, %s2039_s4 }
 0x59a   :  { %v776_v55 = vpop.f32.mrf.mxu3 }
 0x59b   :  { %v783_v33 = vadd.f32 %v1762_v54, %v776_v55 }
 0x59d   :  { %1942 = vtanh.f32 %v783_v33  ;;  %v1662_v21 = vmul.f32 -1.442695, %v783_v33 }
 0x5a2   :  { %v778_v56 = vpop.f32.mrf.mxu3 }
 0x5a3   :  { %v1943_v59 = vpop.eup %1942  ;;  %v2447_v60 = vadd.f32 %v1763_v38, %v778_v56 }
 0x5a4   :  { %893 = vrot.lane.b32.xlu2 %v1943_v59, %s2039_s4 }
 0x5a5   :  { %1944 = vtanh.f32 %v2447_v60  ;;  %v1663_v25 = vmul.f32 -1.442695, %v2447_v60 }
 0x5a6   :  { %1946 = vpow2.f32 %v1661_v61 }
 0x5ab   :  { %v1945_v63 = vpop.eup %1944 }
 0x5ac   :  { %871 = vrot.lane.b32.xlu2 %v742_v24, %s2039_s4  ;;  %895 = vrot.lane.b32.xlu0 %v1945_v63, %s2039_s4  ;;  %v1947_v18 = vpop.eup %1946 }
 0x5ad   :  { %v798_v2 = vadd.f32 1.0, %v1947_v18 }
 0x5af   :  { %1948 = vrcp.f32 %v798_v2  ;;  %v827_v20 = vand.u32 2147483648, %v798_v2  ;;  %vm821_vm3 = vweird.f32 %v798_v2  ;;  %v825_v52 = vand.u32 2147483647, %v798_v2 }
 0x5b0   :  { %1950 = vpow2.f32 %v1660_v3 }
 0x5b1   :  { %v828_v23 = vor.u32 1.1754944e-38, %v827_v20  ;;  %vm826_vm8 = vcmp.eq.f32.partialorder %v825_v52, 8.507059e+37 }
 0x5b4   :  { %873 = vrot.lane.b32.xlu2 %v743_v32, %s2039_s4 }
 0x5b5   :  { %v1949_v4 = vpop.eup %1948 }
 0x5b6   :  { %v1951_v47 = vpop.eup %1950  ;;  %v817_v7 = vmul.f32 %v1949_v4, %v798_v2  ;;  %vm822_vm0 = vweird.f32 %v1949_v4 }
 0x5b7   :  { %v797_v9 = vadd.f32 1.0, %v1951_v47  ;;  %vm823_vm4 = vmor %vm821_vm3, %vm822_vm0 }
 0x5b8   :  { %v818_v12 = vsub.f32 1.0, %v817_v7 }
 0x5b9   :  { %1952 = vrcp.f32 %v797_v9  ;;  %v812_v41 = vand.u32 2147483648, %v797_v9  ;;  %vm806_vm15 = vweird.f32 %v797_v9  ;;  %v810_v11 = vand.u32 2147483647, %v797_v9 }
 0x5ba   :  { %v819_v13 = vmul.f32 %v1949_v4, %v818_v12  ;;  %1954 = vpow2.f32 %v1662_v21 }
 0x5bb   :  { %v813_v48 = vor.u32 1.1754944e-38, %v812_v41  ;;  %vm811_vm10 = vcmp.eq.f32.partialorder %v810_v11, 8.507059e+37 }
 0x5bc   :  { %v820_v14 = vadd.f32 %v1949_v4, %v819_v13 }
 0x5be   :  { %v824_v57 = vsel %vm823_vm4, %v1949_v4, %v820_v14 }
 0x5bf   :  { %v1953_v19 = vpop.eup %1952  ;;  %v2462_v26 = vsel %vm826_vm8, %v828_v23, %v824_v57 }
 0x5c0   :  { %v802_v22 = vmul.f32 %v1953_v19, %v797_v9  ;;  %v1955_v30 = vpop.eup %1954  ;;  %vm807_vm14 = vweird.f32 %v1953_v19 }
 0x5c1   :  { %v799_v34 = vadd.f32 1.0, %v1955_v30  ;;  %vm808_vm9 = vmor %vm806_vm15, %vm807_vm14  ;;  %vm949_vm14 = vcmp.gt.s32.totalorder %v2270_v44, 2  ;;  %vm950_vm15 = vcmp.gt.s32.totalorder %v2233_v36, 2 }
 0x5c2   :  { %v803_v28 = vsub.f32 1.0, %v802_v22 }
 0x5c3   :  { %1956 = vrcp.f32 %v799_v34  ;;  %v842_v24 = vand.u32 2147483648, %v799_v34  ;;  %vm836_vm2 = vweird.f32 %v799_v34  ;;  %v840_v1 = vand.u32 2147483647, %v799_v34 }
 0x5c4   :  { %v804_v31 = vmul.f32 %v1953_v19, %v803_v28  ;;  %1958 = vpow2.f32 %v1663_v25 }
 0x5c5   :  { %v843_v2 = vor.u32 1.1754944e-38, %v842_v24  ;;  %vm841_vm0 = vcmp.eq.f32.partialorder %v840_v1, 8.507059e+37 }
 0x5c6   :  { %v805_v35 = vadd.f32 %v1953_v19, %v804_v31 }
 0x5c8   :  { %v809_v45 = vsel %vm808_vm9, %v1953_v19, %v805_v35  ;;  %vm951_vm9 = vcmp.gt.s32.totalorder %v2239_v17, 2 }
 0x5c9   :  { %v2466_v46 = vsel %vm811_vm10, %v813_v48, %v809_v45  ;;  %v1957_v55 = vpop.eup %1956  ;;  %vm952_vm10 = vcmp.gt.s32.totalorder %v2293_v53, 2 }
 0x5ca   :  { %v832_v33 = vmul.f32 %v1957_v55, %v799_v34  ;;  %vm837_vm1 = vweird.f32 %v1957_v55  ;;  %v1959_v18 = vpop.eup %1958 }
 0x5cb   :  { %vm838_vm7 = vmor %vm836_vm2, %vm837_vm1  ;;  %v800_v3 = vadd.f32 1.0, %v1959_v18 }
 0x5cc   :  { %v833_v59 = vsub.f32 1.0, %v832_v33 }
 0x5cd   :  { %1960 = vrcp.f32 %v800_v3  ;;  %v857_v13 = vand.u32 2147483648, %v800_v3  ;;  %vm851_vm3 = vweird.f32 %v800_v3  ;;  %v855_v14 = vand.u32 2147483647, %v800_v3 }
 0x5ce   :  { %v834_v61 = vmul.f32 %v1957_v55, %v833_v59 }
 0x5cf   :  { %v858_v20 = vor.u32 1.1754944e-38, %v857_v13  ;;  %vm856_vm8 = vcmp.eq.f32.partialorder %v855_v14, 8.507059e+37 }
 0x5d0   :  { %v835_v63 = vadd.f32 %v1957_v55, %v834_v61 }
 0x5d2   :  { %v839_v32 = vsel %vm838_vm7, %v1957_v55, %v835_v63 }
 0x5d3   :  { %v2476_v40 = vsel %vm841_vm0, %v843_v2, %v839_v32  ;;  %v1961_v4 = vpop.eup %1960 }
 0x5d4   :  { %v847_v47 = vmul.f32 %v1961_v4, %v800_v3 }
 0x5d6   :  { %v892_v27 = vpop.permute.xlu2 %891  ;;  %v848_v7 = vsub.f32 1.0, %v847_v47 }
 0x5d7   :  { %v902_v58 = vmul.f32 %v892_v27, %v2462_v26 }
 0x5d8   :  { %v849_v9 = vmul.f32 %v1961_v4, %v848_v7 }
 0x5d9   :  { %911 = vrot.lane.b32.xlu1 %v902_v58, %s2039_s4 }
 0x5da   :  { %v850_v12 = vadd.f32 %v1961_v4, %v849_v9 }
 0x5e6   :  { %v890_v49 = vpop.permute.xlu1 %889 }
 0x5e7   :  { %v901_v54 = vmul.f32 %v890_v49, %v2466_v46 }
 0x5e9   :  { %909 = vrot.lane.b32.xlu0 %v901_v54, %s2039_s4 }
 0x5ee   :  { %v736_v38 = vpop.permute.xlu1 %735 }
 0x5ef   :  { %v744_v56 = vsel %vm704_vm12, %v736_v38, %v2369_v15  ;;  %vm852_vm12 = vweird.f32 %v1961_v4 }
 0x5f0   :  { %vm853_vm4 = vmor %vm851_vm3, %vm852_vm12 }
 0x5f1   :  { %875 = vrot.lane.b32.xlu0 %v744_v56, %s2039_s4  ;;  %v854_v19 = vsel %vm853_vm4, %v1961_v4, %v850_v12  ;;  %v1766_v12 = vunpack.c.l.bf16 %v2162_v29 }
 0x5f2   :  { %v859_v52 = vsel %vm856_vm8, %v858_v20, %v854_v19  ;;  %v1767_v19 = vunpack.c.h.bf16 %v2162_v29 }
 0x5f6   :  { %v2489_v22 = vpop.permute.xlu1 %869 }
 0x5f7   :  { %v881_v62 = vmul.f32 %v2489_v22, %v2466_v46 }
 0x5fe   :  { %v894_v15 = vpop.permute.xlu2 %893 }
 0x5ff   :  { %v903_v60 = vmul.f32 %v894_v15, %v2476_v40 }
 0x601   :  { %913 = vrot.lane.b32.xlu1 %v903_v60, %s2039_s4 }
 0x606   :  { %v2491_v23 = vpop.permute.xlu2 %871 }
 0x607   :  { %v882_v27 = vmul.f32 %v2491_v23, %v2462_v26 }
 0x60e   :  { %v2505_v50 = vpop.permute.xlu2 %873 }
 0x61e   :  { %v896_v21 = vpop.permute.xlu0 %895 }
 0x61f   :  { %v904_v57 = vmul.f32 %v896_v21, %v859_v52 }
 0x621   :  { %915 = vrot.lane.b32.xlu2 %v904_v57, %s2039_s4 }
 0x629   :  { %1834 = vrot.lane.b32.xlu2 %v1833_v8, %s2041_s17 }
 0x631   :  { %1839 = vrot.lane.b32.xlu2 %v1838_v16, %s2041_s17  ;;  %v883_v16 = vmul.f32 %v2505_v50, %v2476_v40 }
 0x64b   :  { %v912_v58 = vpop.permute.xlu1 %911 }
 0x64c   :  { %v2495_v28 = vadd.f32 %v912_v58, %v882_v27  ;;  %v1770_v27 = vunpack.c.l.bf16 %v2168_v39 }
 0x64e   :  { %1962 = vtanh.f32 %v2495_v28 }
 0x654   :  { %v1963_v30 = vpop.eup %1962 }
 0x655   :  { %935 = vrot.lane.b32.xlu1 %v1963_v30, %s2039_s4 }
 0x65b   :  { %v910_v6 = vpop.permute.xlu0 %909 }
 0x65c   :  { %v2501_v8 = vadd.f32 %v910_v6, %v881_v62  ;;  %v1771_v62 = vunpack.c.h.bf16 %v2168_v39 }
 0x65e   :  { %1964 = vtanh.f32 %v2501_v8 }
 0x663   :  { %v2512_v35 = vpop.permute.xlu0 %875 }
 0x664   :  { %v1965_v51 = vpop.eup %1964  ;;  %v884_v41 = vmul.f32 %v2512_v35, %v859_v52 }
 0x665   :  { %933 = vrot.lane.b32.xlu0 %v1965_v51, %s2039_s4 }
 0x673   :  { %v914_v31 = vpop.permute.xlu1 %913 }
 0x674   :  { %v2509_v34 = vadd.f32 %v914_v31, %v883_v16 }
 0x676   :  { %1966 = vtanh.f32 %v2509_v34 }
 0x67b   :  { %v916_v11 = vpop.permute.xlu2 %915 }
 0x67c   :  { %v1967_v45 = vpop.eup %1966  ;;  %v2515_v48 = vadd.f32 %v916_v11, %v884_v41 }
 0x67d   :  { %937 = vrot.lane.b32.xlu0 %v1967_v45, %s2039_s4 }
 0x67e   :  { %1968 = vtanh.f32 %v2515_v48 }
 0x683   :  { %v1835_v55 = vpop.permute.xlu2 %1834 }
 0x684   :  { %v1969_v49 = vpop.eup %1968  ;;  %v1837_v56 = vunpack.i.h.bf16 %v1835_v55  ;;  %v1836_v59 = vunpack.i.l.bf16 %v1835_v55 }
 0x685   :  { %939 = vrot.lane.b32.xlu1 %v1969_v49, %s2039_s4 }
 0x68b   :  { %v1840_v1 = vpop.permute.xlu2 %1839 }
 0x68c   :  { %v1842_v2 = vunpack.i.h.bf16 %v1840_v1  ;;  %v1841_v3 = vunpack.i.l.bf16 %v1840_v1 }
 0x6c7   :  { %v936_v54 = vpop.permute.xlu1 %935 }
 0x6c8   :  { %v946_v33 = vmul.f32 %v936_v54, %v2462_v26 }
 0x6ca   :  { %v2530_v63 = vsel %vm950_vm15, %v946_v33, %v1837_v56 }
 0x6d7   :  { %v934_v38 = vpop.permute.xlu0 %933 }
 0x6d8   :  { %v945_v25 = vmul.f32 %v934_v38, %v2466_v46 }
 0x6da   :  { %v2526_v61 = vsel %vm949_vm14, %v945_v25, %v1836_v59 }
 0x6db   :  { %v986_v26 = vpack.c.bf16 %v2530_v63, %v2526_v61  ;;  %v1848_v24 = vpack.i.bf16 %v2530_v63, %v2526_v61 }
 0x6dd   :  { %990 = vrot.lane.b32.xlu0 %v986_v26, %s2041_s17 }
 0x6ef   :  { %v938_v46 = vpop.permute.xlu0 %937 }
 0x6f0   :  { %v947_v18 = vmul.f32 %v938_v46, %v2476_v40 }
 0x6f2   :  { %v2542_v60 = vsel %vm951_vm9, %v947_v18, %v1841_v3 }
 0x6f7   :  { %v940_v32 = vpop.permute.xlu1 %939 }
 0x6f8   :  { %v948_v15 = vmul.f32 %v940_v32, %v859_v52 }
 0x6fa   :  { %v2546_v4 = vsel %vm952_vm10, %v948_v15, %v1842_v2 }
 0x6fb   :  { %v987_v47 = vpack.c.bf16 %v2546_v4, %v2542_v60  ;;  %v1858_v40 = vpack.i.bf16 %v2546_v4, %v2542_v60 }
 0x6fd   :  { %992 = vrot.lane.b32.xlu1 %v987_v47, %s2041_s17 }
 0x74f   :  { %v991_v7 = vpop.permute.xlu0 %990 }
 0x750   :  { %1664 = vmatmul.msk.bf16.vlgmr.msra.gmra.mxu1 %vm264_vm11, %v991_v7 }
 0x76f   :  { %v993_v9 = vpop.permute.xlu1 %992 }
 0x770   :  { %1665 = vmatmul.msk.bf16.gmra.mxu1 %vm264_vm11, %v993_v9 }
 0x7cd   :  { %v1009_v13 = vpop.f32.mrf.mxu1 }
 0x7ce   :  { %v1019_v14 = vadd.f32 %v1766_v12, %v1009_v13 }
 0x7d0   :  { %1970 = vtanh.f32 %v1019_v14  ;;  %v1666_v31 = vmul.f32 -1.442695, %v1019_v14 }
 0x7d5   :  { %v1011_v20 = vpop.f32.mrf.mxu1 }
 0x7d6   :  { %v1971_v21 = vpop.eup %1970  ;;  %v1020_v52 = vadd.f32 %v1767_v19, %v1011_v20 }
 0x7d7   :  { %1111 = vrot.lane.b32.xlu2 %v1971_v21, %s2039_s4 }
 0x7d8   :  { %1972 = vtanh.f32 %v1020_v52  ;;  %v1667_v55 = vmul.f32 -1.442695, %v1020_v52 }
 0x7de   :  { %v1973_v57 = vpop.eup %1972 }
 0x7df   :  { %1113 = vrot.lane.b32.xlu0 %v1973_v57, %s2039_s4 }
 0x7ed   :  { %v1014_v58 = vpop.f32.mrf.mxu1 }
 0x7ee   :  { %v1021_v30 = vadd.f32 %v1770_v27, %v1014_v58 }
 0x7f0   :  { %1974 = vtanh.f32 %v1021_v30  ;;  %v1668_v7 = vmul.f32 -1.442695, %v1021_v30 }
 0x7f5   :  { %v1016_v6 = vpop.f32.mrf.mxu1 }
 0x7f6   :  { %v1975_v51 = vpop.eup %1974  ;;  %v1022_v16 = vadd.f32 %v1771_v62, %v1016_v6 }
 0x7f7   :  { %1115 = vrot.lane.b32.xlu1 %v1975_v51, %s2039_s4 }
 0x7f8   :  { %1976 = vtanh.f32 %v1022_v16  ;;  %v1669_v56 = vmul.f32 -1.442695, %v1022_v16 }
 0x7f9   :  { %1978 = vpow2.f32 %v1666_v31 }
 0x7fe   :  { %v1977_v29 = vpop.eup %1976 }
 0x7ff   :  { %1117 = vrot.lane.b32.xlu2 %v1977_v29, %s2039_s4  ;;  %v1979_v41 = vpop.eup %1978 }
 0x800   :  { %v1035_v11 = vadd.f32 1.0, %v1979_v41 }
 0x802   :  { %1980 = vrcp.f32 %v1035_v11  ;;  %v1050_v38 = vand.u32 2147483648, %v1035_v11  ;;  %vm1044_vm2 = vweird.f32 %v1035_v11  ;;  %v1048_v59 = vand.u32 2147483647, %v1035_v11 }
 0x803   :  { %1982 = vpow2.f32 %v1667_v55 }
 0x804   :  { %v1051_v46 = vor.u32 1.1754944e-38, %v1050_v38  ;;  %1984 = vpow2.f32 %v1669_v56  ;;  %vm1049_vm0 = vcmp.eq.f32.partialorder %v1048_v59, 8.507059e+37 }
 0x808   :  { %v1981_v45 = vpop.eup %1980 }
 0x809   :  { %v1040_v49 = vmul.f32 %v1981_v45, %v1035_v11  ;;  %vm1045_vm1 = vweird.f32 %v1981_v45  ;;  %v1983_v25 = vpop.eup %1982 }
 0x80a   :  { %vm1046_vm7 = vmor %vm1044_vm2, %vm1045_vm1  ;;  %v1036_v1 = vadd.f32 1.0, %v1983_v25  ;;  %v1985_v3 = vpop.eup %1984 }
 0x80b   :  { %v1041_v54 = vsub.f32 1.0, %v1040_v49  ;;  %v1038_v15 = vadd.f32 1.0, %v1985_v3 }
 0x80c   :  { %1986 = vrcp.f32 %v1036_v1  ;;  %v1065_v27 = vand.u32 2147483648, %v1036_v1  ;;  %vm1059_vm3 = vweird.f32 %v1036_v1  ;;  %v1063_v58 = vand.u32 2147483647, %v1036_v1 }
 0x80d   :  { %v1042_v33 = vmul.f32 %v1981_v45, %v1041_v54  ;;  %1988 = vrcp.f32 %v1038_v15  ;;  %v1095_v11 = vand.u32 2147483648, %v1038_v15  ;;  %vm1089_vm2 = vweird.f32 %v1038_v15 }
 0x80e   :  { %1990 = vpow2.f32 %v1668_v7  ;;  %v1066_v30 = vor.u32 1.1754944e-38, %v1065_v27  ;;  %vm1064_vm8 = vcmp.eq.f32.partialorder %v1063_v58, 8.507059e+37  ;;  %v976_v27 = vsel %vm952_vm10, %v2515_v48, %v2512_v35 }
 0x80f   :  { %v1043_v39 = vadd.f32 %v1981_v45, %v1042_v33  ;;  %v1096_v55 = vor.u32 1.1754944e-38, %v1095_v11 }
 0x811   :  { %v1047_v26 = vsel %vm1046_vm7, %v1981_v45, %v1043_v39  ;;  %v1093_v45 = vand.u32 2147483647, %v1038_v15 }
 0x812   :  { %v2563_v32 = vsel %vm1049_vm0, %v1051_v46, %v1047_v26  ;;  %v1987_v47 = vpop.eup %1986 }
 0x813   :  { %v1055_v9 = vmul.f32 %v1987_v47, %v1036_v1  ;;  %v1989_v13 = vpop.eup %1988  ;;  %vm1060_vm12 = vweird.f32 %v1987_v47  ;;  %vm1094_vm0 = vcmp.eq.f32.partialorder %v1093_v45, 8.507059e+37 }
 0x814   :  { %v1991_v14 = vpop.eup %1990  ;;  %v1085_v20 = vmul.f32 %v1989_v13, %v1038_v15  ;;  %vm1061_vm4 = vmor %vm1059_vm3, %vm1060_vm12  ;;  %vm1090_vm1 = vweird.f32 %v1989_v13 }
 0x815   :  { %v1056_v12 = vsub.f32 1.0, %v1055_v9  ;;  %v1037_v21 = vadd.f32 1.0, %v1991_v14  ;;  %vm1091_vm7 = vmor %vm1089_vm2, %vm1090_vm1  ;;  %v974_v14 = vsel %vm950_vm15, %v2495_v28, %v2491_v23 }
 0x816   :  { %v1086_v57 = vsub.f32 1.0, %v1085_v20 }
 0x817   :  { %v1057_v19 = vmul.f32 %v1987_v47, %v1056_v12  ;;  %1992 = vrcp.f32 %v1037_v21  ;;  %v1080_v26 = vand.u32 2147483648, %v1037_v21  ;;  %vm1074_vm3 = vweird.f32 %v1037_v21 }
 0x818   :  { %v1087_v6 = vmul.f32 %v1989_v13, %v1086_v57  ;;  %v1078_v46 = vand.u32 2147483647, %v1037_v21 }
 0x819   :  { %v1058_v52 = vadd.f32 %v1987_v47, %v1057_v19  ;;  %v975_v19 = vsel %vm951_vm9, %v2509_v34, %v2505_v50 }
 0x81a   :  { %v1088_v31 = vadd.f32 %v1989_v13, %v1087_v6 }
 0x81b   :  { %v1062_v62 = vsel %vm1061_vm4, %v1987_v47, %v1058_v52  ;;  %v973_v47 = vsel %vm949_vm14, %v2501_v8, %v2489_v22  ;;  %vm1172_vm14 = vcmp.gt.s32.totalorder %v2270_v44, %v2247_v42 }
 0x81c   :  { %v2567_v16 = vsel %vm1064_vm8, %v1066_v30, %v1062_v62  ;;  %v1092_v49 = vsel %vm1091_vm7, %v1989_v13, %v1088_v31  ;;  %vm1079_vm8 = vcmp.eq.f32.partialorder %v1078_v46, 8.507059e+37  ;;  %v1103_v7 = vmul.f32 %v2563_v32, %v973_v47 }
 0x81d   :  { %v1993_v41 = vpop.eup %1992  ;;  %v2571_v39 = vsel %vm1094_vm0, %v1096_v55, %v1092_v49  ;;  %v1104_v22 = vmul.f32 %v2567_v16, %v974_v14 }
 0x81e   :  { %v1070_v54 = vmul.f32 %v1993_v41, %v1037_v21  ;;  %vm1075_vm12 = vweird.f32 %v1993_v41  ;;  %v1106_v23 = vmul.f32 %v2571_v39, %v976_v27 }
 0x81f   :  { %vm1076_vm4 = vmor %vm1074_vm3, %vm1075_vm12 }
 0x820   :  { %v1071_v56 = vsub.f32 1.0, %v1070_v54 }
 0x822   :  { %v1072_v59 = vmul.f32 %v1993_v41, %v1071_v56 }
 0x824   :  { %v1073_v25 = vadd.f32 %v1993_v41, %v1072_v59 }
 0x826   :  { %v1077_v1 = vsel %vm1076_vm4, %v1993_v41, %v1073_v25 }
 0x831   :  { %v1112_v18 = vpop.permute.xlu2 %1111 }
 0x832   :  { %v1123_v2 = vmul.f32 %v1112_v18, %v2563_v32  ;;  %v1081_v18 = vor.u32 1.1754944e-38, %v1080_v26 }
 0x834   :  { %1131 = vrot.lane.b32.xlu0 %v1123_v2, %s2039_s4  ;;  %v1082_v3 = vsel %vm1079_vm8, %v1081_v18, %v1077_v1 }
 0x835   :  { %v1105_v8 = vmul.f32 %v1082_v3, %v975_v19 }
 0x851   :  { %v1114_v51 = vpop.permute.xlu0 %1113 }
 0x852   :  { %v1124_v29 = vmul.f32 %v1114_v51, %v2567_v16 }
 0x854   :  { %1133 = vrot.lane.b32.xlu1 %v1124_v29, %s2039_s4 }
 0x859   :  { %v1118_v33 = vpop.permute.xlu2 %1117 }
 0x85a   :  { %v1126_v38 = vmul.f32 %v1118_v33, %v2571_v39 }
 0x85c   :  { %1137 = vrot.lane.b32.xlu0 %v1126_v38, %s2039_s4 }
 0x869   :  { %v1116_v2 = vpop.permute.xlu1 %1115 }
 0x86a   :  { %v1125_v15 = vmul.f32 %v1116_v2, %v1082_v3 }
 0x86c   :  { %1135 = vrot.lane.b32.xlu2 %v1125_v15, %s2039_s4  ;;  %v1778_v15 = vunpack.c.l.bf16 %v2324_v5 }
 0x8a6   :  { %v1132_v9 = vpop.permute.xlu0 %1131 }
 0x8a7   :  { %v1143_v12 = vadd.f32 %v1132_v9, %v1103_v7  ;;  %v1774_v9 = vunpack.c.l.bf16 %v2320_v0 }
 0x8a9   :  { %1994 = vtanh.f32 %v1143_v12 }
 0x8af   :  { %v1995_v13 = vpop.eup %1994 }
 0x8b0   :  { %1155 = vrot.lane.b32.xlu1 %v1995_v13, %s2039_s4  ;;  %v1779_v13 = vunpack.c.h.bf16 %v2324_v5 }
 0x8c6   :  { %v1134_v20 = vpop.permute.xlu1 %1133  ;;  %v1136_v21 = vpop.permute.xlu2 %1135 }
 0x8c7   :  { %v1144_v52 = vadd.f32 %v1134_v20, %v1104_v22  ;;  %v1145_v57 = vadd.f32 %v1136_v21, %v1105_v8  ;;  %v1775_v8 = vunpack.c.h.bf16 %v2320_v0 }
 0x8c9   :  { %1996 = vtanh.f32 %v1144_v52 }
 0x8ca   :  { %1998 = vtanh.f32 %v1145_v57 }
 0x8ce   :  { %v1138_v28 = vpop.permute.xlu0 %1137 }
 0x8cf   :  { %v1997_v58 = vpop.eup %1996  ;;  %v1146_v62 = vadd.f32 %v1138_v28, %v1106_v23 }
 0x8d0   :  { %v1999_v50 = vpop.eup %1998  ;;  %1157 = vrot.lane.b32.xlu2 %v1997_v58, %s2039_s4 }
 0x8d1   :  { %2000 = vtanh.f32 %v1146_v62  ;;  %1159 = vrot.lane.b32.xlu0 %v1999_v50, %s2039_s4 }
 0x8d7   :  { %v2001_v34 = vpop.eup %2000 }
 0x8d8   :  { %1161 = vrot.lane.b32.xlu1 %v2001_v34, %s2039_s4 }
 0x8d9   :  { %1849 = vrot.lane.b32.xlu0 %v1848_v24, %s2041_s17 }
 0x8e1   :  { %1220 = vrot.lane.b32.xlu0 %v1145_v57, %s2040_s16 }
 0x8e9   :  { %1238 = vrot.lane.b32.xlu0 %v976_v27, %s2040_s16 }
 0x8f1   :  { %1216 = vrot.lane.b32.xlu0 %v1143_v12, %s2040_s16 }
 0x8f9   :  { %1234 = vrot.lane.b32.xlu0 %v974_v14, %s2040_s16 }
 0x922   :  { %v1156_v35 = vpop.permute.xlu1 %1155 }
 0x923   :  { %v1167_v6 = vmul.f32 %v1156_v35, %v2563_v32 }
 0x92a   :  { %v1158_v48 = vpop.permute.xlu2 %1157 }
 0x92b   :  { %v1168_v30 = vmul.f32 %v1158_v48, %v2567_v16 }
 0x92d   :  { %v1843_v51 = vpack.i.bf16 %v1168_v30, %v1167_v6 }
 0x92f   :  { %1844 = vrot.lane.b32.xlu2 %v1843_v51, %s2041_s17 }
 0x937   :  { %1859 = vrot.lane.b32.xlu2 %v1858_v40, %s2041_s17 }
 0x93f   :  { %1236 = vrot.lane.b32.xlu2 %v975_v19, %s2040_s16 }
 0x943   :  { %v1160_v61 = vpop.permute.xlu0 %1159 }
 0x944   :  { %v1169_v24 = vmul.f32 %v1160_v61, %v1082_v3 }
 0x947   :  { %1232 = vrot.lane.b32.xlu2 %v973_v47, %s2040_s16 }
 0x94a   :  { %v1162_v63 = vpop.permute.xlu1 %1161 }
 0x94b   :  { %v1170_v29 = vmul.f32 %v1162_v63, %v2571_v39  ;;  %v1850_v16 = vpop.permute.xlu0 %1849 }
 0x94c   :  { %v1852_v60 = vunpack.i.h.bf16 %v1850_v16  ;;  %v1851_v4 = vunpack.i.l.bf16 %v1850_v16 }
 0x94d   :  { %v1853_v32 = vpack.i.bf16 %v1170_v29, %v1169_v24 }
 0x94f   :  { %1854 = vrot.lane.b32.xlu1 %v1853_v32, %s2041_s17 }
 0x953   :  { %v1221_v55 = vpop.permute.xlu0 %1220 }
 0x957   :  { %1222 = vrot.lane.b32.xlu1 %v1146_v62, %s2040_s16 }
 0x95b   :  { %v1239_v57 = vpop.permute.xlu0 %1238 }
 0x95f   :  { %1218 = vrot.lane.b32.xlu1 %v1144_v52, %s2040_s16 }
 0x963   :  { %v1217_v28 = vpop.permute.xlu0 %1216 }
 0x989   :  { %v1845_v31 = vpop.permute.xlu2 %1844 }
 0x98a   :  { %v1847_v40 = vunpack.i.h.bf16 %v1845_v31  ;;  %v1846_v41 = vunpack.i.l.bf16 %v1845_v31 }
 0x98c   :  { %v2625_v11 = vsel %vm1172_vm14, %v1846_v41, %v1851_v4  ;;  %v2630_v45 = vsel %vm1173_vm5, %v1847_v40, %v1852_v60 }
 0x98d   :  { %v1257_v49 = vpack.c.bf16 %v2630_v45, %v2625_v11 }
 0x98f   :  { %1670 = vmatmul.msk.bf16.vlgmr.msra.gmra.mxu2 %vm264_vm11, %v1257_v49 }
 0x991   :  { %v1860_v54 = vpop.permute.xlu2 %1859 }
 0x992   :  { %v1862_v56 = vunpack.i.h.bf16 %v1860_v54  ;;  %v1861_v59 = vunpack.i.l.bf16 %v1860_v54 }
 0x999   :  { %v1237_v33 = vpop.permute.xlu2 %1236 }
 0x99a   :  { %v1246_v39 = vsel %vm1174_vm6, %v1221_v55, %v1237_v33 }
 0x99b   :  { %1376 = vrot.lane.b32.xlu0 %v1246_v39, %s2039_s4 }
 0x9a1   :  { %v1233_v0 = vpop.permute.xlu2 %1232 }
 0x9a2   :  { %v1244_v58 = vsel %vm1172_vm14, %v1217_v28, %v1233_v0 }
 0x9c1   :  { %v1855_v38 = vpop.permute.xlu1 %1854 }
 0x9c2   :  { %v1857_v25 = vunpack.i.h.bf16 %v1855_v38  ;;  %v1856_v26 = vunpack.i.l.bf16 %v1855_v38 }
 0x9c4   :  { %v2642_v46 = vsel %vm1174_vm6, %v1856_v26, %v1861_v59  ;;  %v2647_v1 = vsel %vm1175_vm13, %v1857_v25, %v1862_v56 }
 0x9c5   :  { %v1258_v18 = vpack.c.bf16 %v2647_v1, %v2642_v46 }
 0x9c7   :  { %1671 = vmatmul.msk.bf16.gmra.mxu2 %vm264_vm11, %v1258_v18 }
 0x9c9   :  { %v1223_v27 = vpop.permute.xlu1 %1222 }
 0x9ca   :  { %v1247_v23 = vsel %vm1175_vm13, %v1223_v27, %v1239_v57 }
 0xa12   :  { %v1274_v2 = vpop.f32.mrf.mxu2 }
 0xa13   :  { %v1284_v12 = vadd.f32 %v1774_v9, %v1274_v2 }
 0xa15   :  { %v1672_v61 = vmul.f32 -1.442695, %v1284_v12 }
 0xa1a   :  { %v1276_v3 = vpop.f32.mrf.mxu2 }
 0xa1b   :  { %v1285_v20 = vadd.f32 %v1775_v8, %v1276_v3 }
 0xa1d   :  { %v1673_v50 = vmul.f32 -1.442695, %v1285_v20 }
 0xa4a   :  { %v1279_v47 = vpop.f32.mrf.mxu2 }
 0xa4b   :  { %v1286_v7 = vadd.f32 %v1778_v15, %v1279_v47 }
 0xa4d   :  { %2002 = vtanh.f32 %v1286_v7  ;;  %v1674_v48 = vmul.f32 -1.442695, %v1286_v7 }
 0xa4e   :  { %2004 = vtanh.f32 %v1284_v12 }
 0xa52   :  { %v1281_v14 = vpop.f32.mrf.mxu2 }
 0xa53   :  { %v2003_v19 = vpop.eup %2002  ;;  %v1287_v22 = vadd.f32 %v1779_v13, %v1281_v14 }
 0xa54   :  { %1396 = vrot.lane.b32.xlu1 %v2003_v19, %s2039_s4  ;;  %v2005_v21 = vpop.eup %2004  ;;  %v1219_v19 = vpop.permute.xlu1 %1218 }
 0xa55   :  { %2006 = vtanh.f32 %v1287_v22  ;;  %v1675_v62 = vmul.f32 -1.442695, %v1287_v22 }
 0xa56   :  { %2008 = vtanh.f32 %v1285_v20 }
 0xa57   :  { %2010 = vpow2.f32 %v1675_v62 }
 0xa58   :  { %2012 = vpow2.f32 %v1673_v50 }
 0xa5b   :  { %v2007_v52 = vpop.eup %2006 }
 0xa5c   :  { %1392 = vrot.lane.b32.xlu1 %v2005_v21, %s2039_s4  ;;  %1398 = vrot.lane.b32.xlu2 %v2007_v52, %s2039_s4  ;;  %v2009_v5 = vpop.eup %2008 }
 0xa5d   :  { %v2011_v34 = vpop.eup %2010 }
 0xa5e   :  { %v1303_v35 = vadd.f32 1.0, %v2011_v34  ;;  %v2013_v6 = vpop.eup %2012 }
 0xa5f   :  { %v1301_v30 = vadd.f32 1.0, %v2013_v6 }
 0xa60   :  { %2014 = vrcp.f32 %v1303_v35  ;;  %v1360_v55 = vand.u32 2147483648, %v1303_v35  ;;  %vm1354_vm13 = vweird.f32 %v1303_v35  ;;  %v1358_v33 = vand.u32 2147483647, %v1303_v35 }
 0xa61   :  { %2016 = vpow2.f32 %v1674_v48  ;;  %v1330_v47 = vand.u32 2147483648, %v1301_v30  ;;  %vm1324_vm1 = vweird.f32 %v1301_v30  ;;  %v1328_v7 = vand.u32 2147483647, %v1301_v30 }
 0xa62   :  { %2018 = vrcp.f32 %v1301_v30  ;;  %v1361_v59 = vor.u32 1.1754944e-38, %v1360_v55  ;;  %vm1359_vm9 = vcmp.eq.f32.partialorder %v1358_v33, 8.507059e+37 }
 0xa63   :  { %2020 = vpow2.f32 %v1672_v61  ;;  %v1331_v14 = vor.u32 1.1754944e-38, %v1330_v47  ;;  %vm1329_vm7 = vcmp.eq.f32.partialorder %v1328_v7, 8.507059e+37  ;;  %v1235_v61 = vpop.permute.xlu0 %1234 }
 0xa64   :  { %1378 = vrot.lane.b32.xlu1 %v1247_v23, %s2039_s4  ;;  %1394 = vrot.lane.b32.xlu2 %v2009_v5, %s2039_s4 }
 0xa66   :  { %v2015_v51 = vpop.eup %2014 }
 0xa67   :  { %v2017_v63 = vpop.eup %2016  ;;  %v1350_v24 = vmul.f32 %v2015_v51, %v1303_v35  ;;  %vm1355_vm6 = vweird.f32 %v2015_v51 }
 0xa68   :  { %v1302_v29 = vadd.f32 1.0, %v2017_v63  ;;  %v2019_v16 = vpop.eup %2018  ;;  %vm1356_vm15 = vmor %vm1354_vm13, %vm1355_vm6 }
 0xa69   :  { %v1351_v32 = vsub.f32 1.0, %v1350_v24  ;;  %v2021_v31 = vpop.eup %2020  ;;  %v1320_v4 = vmul.f32 %v2019_v16, %v1301_v30  ;;  %vm1325_vm10 = vweird.f32 %v2019_v16  ;;  %v1245_v24 = vsel %vm1173_vm5, %v1219_v19, %v1235_v61 }
 0xa6a   :  { %2022 = vrcp.f32 %v1302_v29  ;;  %v1300_v40 = vadd.f32 1.0, %v2021_v31  ;;  %vm1326_vm2 = vmor %vm1324_vm1, %vm1325_vm10  ;;  %v1345_v57 = vand.u32 2147483648, %v1302_v29  ;;  %vm1339_vm12 = vweird.f32 %v1302_v29  ;;  %v1478_v31 = vld [vmem:[%s2755_s2 + $0x8] sm:$0xff] }
 0xa6b   :  { %v1352_v60 = vmul.f32 %v2015_v51, %v1351_v32  ;;  %v1321_v49 = vsub.f32 1.0, %v1320_v4  ;;  %v1343_v27 = vand.u32 2147483647, %v1302_v29 }
 0xa6c   :  { %1372 = vrot.lane.b32.xlu1 %v1244_v58, %s2039_s4  ;;  %2024 = vrcp.f32 %v1300_v40  ;;  %v1346_v0 = vor.u32 1.1754944e-38, %v1345_v57  ;;  %v1315_v34 = vand.u32 2147483648, %v1300_v40  ;;  %vm1309_vm14 = vweird.f32 %v1300_v40 }
 0xa6d   :  { %v1353_v41 = vadd.f32 %v2015_v51, %v1352_v60  ;;  %v1322_v38 = vmul.f32 %v2019_v16, %v1321_v49  ;;  %vm1344_vm4 = vcmp.eq.f32.partialorder %v1343_v27, 8.507059e+37  ;;  %v1313_v35 = vand.u32 2147483647, %v1300_v40 }
 0xa6e   :  { %v1316_v6 = vor.u32 1.1754944e-38, %v1315_v34 }
 0xa6f   :  { %v1357_v39 = vsel %vm1356_vm15, %v2015_v51, %v1353_v41  ;;  %v1323_v2 = vadd.f32 %v2019_v16, %v1322_v38  ;;  %vm1314_vm13 = vcmp.eq.f32.partialorder %v1313_v35, 8.507059e+37 }
 0xa70   :  { %v2023_v54 = vpop.eup %2022  ;;  %v2668_v26 = vsel %vm1359_vm9, %v1361_v59, %v1357_v39 }
 0xa71   :  { %v1335_v56 = vmul.f32 %v2023_v54, %v1302_v29  ;;  %v1327_v9 = vsel %vm1326_vm2, %v2019_v16, %v1323_v2  ;;  %vm1340_vm0 = vweird.f32 %v2023_v54  ;;  %v1377_v29 = vpop.permute.xlu0 %1376 }
 0xa72   :  { %v2025_v15 = vpop.eup %2024  ;;  %v2672_v22 = vsel %vm1329_vm7, %v1331_v14, %v1327_v9  ;;  %vm1341_vm3 = vmor %vm1339_vm12, %vm1340_vm0  ;;  %vm2758_vm12 = vcmp.gt.s32.totalorder %v2239_v17, %v2252_v43 }
 0xa73   :  { %v1336_v3 = vsub.f32 1.0, %v1335_v56  ;;  %v1305_v13 = vmul.f32 %v2025_v15, %v1300_v40  ;;  %vm1310_vm8 = vweird.f32 %v2025_v15  ;;  %v1523_v40 = vcvt.s32.f32 %v1478_v31 }
 0xa74   :  { %vm1311_vm6 = vmor %vm1309_vm14, %vm1310_vm8 }
 0xa75   :  { %v1337_v12 = vmul.f32 %v2023_v54, %v1336_v3  ;;  %v1306_v52 = vsub.f32 1.0, %v1305_v13  ;;  %v1525_v41 = vmax.f32 %v1523_v40, 1e-10 }
 0xa77   :  { %v1338_v21 = vadd.f32 %v2023_v54, %v1337_v12  ;;  %v1307_v23 = vmul.f32 %v2025_v15, %v1306_v52  ;;  %vm1546_vm5 = vweird.f32 %v1525_v41  ;;  %v1552_v14 = vand.u32 2147483648, %v1525_v41 }
 0xa79   :  { %v1342_v5 = vsel %vm1341_vm3, %v2023_v54, %v1338_v21  ;;  %v1308_v50 = vadd.f32 %v2025_v15, %v1307_v23  ;;  %v1553_v57 = vor.u32 1.1754944e-38, %v1552_v14  ;;  %vm2759_vm3 = vcmp.gt.s32.totalorder %v2293_v53, %v2252_v43 }
 0xa7a   :  { %v2676_v58 = vsel %vm1344_vm4, %v1346_v0, %v1342_v5 }
 0xa7b   :  { %v1312_v48 = vsel %vm1311_vm6, %v2025_v15, %v1308_v50  ;;  %v1386_v16 = vmul.f32 %v1377_v29, %v2676_v58 }
 0xa7c   :  { %v2680_v30 = vsel %vm1314_vm13, %v1316_v6, %v1312_v48 }
 0xab6   :  { %v1399_v25 = vpop.permute.xlu2 %1398 }
 0xab7   :  { %v1407_v18 = vmul.f32 %v1399_v25, %v2668_v26  ;;  %v1477_v25 = vld [vmem:[%s2755_s2] sm:$0xff] }
 0xab8   :  { %v1522_v3 = vcvt.s32.f32 %v1477_v25 }
 0xab9   :  { %1418 = vrot.lane.b32.xlu0 %v1407_v18, %s2039_s4 }
 0xaba   :  { %v1524_v47 = vmax.f32 %v1522_v3, 1e-10 }
 0xabc   :  { %vm1531_vm1 = vweird.f32 %v1524_v47  ;;  %v1537_v50 = vand.u32 2147483648, %v1524_v47  ;;  %v1535_v35 = vand.u32 2147483647, %v1524_v47 }
 0xabe   :  { %v1395_v8 = vpop.permute.xlu2 %1394  ;;  %v1538_v48 = vor.u32 1.1754944e-38, %v1537_v50  ;;  %vm1536_vm0 = vcmp.eq.f32.partialorder %v1535_v35, 8.507059e+37 }
 0xabf   :  { %v1405_v20 = vmul.f32 %v1395_v8, %v2672_v22 }
 0xac1   :  { %1414 = vrot.lane.b32.xlu1 %v1405_v20, %s2039_s4  ;;  %v1550_v20 = vand.u32 2147483647, %v1525_v41 }
 0xac3   :  { %vm1551_vm10 = vcmp.eq.f32.partialorder %v1550_v20, 8.507059e+37 }
 0xac6   :  { %v1397_v28 = vpop.permute.xlu1 %1396 }
 0xac7   :  { %v1406_v62 = vmul.f32 %v1397_v28, %v2676_v58 }
 0xac9   :  { %1416 = vrot.lane.b32.xlu2 %v1406_v62, %s2039_s4 }
 0xace   :  { %v1393_v51 = vpop.permute.xlu1 %1392 }
 0xacf   :  { %v1404_v63 = vmul.f32 %v1393_v51, %v2680_v30 }
 0xad1   :  { %1374 = vrot.lane.b32.xlu2 %v1245_v24, %s2039_s4  ;;  %1412 = vrot.lane.b32.xlu0 %v1404_v63, %s2039_s4 }
 0xad6   :  { %v1379_v32 = vpop.permute.xlu1 %1378 }
 0xad7   :  { %v1387_v42 = vmul.f32 %v1379_v32, %v2668_v26 }
 0xade   :  { %v1373_v49 = vpop.permute.xlu1 %1372 }
 0xadf   :  { %v1384_v13 = vmul.f32 %v1373_v49, %v2680_v30 }
 0xb23   :  { %v1417_v60 = vpop.permute.xlu2 %1416 }
 0xb24   :  { %v1426_v4 = vadd.f32 %v1417_v60, %v1386_v16 }
 0xb26   :  { %2026 = vtanh.f32 %v1426_v4 }
 0xb27   :  { %2028 = vrcp.f32 %v1525_v41 }
 0xb2b   :  { %v1419_v54 = vpop.permute.xlu0 %1418  ;;  %v1375_v39 = vpop.permute.xlu2 %1374 }
 0xb2c   :  { %v2027_v55 = vpop.eup %2026  ;;  %v1427_v33 = vadd.f32 %v1419_v54, %v1387_v42  ;;  %v1385_v38 = vmul.f32 %v1375_v39, %v2672_v22 }
 0xb2d   :  { %1440 = vrot.lane.b32.xlu2 %v2027_v55, %s2039_s4  ;;  %v2029_v56 = vpop.eup %2028 }
 0xb2e   :  { %2030 = vtanh.f32 %v1427_v33  ;;  %v1542_v15 = vmul.f32 %v2029_v56, %v1525_v41  ;;  %vm1547_vm15 = vweird.f32 %v2029_v56 }
 0xb2f   :  { %vm1548_vm9 = vmor %vm1546_vm5, %vm1547_vm15  ;;  %vm1453_vm5 = vcmp.gt.s32.totalorder %v2270_v44, %v2252_v43  ;;  %v1570_v44 = vld [vmem:[%s2756_s6 + $0x10] sm:$0xff] }
 0xb30   :  { %v1543_v7 = vsub.f32 1.0, %v1542_v15 }
 0xb32   :  { %v1544_v12 = vmul.f32 %v2029_v56, %v1543_v7 }
 0xb33   :  { %v1415_v59 = vpop.permute.xlu1 %1414 }
 0xb34   :  { %v2031_v18 = vpop.eup %2030  ;;  %v1425_v2 = vadd.f32 %v1415_v59, %v1385_v38  ;;  %v1545_v8 = vadd.f32 %v2029_v56, %v1544_v12 }
 0xb35   :  { %1442 = vrot.lane.b32.xlu0 %v2031_v18, %s2039_s4 }
 0xb36   :  { %2032 = vtanh.f32 %v1425_v2  ;;  %v1549_v27 = vsel %vm1548_vm9, %v2029_v56, %v1545_v8  ;;  %vm2760_vm9 = vcmp.gt.s32.totalorder %v2233_v36, %v2252_v43  ;;  %v1568_v36 = vld [vmem:[%s2756_s6] sm:$0xff]  ;;  %v1569_v43 = vld [vmem:[%s2756_s6 + $0x8] sm:$0xff] }
 0xb37   :  { %2034 = vrcp.f32 %v1524_v47  ;;  %v1554_v23 = vsel %vm1551_vm10, %v1553_v57, %v1549_v27 }
 0xb3c   :  { %v2033_v9 = vpop.eup %2032 }
 0xb3d   :  { %1438 = vrot.lane.b32.xlu2 %v2033_v9, %s2039_s4  ;;  %v2035_v21 = vpop.eup %2034 }
 0xb3e   :  { %v1527_v5 = vmul.f32 %v2035_v21, %v1524_v47  ;;  %vm1532_vm2 = vweird.f32 %v2035_v21 }
 0xb3f   :  { %vm1533_vm7 = vmor %vm1531_vm1, %vm1532_vm2 }
 0xb40   :  { %v1528_v0 = vsub.f32 1.0, %v1527_v5 }
 0xb42   :  { %v1529_v62 = vmul.f32 %v2035_v21, %v1528_v0 }
 0xb43   :  { %v1413_v19 = vpop.permute.xlu0 %1412 }
 0xb44   :  { %v1424_v52 = vadd.f32 %v1413_v19, %v1384_v13  ;;  %v1530_v34 = vadd.f32 %v2035_v21, %v1529_v62 }
 0xb45   :  { %1490 = vperm.xlu2 %1817, %v1478_v31  }
 0xb46   :  { %2036 = vtanh.f32 %v1424_v52  ;;  %v1534_v6 = vsel %vm1533_vm7, %v2035_v21, %v1530_v34 }
 0xb47   :  { %v1539_v51 = vsel %vm1536_vm0, %v1538_v48, %v1534_v6 }
 0xb4c   :  { %v2037_v28 = vpop.eup %2036 }
 0xb4d   :  { %1563 = vperm.xlu2 %1817, %v1554_v23   ;;  %1436 = vrot.lane.b32.xlu1 %v2037_v28, %s2039_s4 }
 0xb55   :  { %1487 = vperm.xlu1 %1811, %v1477_v25   ;;  %v2045_v25 = vmov 0.0  }
 0xb5d   :  { %1558 = vperm.xlu1 %1811, %v1539_v51  }
 0xb87   :  { %v1441_v61 = vpop.permute.xlu2 %1440 }
 0xb88   :  { %v1450_v24 = vmul.f32 %v1441_v61, %v2676_v58 }
 0xb97   :  { %v1439_v16 = vpop.permute.xlu2 %1438 }
 0xb98   :  { %v1449_v60 = vmul.f32 %v1439_v16, %v2672_v22  ;;  %v1480_v22 = vshrl.u32 %v253_v10, 7 }
 0xb9a   :  { %v1482_v55 = vmul.u32 2, %v1480_v22 }
 0xb9c   :  { %vm1484_vm4 = vcmp.ge.s32.totalorder %v2236_v37, %v1482_v55 }
 0xb9f   :  { %v1491_v38 = vpop.permute.xlu2 %1490 }
 0xba7   :  { %v1443_v63 = vpop.permute.xlu0 %1442  ;;  %v1564_v7 = vpop.permute.xlu2 %1563 }
 0xba8   :  { %v1451_v29 = vmul.f32 %v1443_v63, %v2668_v26 }
 0xbaa   :  { %v1863_v32 = vpack.i.bf16 %v1451_v29, %v1450_v24 }
 0xbac   :  { %1864 = vrot.lane.b32.xlu0 %v1863_v32, %s2041_s17 }
 0xbbf   :  { %v1437_v31 = vpop.permute.xlu1 %1436 }
 0xbc0   :  { %v1448_v4 = vmul.f32 %v1437_v31, %v2680_v30  ;;  %v1481_v30 = vadd.s32 8, %v1480_v22 }
 0xbc2   :  { %v1868_v40 = vpack.i.bf16 %v1449_v60, %v1448_v4  ;;  %v1483_v39 = vmul.u32 2, %v1481_v30 }
 0xbc4   :  { %1869 = vrot.lane.b32.xlu0 %v1868_v40, %s2041_s17  ;;  %v1493_v59 = vadd.s32 %v1491_v38, %v1483_v39  ;;  %vm1485_vm14 = vcmp.ge.s32.totalorder %v2236_v37, %v1483_v39 }
 0xbc6   :  { %vm1495_vm6 = vcmp.lt.s32.totalorder %v2236_v37, %v1493_v59 }
 0xbc7   :  { %v1488_v33 = vpop.permute.xlu1 %1487  ;;  %vm1497_vm15 = vmand %vm1485_vm14, %vm1495_vm6 }
 0xbc8   :  { %v1492_v56 = vadd.s32 %v1488_v33, %v1482_v55  ;;  %v1677_v3 = vsel %vm1497_vm15, 1.0, %v2045_v25 }
 0xbca   :  { %vm1494_vm8 = vcmp.lt.s32.totalorder %v2236_v37, %v1492_v56 }
 0xbcb   :  { %vm1496_vm13 = vmand %vm1484_vm4, %vm1494_vm8 }
 0xbcc   :  { %v1676_v18 = vsel %vm1496_vm13, 1.0, %v2045_v25 }
 0xbcd   :  { %v1502_v37 = vpack.c.bf16 %v1677_v3, %v1676_v18 }
 0xbcf   :  { %v1559_v9 = vpop.permute.xlu1 %1558 }
 0xc1e   :  { %v1865_v41 = vpop.permute.xlu0 %1864 }
 0xc1f   :  { %v1867_v42 = vunpack.i.h.bf16 %v1865_v41  ;;  %v1866_v49 = vunpack.i.l.bf16 %v1865_v41 }
 0xc21   :  { %v1475_v26 = vsel %vm2758_vm12, %v1866_v49, %v2642_v46  ;;  %v1476_v58 = vsel %vm2759_vm3, %v1867_v42, %v2647_v1 }
 0xc22   :  { %v1504_v54 = vpack.c.bf16 %v1476_v58, %v1475_v26 }
 0xc24   :  { %1514 = vmatpush.bf16.msrb.mxu3 %v1504_v54 }
 0xc36   :  { %v1870_v17 = vpop.permute.xlu0 %1869 }
 0xc37   :  { %v1872_v53 = vunpack.i.h.bf16 %v1870_v17  ;;  %v1871_v46 = vunpack.i.l.bf16 %v1870_v17 }
 0xc39   :  { %v1473_v10 = vsel %vm1453_vm5, %v1871_v46, %v2625_v11  ;;  %v1474_v1 = vsel %vm2760_vm9, %v1872_v53, %v2630_v45  ;;  %v1571_v11 = vld [vmem:[%s2756_s6 + $0x18] sm:$0xff]  ;;  %v1573_v45 = vpack.c.bf16 %v1569_v43, %v1568_v36 }
 0xc3a   :  { %v1503_v2 = vpack.c.bf16 %v1474_v1, %v1473_v10  ;;  %v1574_v15 = vpack.c.bf16 %v1571_v11, %v1570_v44 }
 0xc3c   :  { %1515 = vmatpush.bf16.msrb.mxu3 %v1503_v2 }
 0xc3f   :  { %1678 = vmatmul.msk.bf16.vlgmr.msrb.gmra.mxu3 %vm264_vm11, %v1502_v37 }
 0xc40   :  { %1584 = vmatpush.bf16.msra.mxu3 %v1574_v15 }
 0xc44   :  { %1585 = vmatpush.bf16.msra.mxu3 %v1573_v45 }
 0xcc2   :  { %v1517_v47 = vpop.f32.mrf.mxu3 }
 0xcc3   :  { %v1566_v13 = vmul.f32 %v1559_v9, %v1517_v47 }
 0xcca   :  { %v1519_v12 = vpop.f32.mrf.mxu3 }
 0xccb   :  { %v1567_v14 = vmul.f32 %v1564_v7, %v1519_v12 }
 0xccd   :  { %v1572_v19 = vpack.c.bf16 %v1567_v14, %v1566_v13 }
 0xccf   :  { %1679 = vmatmul.msk.bf16.vlgmr.msra.gmra.mxu3 %vm264_vm11, %v1572_v19 }
 0xd52   :  { %v1587_v8 = vpop.f32.mrf.mxu3 }
 0xd53   :  { %1592 = vst.msk [vmem:[%s2757_s7] sm:$0xff] %vm264_vm11, %v1587_v8 }
 0xd5a   :  { %v1589_v20 = vpop.f32.mrf.mxu3 }
 0xd5b   :  { %1593 = vst.msk [vmem:[%s2757_s7 + $0x8] sm:$0xff] %vm264_vm11, %v1589_v20 }

</bundles_post_ra>
